<compile_context>
chip_gen: v6e
topology: v6e:2x2x1
jax: 0.10.0
libtpu: 0.0.40
codegen_flags: <defaults>
</compile_context>

<pallas_src>
import math

import numpy as np
import jax
import jax.numpy as jnp
from jax.experimental import pallas as pl
from jax.experimental.pallas import tpu as pltpu


def _round_up(v, m):
    return ((v + m - 1) // m) * m


# ----------------------------- Pallas kernel -------------------------------- #
def _make_decode_kernel(Wo):
    """Fused DecodBlock body for ONE image of the batch (grid runs over N).

    Ref shapes (channels-first, spatial flattened & lane-padded to Mp = round_up(Ho*Wo,128)):
      x_ref   : (1, Cin, Mp)     concat(up(x), skip), zero in the lane-pad region
      mask_ref: (9, Mp)          per-tap validity mask (zero where the 3x3 tap falls
                                 outside the Ho x Wo image -> implements 'same' padding)
      w1_ref  : (C1p, 9*Cin)     conv1 weights, tap-major along K, BN folded, C1 padded to C1p
      b1_ref  : (C1p, 1)         conv1 bias (BN folded, zero in padded rows)
      w2_ref  : (C2, 9*C1p)      conv2 weights (BN folded)
      b2_ref  : (C2, 1)
      o_ref   : (1, C2, Mp)
    """

    def kernel(x_ref, mask_ref, w1_ref, b1_ref, w2_ref, b2_ref, o_ref):
        x = x_ref[0]                      # (Cin, Mp) -- lane-dense, lives in VMEM/vregs
        mask = mask_ref[...]              # (9, Mp)
        Mp = x.shape[-1]

        def stencil_taps(a):
            """Build the (9*C, Mp) tap matrix for a 3x3 'same' conv on the flattened
            spatial axis: lane rolls (XLU, off the VALU critical path) + boundary masks.
            For every valid output position the rolled flat index never wraps, so the
            circular roll is exact; out-of-image taps are zeroed by the mask."""
            parts = []
            k = 0
            for dy in (-1, 0, 1):
                for dx in (-1, 0, 1):
                    s = dy * Wo + dx      # flat stencil offset
                    if s == 0:
                        parts.append(a)   # center tap: always valid, no roll/mask
                    else:
                        t = pltpu.roll(a, (-s) % Mp, axis=1) * mask[k:k + 1, :]
                        parts.append(t)
                    k += 1
            return jnp.concatenate(parts, axis=0)      # (9*C, Mp), K on sublanes

        # ---- conv1 + folded BN + ReLU: one wide-K MXU dot --------------------------
        t1 = stencil_taps(x)                                        # (9*Cin, Mp)
        y1 = jnp.dot(w1_ref[...], t1, preferred_element_type=jnp.float32)
        y1 = jnp.maximum(y1 + b1_ref[...], 0.0)                     # (C1p, Mp)

        # ---- conv2 + folded BN + ReLU: intermediate never leaves VMEM --------------
        t2 = stencil_taps(y1)                                       # (9*C1p, Mp)
        y2 = jnp.dot(w2_ref[...], t2, preferred_element_type=jnp.float32)
        y2 = jnp.maximum(y2 + b2_ref[...], 0.0)                     # (C2, Mp)

        o_ref[...] = y2.reshape(o_ref.shape).astype(o_ref.dtype)

    return kernel


def decode_block(xu, skip, p):
    """One decoder level: concat(up(x), skip) -> Conv3x3+BN+ReLU -> Conv3x3+BN+ReLU.

    xu, skip: (N, Cx, Ho, Wo) NCHW (xu is already upsampled).  Returns (N, C2, Ho, Wo).
    """
    N, Cx, Ho, Wo = xu.shape
    assert skip.shape == (N, Cx, Ho, Wo)
    Cin = 2 * Cx
    C1p = p["w1"].shape[0]
    C2 = p["w2"].shape[0]
    M = Ho * Wo
    Mp = _round_up(M, 128)                 # lane-dense flattened spatial extent

    # Channel concat (== torch.cat dim=1) + flatten spatial; both are cheap layout ops.
    x = jnp.concatenate([xu, skip], axis=1).reshape(N, Cin, M)
    if Mp != M:
        x = jnp.pad(x, ((0, 0), (0, 0), (0, Mp - M)))

    # Static per-tap boundary masks (constants under jit): valid where the tap stays
    # inside the Ho x Wo image; the lane-pad region is always masked out.
    ii = np.arange(Ho)[:, None]
    jj = np.arange(Wo)[None, :]
    rows = []
    for dy in (-1, 0, 1):
        for dx in (-1, 0, 1):
            v = (ii + dy >= 0) & (ii + dy < Ho) & (jj + dx >= 0) & (jj + dx < Wo)
            rows.append(v.reshape(-1))
    mask_np = np.zeros((9, Mp), np.float32)
    mask_np[:, :M] = np.stack(rows).astype(np.float32)
    mask = jnp.asarray(mask_np)

    out = pl.pallas_call(
        _make_decode_kernel(Wo),
        out_shape=jax.ShapeDtypeStruct((N, C2, Mp), jnp.float32),
        grid=(N,),                          # parallel over batch -> feeds both v7x TCs
        in_specs=[
            pl.BlockSpec((1, Cin, Mp), lambda n: (n, 0, 0)),
            pl.BlockSpec((9, Mp), lambda n: (0, 0)),
            pl.BlockSpec((C1p, 9 * Cin), lambda n: (0, 0)),
            pl.BlockSpec((C1p, 1), lambda n: (0, 0)),
            pl.BlockSpec((C2, 9 * C1p), lambda n: (0, 0)),
            pl.BlockSpec((C2, 1), lambda n: (0, 0)),
        ],
        out_specs=pl.BlockSpec((1, C2, Mp), lambda n: (n, 0, 0)),
        compiler_params=pltpu.CompilerParams(
            dimension_semantics=("parallel",),
        ),
    )(x, mask, p["w1"], p["b1"], p["w2"], p["b2"])

    return out[:, :, :M].reshape(N, C2, Ho, Wo)


# ------------------------------ plain-JAX glue ------------------------------- #
def upsample_bilinear_x2_align_corners(x):
    """nn.UpsamplingBilinear2d(scale_factor=2) == bilinear, align_corners=True.

    x: (N, C, H, W) -> (N, C, 2H, 2W).  Stays as jitted XLA glue (tiny gathers)."""
    N, C, H, W = x.shape
    Ho, Wo = 2 * H, 2 * W

    def coords(n_in, n_out):
        if n_in == 1:
            z = jnp.zeros((n_out,), jnp.int32)
            return z, z, jnp.zeros((n_out,), jnp.float32)
        t = jnp.arange(n_out, dtype=jnp.float32) * (n_in - 1) / (n_out - 1)
        lo = jnp.clip(jnp.floor(t).astype(jnp.int32), 0, n_in - 2)
        return lo, lo + 1, t - lo.astype(jnp.float32)

    y0, y1, fy = coords(H, Ho)
    x0, x1, fx = coords(W, Wo)

    g00 = x[:, :, y0][:, :, :, x0]
    g01 = x[:, :, y0][:, :, :, x1]
    g10 = x[:, :, y1][:, :, :, x0]
    g11 = x[:, :, y1][:, :, :, x1]

    fx = fx[None, None, None, :]
    fy = fy[None, None, :, None]
    top = g00 * (1.0 - fx) + g01 * fx
    bot = g10 * (1.0 - fx) + g11 * fx
    return top * (1.0 - fy) + bot * fy


def init_decoder_params(key, in_channels=16, depth=3):
    """Deterministic synthetic parameters matching Decoder.__init__ shapes
    (gate=False, skip_con=True, num_conv_per_layer=2,
     inter_channels_equal_out_channels=True, last_bn_relu=True).

    Inference-mode BatchNorm (running_mean=0, running_var=1, affine gamma/beta) is folded
    directly into each conv's weights/bias.  Weights are stored tap-major as (Cout, 9*Cin)
    to match the kernel's K layout; conv1's Cout is zero-padded to a multiple of 8 so the
    in-kernel sublane concats stay tile-aligned (padded channels are exactly zero)."""
    eps = 1e-5
    params = []
    for i in range(depth):
        in_c = in_channels // 2 ** i
        out_c = in_channels // 2 ** (i + 1)
        block_in = 2 * in_c                 # skip-connection concat
        inter_c = out_c                     # inter_channels_equal_out_channels=True
        conv_dims = [(block_in, inter_c), (inter_c, out_c)]   # repeats=2
        folded = []
        for (ci, co) in conv_dims:
            key, k1, k2, k3, k4 = jax.random.split(key, 5)
            w = jax.random.normal(k1, (co, ci, 3, 3), jnp.float32) / math.sqrt(ci * 9)
            b = 0.1 * jax.random.normal(k2, (co,), jnp.float32)
            gamma = 1.0 + 0.1 * jax.random.normal(k3, (co,), jnp.float32)
            beta = 0.1 * jax.random.normal(k4, (co,), jnp.float32)
            running_mean = jnp.zeros((co,), jnp.float32)
            running_var = jnp.ones((co,), jnp.float32)
            scale = gamma / jnp.sqrt(running_var + eps)
            shift = beta - running_mean * scale
            wf = w * scale[:, None, None, None]
            bf = b * scale + shift
            folded.append((wf, bf))
        (w1, b1), (w2, b2) = folded

        c1p = _round_up(inter_c, 8)
        # conv1: (C1, Cin, 3, 3) -> (C1, kH, kW, Cin) -> (C1, 9*Cin), pad Cout -> C1p.
        w1_flat = jnp.transpose(w1, (0, 2, 3, 1)).reshape(inter_c, 9 * block_in)
        w1_flat = jnp.pad(w1_flat, ((0, c1p - inter_c), (0, 0)))
        b1_col = jnp.pad(b1.reshape(inter_c, 1), ((0, c1p - inter_c), (0, 0)))
        # conv2: (C2, C1, 3, 3) -> (C2, kH, kW, C1) -> pad Cin -> C1p -> (C2, 9*C1p).
        w2_t = jnp.transpose(w2, (0, 2, 3, 1))
        w2_t = jnp.pad(w2_t, ((0, 0), (0, 0), (0, 0), (0, c1p - inter_c)))
        w2_flat = w2_t.reshape(out_c, 9 * c1p)
        b2_col = b2.reshape(out_c, 1)

        params.append(dict(w1=w1_flat, b1=b1_col, w2=w2_flat, b2=b2_col))
    return params


def decoder_forward(params, x_nchw, skips_nchw):
    """Decoder.forward(x, skip): per level -> bilinear up, concat skip, ConvBlock."""
    x = x_nchw                                          # NCHW throughout (no transposes)
    for p, s in zip(params, skips_nchw):
        xu = upsample_bilinear_x2_align_corners(x)      # Up (bilinear, align_corners=True)
        x = decode_block(xu, s, p)                      # fused concat + ConvBlock kernel
    return x


# ---------------------------------- main ------------------------------------ #
if __name__ == "__main__":
    key = jax.random.PRNGKey(0)
    kx, ks0, ks1, ks2, kp = jax.random.split(key, 5)

    in_channels, depth = 16, 3
    N, H0, W0 = 2, 4, 4

    # bottleneck feature map + skip pyramid (channels halve, spatial doubles per level)
    x = jax.random.normal(kx, (N, in_channels, H0, W0), jnp.float32)
    skips = (
        jax.random.normal(ks0, (N, 16, 8, 8), jnp.float32),
        jax.random.normal(ks1, (N, 8, 16, 16), jnp.float32),
        jax.random.normal(ks2, (N, 4, 32, 32), jnp.float32),
    )

    params = init_decoder_params(kp, in_channels=in_channels, depth=depth)

    fwd = jax.jit(decoder_forward)
    out = jax.block_until_ready(fwd(params, x, skips))

    assert out.shape == (N, in_channels // 2 ** depth, 32, 32), out.shape
    assert bool(jnp.all(jnp.isfinite(out)))
    print("KERNEL_OK")
</pallas_src>

<mosaic_0001>
module attributes {stable_mosaic.version = 11 : i64} {
  func.func @kernel(%arg0: i32, %arg1: memref<1x32x128xf32, #tpu.memory_space<vmem>>, %arg2: memref<9x128xf32, #tpu.memory_space<vmem>>, %arg3: memref<8x288xf32, #tpu.memory_space<vmem>>, %arg4: memref<8x1xf32, #tpu.memory_space<vmem>>, %arg5: memref<8x72xf32, #tpu.memory_space<vmem>>, %arg6: memref<8x1xf32, #tpu.memory_space<vmem>>, %arg7: memref<1x8x128xf32, #tpu.memory_space<vmem>>) attributes {dimension_semantics = [#tpu.dimension_semantics<parallel>], iteration_bounds = array<i64: 2>, scalar_prefetch = 0 : i64, scratch_operands = 0 : i64, tpu.core_type = #tpu.core_type<tc>, window_params = [{transform_indices = @transform_0, window_bounds = array<i64: 1, 32, 128>}, {pipeline_mode = #tpu.pipeline_mode<synchronous>, transform_indices = @transform_1, window_bounds = array<i64: 9, 128>}, {pipeline_mode = #tpu.pipeline_mode<synchronous>, transform_indices = @transform_2, window_bounds = array<i64: 8, 288>}, {pipeline_mode = #tpu.pipeline_mode<synchronous>, transform_indices = @transform_3, window_bounds = array<i64: 8, 1>}, {pipeline_mode = #tpu.pipeline_mode<synchronous>, transform_indices = @transform_4, window_bounds = array<i64: 8, 72>}, {pipeline_mode = #tpu.pipeline_mode<synchronous>, transform_indices = @transform_5, window_bounds = array<i64: 8, 1>}, {transform_indices = @transform_6, window_bounds = array<i64: 1, 8, 128>}]} {
    %c0 = arith.constant 0 : index
    %c0_0 = arith.constant 0 : index
    %c0_1 = arith.constant 0 : index
    %0 = vector.load %arg1[%c0, %c0_0, %c0_1] : memref<1x32x128xf32, #tpu.memory_space<vmem>>, vector<1x32x128xf32>
    %1 = vector.shape_cast %0 : vector<1x32x128xf32> to vector<32x128xf32>
    %c0_2 = arith.constant 0 : index
    %c0_3 = arith.constant 0 : index
    %2 = vector.load %arg2[%c0_2, %c0_3] : memref<9x128xf32, #tpu.memory_space<vmem>>, vector<9x128xf32>
    %c9_i32 = arith.constant 9 : i32
    %3 = tpu.dynamic_rotate %1 by %c9_i32 dim 1 : vector<32x128xf32>, i32 -> vector<32x128xf32>
    %4 = vector.extract_strided_slice %2 {offsets = [0, 0], sizes = [1, 128], strides = [1, 1]} : vector<9x128xf32> to vector<1x128xf32>
    %5 = vector.broadcast %4 : vector<1x128xf32> to vector<32x128xf32>
    %6 = arith.mulf %3, %5 : vector<32x128xf32>
    %c8_i32 = arith.constant 8 : i32
    %7 = tpu.dynamic_rotate %1 by %c8_i32 dim 1 : vector<32x128xf32>, i32 -> vector<32x128xf32>
    %8 = vector.extract_strided_slice %2 {offsets = [1, 0], sizes = [1, 128], strides = [1, 1]} : vector<9x128xf32> to vector<1x128xf32>
    %9 = vector.broadcast %8 : vector<1x128xf32> to vector<32x128xf32>
    %10 = arith.mulf %7, %9 : vector<32x128xf32>
    %c7_i32 = arith.constant 7 : i32
    %11 = tpu.dynamic_rotate %1 by %c7_i32 dim 1 : vector<32x128xf32>, i32 -> vector<32x128xf32>
    %12 = vector.extract_strided_slice %2 {offsets = [2, 0], sizes = [1, 128], strides = [1, 1]} : vector<9x128xf32> to vector<1x128xf32>
    %13 = vector.broadcast %12 : vector<1x128xf32> to vector<32x128xf32>
    %14 = arith.mulf %11, %13 : vector<32x128xf32>
    %c1_i32 = arith.constant 1 : i32
    %15 = tpu.dynamic_rotate %1 by %c1_i32 dim 1 : vector<32x128xf32>, i32 -> vector<32x128xf32>
    %16 = vector.extract_strided_slice %2 {offsets = [3, 0], sizes = [1, 128], strides = [1, 1]} : vector<9x128xf32> to vector<1x128xf32>
    %17 = vector.broadcast %16 : vector<1x128xf32> to vector<32x128xf32>
    %18 = arith.mulf %15, %17 : vector<32x128xf32>
    %c127_i32 = arith.constant 127 : i32
    %19 = tpu.dynamic_rotate %1 by %c127_i32 dim 1 : vector<32x128xf32>, i32 -> vector<32x128xf32>
    %20 = vector.extract_strided_slice %2 {offsets = [5, 0], sizes = [1, 128], strides = [1, 1]} : vector<9x128xf32> to vector<1x128xf32>
    %21 = vector.broadcast %20 : vector<1x128xf32> to vector<32x128xf32>
    %22 = arith.mulf %19, %21 : vector<32x128xf32>
    %c121_i32 = arith.constant 121 : i32
    %23 = tpu.dynamic_rotate %1 by %c121_i32 dim 1 : vector<32x128xf32>, i32 -> vector<32x128xf32>
    %24 = vector.extract_strided_slice %2 {offsets = [6, 0], sizes = [1, 128], strides = [1, 1]} : vector<9x128xf32> to vector<1x128xf32>
    %25 = vector.broadcast %24 : vector<1x128xf32> to vector<32x128xf32>
    %26 = arith.mulf %23, %25 : vector<32x128xf32>
    %c120_i32 = arith.constant 120 : i32
    %27 = tpu.dynamic_rotate %1 by %c120_i32 dim 1 : vector<32x128xf32>, i32 -> vector<32x128xf32>
    %28 = vector.extract_strided_slice %2 {offsets = [7, 0], sizes = [1, 128], strides = [1, 1]} : vector<9x128xf32> to vector<1x128xf32>
    %29 = vector.broadcast %28 : vector<1x128xf32> to vector<32x128xf32>
    %30 = arith.mulf %27, %29 : vector<32x128xf32>
    %c119_i32 = arith.constant 119 : i32
    %31 = tpu.dynamic_rotate %1 by %c119_i32 dim 1 : vector<32x128xf32>, i32 -> vector<32x128xf32>
    %32 = vector.extract_strided_slice %2 {offsets = [8, 0], sizes = [1, 128], strides = [1, 1]} : vector<9x128xf32> to vector<1x128xf32>
    %33 = vector.broadcast %32 : vector<1x128xf32> to vector<32x128xf32>
    %34 = arith.mulf %31, %33 : vector<32x128xf32>
    %35 = tpu.concatenate %6, %10, %14, %18, %1, %22, %26, %30, %34 in 0 : vector<32x128xf32>, vector<32x128xf32>, vector<32x128xf32>, vector<32x128xf32>, vector<32x128xf32>, vector<32x128xf32>, vector<32x128xf32>, vector<32x128xf32>, vector<32x128xf32> -> vector<288x128xf32>
    %c0_4 = arith.constant 0 : index
    %c0_5 = arith.constant 0 : index
    %36 = vector.load %arg3[%c0_4, %c0_5] : memref<8x288xf32, #tpu.memory_space<vmem>>, vector<8x288xf32>
    %cst = arith.constant dense<0.000000e+00> : vector<8x128xf32>
    %37 = tpu.matmul %36, %35, %cst {dimension_numbers = #tpu.dot_dimension_numbers<[1], [0], [0], [1], [0, 0, 1, 1], [], []>} : vector<8x288xf32>, vector<288x128xf32>, vector<8x128xf32> -> vector<8x128xf32>
    %c0_6 = arith.constant 0 : index
    %c0_7 = arith.constant 0 : index
    %38 = vector.load %arg4[%c0_6, %c0_7] : memref<8x1xf32, #tpu.memory_space<vmem>>, vector<8x1xf32>
    %39 = vector.broadcast %38 : vector<8x1xf32> to vector<8x128xf32>
    %40 = arith.addf %37, %39 : vector<8x128xf32>
    %cst_8 = arith.constant 0.000000e+00 : f32
    %41 = vector.broadcast %cst_8 : f32 to vector<8x128xf32>
    %42 = arith.maximumf %40, %41 : vector<8x128xf32>
    %c9_i32_9 = arith.constant 9 : i32
    %43 = tpu.dynamic_rotate %42 by %c9_i32_9 dim 1 : vector<8x128xf32>, i32 -> vector<8x128xf32>
    %44 = vector.extract_strided_slice %2 {offsets = [0, 0], sizes = [1, 128], strides = [1, 1]} : vector<9x128xf32> to vector<1x128xf32>
    %45 = vector.broadcast %44 : vector<1x128xf32> to vector<8x128xf32>
    %46 = arith.mulf %43, %45 : vector<8x128xf32>
    %c8_i32_10 = arith.constant 8 : i32
    %47 = tpu.dynamic_rotate %42 by %c8_i32_10 dim 1 : vector<8x128xf32>, i32 -> vector<8x128xf32>
    %48 = vector.extract_strided_slice %2 {offsets = [1, 0], sizes = [1, 128], strides = [1, 1]} : vector<9x128xf32> to vector<1x128xf32>
    %49 = vector.broadcast %48 : vector<1x128xf32> to vector<8x128xf32>
    %50 = arith.mulf %47, %49 : vector<8x128xf32>
    %c7_i32_11 = arith.constant 7 : i32
    %51 = tpu.dynamic_rotate %42 by %c7_i32_11 dim 1 : vector<8x128xf32>, i32 -> vector<8x128xf32>
    %52 = vector.extract_strided_slice %2 {offsets = [2, 0], sizes = [1, 128], strides = [1, 1]} : vector<9x128xf32> to vector<1x128xf32>
    %53 = vector.broadcast %52 : vector<1x128xf32> to vector<8x128xf32>
    %54 = arith.mulf %51, %53 : vector<8x128xf32>
    %c1_i32_12 = arith.constant 1 : i32
    %55 = tpu.dynamic_rotate %42 by %c1_i32_12 dim 1 : vector<8x128xf32>, i32 -> vector<8x128xf32>
    %56 = vector.extract_strided_slice %2 {offsets = [3, 0], sizes = [1, 128], strides = [1, 1]} : vector<9x128xf32> to vector<1x128xf32>
    %57 = vector.broadcast %56 : vector<1x128xf32> to vector<8x128xf32>
    %58 = arith.mulf %55, %57 : vector<8x128xf32>
    %c127_i32_13 = arith.constant 127 : i32
    %59 = tpu.dynamic_rotate %42 by %c127_i32_13 dim 1 : vector<8x128xf32>, i32 -> vector<8x128xf32>
    %60 = vector.extract_strided_slice %2 {offsets = [5, 0], sizes = [1, 128], strides = [1, 1]} : vector<9x128xf32> to vector<1x128xf32>
    %61 = vector.broadcast %60 : vector<1x128xf32> to vector<8x128xf32>
    %62 = arith.mulf %59, %61 : vector<8x128xf32>
    %c121_i32_14 = arith.constant 121 : i32
    %63 = tpu.dynamic_rotate %42 by %c121_i32_14 dim 1 : vector<8x128xf32>, i32 -> vector<8x128xf32>
    %64 = vector.extract_strided_slice %2 {offsets = [6, 0], sizes = [1, 128], strides = [1, 1]} : vector<9x128xf32> to vector<1x128xf32>
    %65 = vector.broadcast %64 : vector<1x128xf32> to vector<8x128xf32>
    %66 = arith.mulf %63, %65 : vector<8x128xf32>
    %c120_i32_15 = arith.constant 120 : i32
    %67 = tpu.dynamic_rotate %42 by %c120_i32_15 dim 1 : vector<8x128xf32>, i32 -> vector<8x128xf32>
    %68 = vector.extract_strided_slice %2 {offsets = [7, 0], sizes = [1, 128], strides = [1, 1]} : vector<9x128xf32> to vector<1x128xf32>
    %69 = vector.broadcast %68 : vector<1x128xf32> to vector<8x128xf32>
    %70 = arith.mulf %67, %69 : vector<8x128xf32>
    %c119_i32_16 = arith.constant 119 : i32
    %71 = tpu.dynamic_rotate %42 by %c119_i32_16 dim 1 : vector<8x128xf32>, i32 -> vector<8x128xf32>
    %72 = vector.extract_strided_slice %2 {offsets = [8, 0], sizes = [1, 128], strides = [1, 1]} : vector<9x128xf32> to vector<1x128xf32>
    %73 = vector.broadcast %72 : vector<1x128xf32> to vector<8x128xf32>
    %74 = arith.mulf %71, %73 : vector<8x128xf32>
    %75 = tpu.concatenate %46, %50, %54, %58, %42, %62, %66, %70, %74 in 0 : vector<8x128xf32>, vector<8x128xf32>, vector<8x128xf32>, vector<8x128xf32>, vector<8x128xf32>, vector<8x128xf32>, vector<8x128xf32>, vector<8x128xf32>, vector<8x128xf32> -> vector<72x128xf32>
    %c0_17 = arith.constant 0 : index
    %c0_18 = arith.constant 0 : index
    %76 = vector.load %arg5[%c0_17, %c0_18] : memref<8x72xf32, #tpu.memory_space<vmem>>, vector<8x72xf32>
    %cst_19 = arith.constant dense<0.000000e+00> : vector<8x128xf32>
    %77 = tpu.matmul %76, %75, %cst_19 {dimension_numbers = #tpu.dot_dimension_numbers<[1], [0], [0], [1], [0, 0, 1, 1], [], []>} : vector<8x72xf32>, vector<72x128xf32>, vector<8x128xf32> -> vector<8x128xf32>
    %c0_20 = arith.constant 0 : index
    %c0_21 = arith.constant 0 : index
    %78 = vector.load %arg6[%c0_20, %c0_21] : memref<8x1xf32, #tpu.memory_space<vmem>>, vector<8x1xf32>
    %79 = vector.broadcast %78 : vector<8x1xf32> to vector<8x128xf32>
    %80 = arith.addf %77, %79 : vector<8x128xf32>
    %cst_22 = arith.constant 0.000000e+00 : f32
    %81 = vector.broadcast %cst_22 : f32 to vector<8x128xf32>
    %82 = arith.maximumf %80, %81 : vector<8x128xf32>
    %83 = vector.shape_cast %82 : vector<8x128xf32> to vector<1x8x128xf32>
    %c0_23 = arith.constant 0 : index
    %c0_24 = arith.constant 0 : index
    %c0_25 = arith.constant 0 : index
    %84 = vector.load %arg7[%c0_23, %c0_24, %c0_25] : memref<1x8x128xf32, #tpu.memory_space<vmem>>, vector<1x8x128xf32>
    tpu.vector_store %arg7[%c0_23, %c0_24, %c0_25], %83 {strides = array<i32>} : memref<1x8x128xf32, #tpu.memory_space<vmem>>, vector<1x8x128xf32>,
    return
  }
  func.func @transform_0(%arg0: i32) -> (i32, i32, i32) {
    %c0_i32 = arith.constant 0 : i32
    %c0_i32_0 = arith.constant 0 : i32
    %c0_i32_1 = arith.constant 0 : i32
    return %arg0, %c0_i32, %c0_i32_0 : i32, i32, i32
  }
  func.func @transform_1(%arg0: i32) -> (i32, i32) {
    %c0_i32 = arith.constant 0 : i32
    %c0_i32_0 = arith.constant 0 : i32
    %c0_i32_1 = arith.constant 0 : i32
    return %c0_i32, %c0_i32_0 : i32, i32
  }
  func.func @transform_2(%arg0: i32) -> (i32, i32) {
    %c0_i32 = arith.constant 0 : i32
    %c0_i32_0 = arith.constant 0 : i32
    %c0_i32_1 = arith.constant 0 : i32
    return %c0_i32, %c0_i32_0 : i32, i32
  }
  func.func @transform_3(%arg0: i32) -> (i32, i32) {
    %c0_i32 = arith.constant 0 : i32
    %c0_i32_0 = arith.constant 0 : i32
    %c0_i32_1 = arith.constant 0 : i32
    return %c0_i32, %c0_i32_0 : i32, i32
  }
  func.func @transform_4(%arg0: i32) -> (i32, i32) {
    %c0_i32 = arith.constant 0 : i32
    %c0_i32_0 = arith.constant 0 : i32
    %c0_i32_1 = arith.constant 0 : i32
    return %c0_i32, %c0_i32_0 : i32, i32
  }
  func.func @transform_5(%arg0: i32) -> (i32, i32) {
    %c0_i32 = arith.constant 0 : i32
    %c0_i32_0 = arith.constant 0 : i32
    %c0_i32_1 = arith.constant 0 : i32
    return %c0_i32, %c0_i32_0 : i32, i32
  }
  func.func @transform_6(%arg0: i32) -> (i32, i32, i32) {
    %c0_i32 = arith.constant 0 : i32
    %c0_i32_0 = arith.constant 0 : i32
    %c0_i32_1 = arith.constant 0 : i32
    return %arg0, %c0_i32, %c0_i32_0 : i32, i32, i32
  }
}

module attributes {stable_mosaic.version = 11 : i64} {
  func.func @kernel(%arg0: i32, %arg1: memref<1x16x256xf32, #tpu.memory_space<vmem>>, %arg2: memref<9x256xf32, #tpu.memory_space<vmem>>, %arg3: memref<8x144xf32, #tpu.memory_space<vmem>>, %arg4: memref<8x1xf32, #tpu.memory_space<vmem>>, %arg5: memref<4x72xf32, #tpu.memory_space<vmem>>, %arg6: memref<4x1xf32, #tpu.memory_space<vmem>>, %arg7: memref<1x4x256xf32, #tpu.memory_space<vmem>>) attributes {dimension_semantics = [#tpu.dimension_semantics<parallel>], iteration_bounds = array<i64: 2>, scalar_prefetch = 0 : i64, scratch_operands = 0 : i64, tpu.core_type = #tpu.core_type<tc>, window_params = [{transform_indices = @transform_0, window_bounds = array<i64: 1, 16, 256>}, {pipeline_mode = #tpu.pipeline_mode<synchronous>, transform_indices = @transform_1, window_bounds = array<i64: 9, 256>}, {pipeline_mode = #tpu.pipeline_mode<synchronous>, transform_indices = @transform_2, window_bounds = array<i64: 8, 144>}, {pipeline_mode = #tpu.pipeline_mode<synchronous>, transform_indices = @transform_3, window_bounds = array<i64: 8, 1>}, {pipeline_mode = #tpu.pipeline_mode<synchronous>, transform_indices = @transform_4, window_bounds = array<i64: 4, 72>}, {pipeline_mode = #tpu.pipeline_mode<synchronous>, transform_indices = @transform_5, window_bounds = array<i64: 4, 1>}, {transform_indices = @transform_6, window_bounds = array<i64: 1, 4, 256>}]} {
    %c0 = arith.constant 0 : index
    %c0_0 = arith.constant 0 : index
    %c0_1 = arith.constant 0 : index
    %0 = vector.load %arg1[%c0, %c0_0, %c0_1] : memref<1x16x256xf32, #tpu.memory_space<vmem>>, vector<1x16x256xf32>
    %1 = vector.shape_cast %0 : vector<1x16x256xf32> to vector<16x256xf32>
    %c0_2 = arith.constant 0 : index
    %c0_3 = arith.constant 0 : index
    %2 = vector.load %arg2[%c0_2, %c0_3] : memref<9x256xf32, #tpu.memory_space<vmem>>, vector<9x256xf32>
    %c17_i32 = arith.constant 17 : i32
    %3 = tpu.dynamic_rotate %1 by %c17_i32 dim 1 : vector<16x256xf32>, i32 -> vector<16x256xf32>
    %4 = vector.extract_strided_slice %2 {offsets = [0, 0], sizes = [1, 256], strides = [1, 1]} : vector<9x256xf32> to vector<1x256xf32>
    %5 = vector.broadcast %4 : vector<1x256xf32> to vector<16x256xf32>
    %6 = arith.mulf %3, %5 : vector<16x256xf32>
    %c16_i32 = arith.constant 16 : i32
    %7 = tpu.dynamic_rotate %1 by %c16_i32 dim 1 : vector<16x256xf32>, i32 -> vector<16x256xf32>
    %8 = vector.extract_strided_slice %2 {offsets = [1, 0], sizes = [1, 256], strides = [1, 1]} : vector<9x256xf32> to vector<1x256xf32>
    %9 = vector.broadcast %8 : vector<1x256xf32> to vector<16x256xf32>
    %10 = arith.mulf %7, %9 : vector<16x256xf32>
    %c15_i32 = arith.constant 15 : i32
    %11 = tpu.dynamic_rotate %1 by %c15_i32 dim 1 : vector<16x256xf32>, i32 -> vector<16x256xf32>
    %12 = vector.extract_strided_slice %2 {offsets = [2, 0], sizes = [1, 256], strides = [1, 1]} : vector<9x256xf32> to vector<1x256xf32>
    %13 = vector.broadcast %12 : vector<1x256xf32> to vector<16x256xf32>
    %14 = arith.mulf %11, %13 : vector<16x256xf32>
    %c1_i32 = arith.constant 1 : i32
    %15 = tpu.dynamic_rotate %1 by %c1_i32 dim 1 : vector<16x256xf32>, i32 -> vector<16x256xf32>
    %16 = vector.extract_strided_slice %2 {offsets = [3, 0], sizes = [1, 256], strides = [1, 1]} : vector<9x256xf32> to vector<1x256xf32>
    %17 = vector.broadcast %16 : vector<1x256xf32> to vector<16x256xf32>
    %18 = arith.mulf %15, %17 : vector<16x256xf32>
    %c255_i32 = arith.constant 255 : i32
    %19 = tpu.dynamic_rotate %1 by %c255_i32 dim 1 : vector<16x256xf32>, i32 -> vector<16x256xf32>
    %20 = vector.extract_strided_slice %2 {offsets = [5, 0], sizes = [1, 256], strides = [1, 1]} : vector<9x256xf32> to vector<1x256xf32>
    %21 = vector.broadcast %20 : vector<1x256xf32> to vector<16x256xf32>
    %22 = arith.mulf %19, %21 : vector<16x256xf32>
    %c241_i32 = arith.constant 241 : i32
    %23 = tpu.dynamic_rotate %1 by %c241_i32 dim 1 : vector<16x256xf32>, i32 -> vector<16x256xf32>
    %24 = vector.extract_strided_slice %2 {offsets = [6, 0], sizes = [1, 256], strides = [1, 1]} : vector<9x256xf32> to vector<1x256xf32>
    %25 = vector.broadcast %24 : vector<1x256xf32> to vector<16x256xf32>
    %26 = arith.mulf %23, %25 : vector<16x256xf32>
    %c240_i32 = arith.constant 240 : i32
    %27 = tpu.dynamic_rotate %1 by %c240_i32 dim 1 : vector<16x256xf32>, i32 -> vector<16x256xf32>
    %28 = vector.extract_strided_slice %2 {offsets = [7, 0], sizes = [1, 256], strides = [1, 1]} : vector<9x256xf32> to vector<1x256xf32>
    %29 = vector.broadcast %28 : vector<1x256xf32> to vector<16x256xf32>
    %30 = arith.mulf %27, %29 : vector<16x256xf32>
    %c239_i32 = arith.constant 239 : i32
    %31 = tpu.dynamic_rotate %1 by %c239_i32 dim 1 : vector<16x256xf32>, i32 -> vector<16x256xf32>
    %32 = vector.extract_strided_slice %2 {offsets = [8, 0], sizes = [1, 256], strides = [1, 1]} : vector<9x256xf32> to vector<1x256xf32>
    %33 = vector.broadcast %32 : vector<1x256xf32> to vector<16x256xf32>
    %34 = arith.mulf %31, %33 : vector<16x256xf32>
    %35 = tpu.concatenate %6, %10, %14, %18, %1, %22, %26, %30, %34 in 0 : vector<16x256xf32>, vector<16x256xf32>, vector<16x256xf32>, vector<16x256xf32>, vector<16x256xf32>, vector<16x256xf32>, vector<16x256xf32>, vector<16x256xf32>, vector<16x256xf32> -> vector<144x256xf32>
    %c0_4 = arith.constant 0 : index
    %c0_5 = arith.constant 0 : index
    %36 = vector.load %arg3[%c0_4, %c0_5] : memref<8x144xf32, #tpu.memory_space<vmem>>, vector<8x144xf32>
    %cst = arith.constant dense<0.000000e+00> : vector<8x256xf32>
    %37 = tpu.matmul %36, %35, %cst {dimension_numbers = #tpu.dot_dimension_numbers<[1], [0], [0], [1], [0, 0, 1, 1], [], []>} : vector<8x144xf32>, vector<144x256xf32>, vector<8x256xf32> -> vector<8x256xf32>
    %c0_6 = arith.constant 0 : index
    %c0_7 = arith.constant 0 : index
    %38 = vector.load %arg4[%c0_6, %c0_7] : memref<8x1xf32, #tpu.memory_space<vmem>>, vector<8x1xf32>
    %39 = vector.broadcast %38 : vector<8x1xf32> to vector<8x256xf32>
    %40 = arith.addf %37, %39 : vector<8x256xf32>
    %cst_8 = arith.constant 0.000000e+00 : f32
    %41 = vector.broadcast %cst_8 : f32 to vector<8x256xf32>
    %42 = arith.maximumf %40, %41 : vector<8x256xf32>
    %c17_i32_9 = arith.constant 17 : i32
    %43 = tpu.dynamic_rotate %42 by %c17_i32_9 dim 1 : vector<8x256xf32>, i32 -> vector<8x256xf32>
    %44 = vector.extract_strided_slice %2 {offsets = [0, 0], sizes = [1, 256], strides = [1, 1]} : vector<9x256xf32> to vector<1x256xf32>
    %45 = vector.broadcast %44 : vector<1x256xf32> to vector<8x256xf32>
    %46 = arith.mulf %43, %45 : vector<8x256xf32>
    %c16_i32_10 = arith.constant 16 : i32
    %47 = tpu.dynamic_rotate %42 by %c16_i32_10 dim 1 : vector<8x256xf32>, i32 -> vector<8x256xf32>
    %48 = vector.extract_strided_slice %2 {offsets = [1, 0], sizes = [1, 256], strides = [1, 1]} : vector<9x256xf32> to vector<1x256xf32>
    %49 = vector.broadcast %48 : vector<1x256xf32> to vector<8x256xf32>
    %50 = arith.mulf %47, %49 : vector<8x256xf32>
    %c15_i32_11 = arith.constant 15 : i32
    %51 = tpu.dynamic_rotate %42 by %c15_i32_11 dim 1 : vector<8x256xf32>, i32 -> vector<8x256xf32>
    %52 = vector.extract_strided_slice %2 {offsets = [2, 0], sizes = [1, 256], strides = [1, 1]} : vector<9x256xf32> to vector<1x256xf32>
    %53 = vector.broadcast %52 : vector<1x256xf32> to vector<8x256xf32>
    %54 = arith.mulf %51, %53 : vector<8x256xf32>
    %c1_i32_12 = arith.constant 1 : i32
    %55 = tpu.dynamic_rotate %42 by %c1_i32_12 dim 1 : vector<8x256xf32>, i32 -> vector<8x256xf32>
    %56 = vector.extract_strided_slice %2 {offsets = [3, 0], sizes = [1, 256], strides = [1, 1]} : vector<9x256xf32> to vector<1x256xf32>
    %57 = vector.broadcast %56 : vector<1x256xf32> to vector<8x256xf32>
    %58 = arith.mulf %55, %57 : vector<8x256xf32>
    %c255_i32_13 = arith.constant 255 : i32
    %59 = tpu.dynamic_rotate %42 by %c255_i32_13 dim 1 : vector<8x256xf32>, i32 -> vector<8x256xf32>
    %60 = vector.extract_strided_slice %2 {offsets = [5, 0], sizes = [1, 256], strides = [1, 1]} : vector<9x256xf32> to vector<1x256xf32>
    %61 = vector.broadcast %60 : vector<1x256xf32> to vector<8x256xf32>
    %62 = arith.mulf %59, %61 : vector<8x256xf32>
    %c241_i32_14 = arith.constant 241 : i32
    %63 = tpu.dynamic_rotate %42 by %c241_i32_14 dim 1 : vector<8x256xf32>, i32 -> vector<8x256xf32>
    %64 = vector.extract_strided_slice %2 {offsets = [6, 0], sizes = [1, 256], strides = [1, 1]} : vector<9x256xf32> to vector<1x256xf32>
    %65 = vector.broadcast %64 : vector<1x256xf32> to vector<8x256xf32>
    %66 = arith.mulf %63, %65 : vector<8x256xf32>
    %c240_i32_15 = arith.constant 240 : i32
    %67 = tpu.dynamic_rotate %42 by %c240_i32_15 dim 1 : vector<8x256xf32>, i32 -> vector<8x256xf32>
    %68 = vector.extract_strided_slice %2 {offsets = [7, 0], sizes = [1, 256], strides = [1, 1]} : vector<9x256xf32> to vector<1x256xf32>
    %69 = vector.broadcast %68 : vector<1x256xf32> to vector<8x256xf32>
    %70 = arith.mulf %67, %69 : vector<8x256xf32>
    %c239_i32_16 = arith.constant 239 : i32
    %71 = tpu.dynamic_rotate %42 by %c239_i32_16 dim 1 : vector<8x256xf32>, i32 -> vector<8x256xf32>
    %72 = vector.extract_strided_slice %2 {offsets = [8, 0], sizes = [1, 256], strides = [1, 1]} : vector<9x256xf32> to vector<1x256xf32>
    %73 = vector.broadcast %72 : vector<1x256xf32> to vector<8x256xf32>
    %74 = arith.mulf %71, %73 : vector<8x256xf32>
    %75 = tpu.concatenate %46, %50, %54, %58, %42, %62, %66, %70, %74 in 0 : vector<8x256xf32>, vector<8x256xf32>, vector<8x256xf32>, vector<8x256xf32>, vector<8x256xf32>, vector<8x256xf32>, vector<8x256xf32>, vector<8x256xf32>, vector<8x256xf32> -> vector<72x256xf32>
    %c0_17 = arith.constant 0 : index
    %c0_18 = arith.constant 0 : index
    %76 = vector.load %arg5[%c0_17, %c0_18] : memref<4x72xf32, #tpu.memory_space<vmem>>, vector<4x72xf32>
    %cst_19 = arith.constant dense<0.000000e+00> : vector<4x256xf32>
    %77 = tpu.matmul %76, %75, %cst_19 {dimension_numbers = #tpu.dot_dimension_numbers<[1], [0], [0], [1], [0, 0, 1, 1], [], []>} : vector<4x72xf32>, vector<72x256xf32>, vector<4x256xf32> -> vector<4x256xf32>
    %c0_20 = arith.constant 0 : index
    %c0_21 = arith.constant 0 : index
    %78 = vector.load %arg6[%c0_20, %c0_21] : memref<4x1xf32, #tpu.memory_space<vmem>>, vector<4x1xf32>
    %79 = vector.broadcast %78 : vector<4x1xf32> to vector<4x256xf32>
    %80 = arith.addf %77, %79 : vector<4x256xf32>
    %cst_22 = arith.constant 0.000000e+00 : f32
    %81 = vector.broadcast %cst_22 : f32 to vector<4x256xf32>
    %82 = arith.maximumf %80, %81 : vector<4x256xf32>
    %83 = vector.shape_cast %82 : vector<4x256xf32> to vector<1x4x256xf32>
    %c0_23 = arith.constant 0 : index
    %c0_24 = arith.constant 0 : index
    %c0_25 = arith.constant 0 : index
    %84 = vector.load %arg7[%c0_23, %c0_24, %c0_25] : memref<1x4x256xf32, #tpu.memory_space<vmem>>, vector<1x4x256xf32>
    tpu.vector_store %arg7[%c0_23, %c0_24, %c0_25], %83 {strides = array<i32>} : memref<1x4x256xf32, #tpu.memory_space<vmem>>, vector<1x4x256xf32>,
    return
  }
  func.func @transform_0(%arg0: i32) -> (i32, i32, i32) {
    %c0_i32 = arith.constant 0 : i32
    %c0_i32_0 = arith.constant 0 : i32
    %c0_i32_1 = arith.constant 0 : i32
    return %arg0, %c0_i32, %c0_i32_0 : i32, i32, i32
  }
  func.func @transform_1(%arg0: i32) -> (i32, i32) {
    %c0_i32 = arith.constant 0 : i32
    %c0_i32_0 = arith.constant 0 : i32
    %c0_i32_1 = arith.constant 0 : i32
    return %c0_i32, %c0_i32_0 : i32, i32
  }
  func.func @transform_2(%arg0: i32) -> (i32, i32) {
    %c0_i32 = arith.constant 0 : i32
    %c0_i32_0 = arith.constant 0 : i32
    %c0_i32_1 = arith.constant 0 : i32
    return %c0_i32, %c0_i32_0 : i32, i32
  }
  func.func @transform_3(%arg0: i32) -> (i32, i32) {
    %c0_i32 = arith.constant 0 : i32
    %c0_i32_0 = arith.constant 0 : i32
    %c0_i32_1 = arith.constant 0 : i32
    return %c0_i32, %c0_i32_0 : i32, i32
  }
  func.func @transform_4(%arg0: i32) -> (i32, i32) {
    %c0_i32 = arith.constant 0 : i32
    %c0_i32_0 = arith.constant 0 : i32
    %c0_i32_1 = arith.constant 0 : i32
    return %c0_i32, %c0_i32_0 : i32, i32
  }
  func.func @transform_5(%arg0: i32) -> (i32, i32) {
    %c0_i32 = arith.constant 0 : i32
    %c0_i32_0 = arith.constant 0 : i32
    %c0_i32_1 = arith.constant 0 : i32
    return %c0_i32, %c0_i32_0 : i32, i32
  }
  func.func @transform_6(%arg0: i32) -> (i32, i32, i32) {
    %c0_i32 = arith.constant 0 : i32
    %c0_i32_0 = arith.constant 0 : i32
    %c0_i32_1 = arith.constant 0 : i32
    return %arg0, %c0_i32, %c0_i32_0 : i32, i32, i32
  }
}

module attributes {stable_mosaic.version = 11 : i64} {
  func.func @kernel(%arg0: i32, %arg1: memref<1x8x1024xf32, #tpu.memory_space<vmem>>, %arg2: memref<9x1024xf32, #tpu.memory_space<vmem>>, %arg3: memref<8x72xf32, #tpu.memory_space<vmem>>, %arg4: memref<8x1xf32, #tpu.memory_space<vmem>>, %arg5: memref<2x72xf32, #tpu.memory_space<vmem>>, %arg6: memref<2x1xf32, #tpu.memory_space<vmem>>, %arg7: memref<1x2x1024xf32, #tpu.memory_space<vmem>>) attributes {dimension_semantics = [#tpu.dimension_semantics<parallel>], iteration_bounds = array<i64: 2>, scalar_prefetch = 0 : i64, scratch_operands = 0 : i64, tpu.core_type = #tpu.core_type<tc>, window_params = [{transform_indices = @transform_0, window_bounds = array<i64: 1, 8, 1024>}, {pipeline_mode = #tpu.pipeline_mode<synchronous>, transform_indices = @transform_1, window_bounds = array<i64: 9, 1024>}, {pipeline_mode = #tpu.pipeline_mode<synchronous>, transform_indices = @transform_2, window_bounds = array<i64: 8, 72>}, {pipeline_mode = #tpu.pipeline_mode<synchronous>, transform_indices = @transform_3, window_bounds = array<i64: 8, 1>}, {pipeline_mode = #tpu.pipeline_mode<synchronous>, transform_indices = @transform_4, window_bounds = array<i64: 2, 72>}, {pipeline_mode = #tpu.pipeline_mode<synchronous>, transform_indices = @transform_5, window_bounds = array<i64: 2, 1>}, {transform_indices = @transform_6, window_bounds = array<i64: 1, 2, 1024>}]} {
    %c0 = arith.constant 0 : index
    %c0_0 = arith.constant 0 : index
    %c0_1 = arith.constant 0 : index
    %0 = vector.load %arg1[%c0, %c0_0, %c0_1] : memref<1x8x1024xf32, #tpu.memory_space<vmem>>, vector<1x8x1024xf32>
    %1 = vector.shape_cast %0 : vector<1x8x1024xf32> to vector<8x1024xf32>
    %c0_2 = arith.constant 0 : index
    %c0_3 = arith.constant 0 : index
    %2 = vector.load %arg2[%c0_2, %c0_3] : memref<9x1024xf32, #tpu.memory_space<vmem>>, vector<9x1024xf32>
    %c33_i32 = arith.constant 33 : i32
    %3 = tpu.dynamic_rotate %1 by %c33_i32 dim 1 : vector<8x1024xf32>, i32 -> vector<8x1024xf32>
    %4 = vector.extract_strided_slice %2 {offsets = [0, 0], sizes = [1, 1024], strides = [1, 1]} : vector<9x1024xf32> to vector<1x1024xf32>
    %5 = vector.broadcast %4 : vector<1x1024xf32> to vector<8x1024xf32>
    %6 = arith.mulf %3, %5 : vector<8x1024xf32>
    %c32_i32 = arith.constant 32 : i32
    %7 = tpu.dynamic_rotate %1 by %c32_i32 dim 1 : vector<8x1024xf32>, i32 -> vector<8x1024xf32>
    %8 = vector.extract_strided_slice %2 {offsets = [1, 0], sizes = [1, 1024], strides = [1, 1]} : vector<9x1024xf32> to vector<1x1024xf32>
    %9 = vector.broadcast %8 : vector<1x1024xf32> to vector<8x1024xf32>
    %10 = arith.mulf %7, %9 : vector<8x1024xf32>
    %c31_i32 = arith.constant 31 : i32
    %11 = tpu.dynamic_rotate %1 by %c31_i32 dim 1 : vector<8x1024xf32>, i32 -> vector<8x1024xf32>
    %12 = vector.extract_strided_slice %2 {offsets = [2, 0], sizes = [1, 1024], strides = [1, 1]} : vector<9x1024xf32> to vector<1x1024xf32>
    %13 = vector.broadcast %12 : vector<1x1024xf32> to vector<8x1024xf32>
    %14 = arith.mulf %11, %13 : vector<8x1024xf32>
    %c1_i32 = arith.constant 1 : i32
    %15 = tpu.dynamic_rotate %1 by %c1_i32 dim 1 : vector<8x1024xf32>, i32 -> vector<8x1024xf32>
    %16 = vector.extract_strided_slice %2 {offsets = [3, 0], sizes = [1, 1024], strides = [1, 1]} : vector<9x1024xf32> to vector<1x1024xf32>
    %17 = vector.broadcast %16 : vector<1x1024xf32> to vector<8x1024xf32>
    %18 = arith.mulf %15, %17 : vector<8x1024xf32>
    %c1023_i32 = arith.constant 1023 : i32
    %19 = tpu.dynamic_rotate %1 by %c1023_i32 dim 1 : vector<8x1024xf32>, i32 -> vector<8x1024xf32>
    %20 = vector.extract_strided_slice %2 {offsets = [5, 0], sizes = [1, 1024], strides = [1, 1]} : vector<9x1024xf32> to vector<1x1024xf32>
    %21 = vector.broadcast %20 : vector<1x1024xf32> to vector<8x1024xf32>
    %22 = arith.mulf %19, %21 : vector<8x1024xf32>
    %c993_i32 = arith.constant 993 : i32
    %23 = tpu.dynamic_rotate %1 by %c993_i32 dim 1 : vector<8x1024xf32>, i32 -> vector<8x1024xf32>
    %24 = vector.extract_strided_slice %2 {offsets = [6, 0], sizes = [1, 1024], strides = [1, 1]} : vector<9x1024xf32> to vector<1x1024xf32>
    %25 = vector.broadcast %24 : vector<1x1024xf32> to vector<8x1024xf32>
    %26 = arith.mulf %23, %25 : vector<8x1024xf32>
    %c992_i32 = arith.constant 992 : i32
    %27 = tpu.dynamic_rotate %1 by %c992_i32 dim 1 : vector<8x1024xf32>, i32 -> vector<8x1024xf32>
    %28 = vector.extract_strided_slice %2 {offsets = [7, 0], sizes = [1, 1024], strides = [1, 1]} : vector<9x1024xf32> to vector<1x1024xf32>
    %29 = vector.broadcast %28 : vector<1x1024xf32> to vector<8x1024xf32>
    %30 = arith.mulf %27, %29 : vector<8x1024xf32>
    %c991_i32 = arith.constant 991 : i32
    %31 = tpu.dynamic_rotate %1 by %c991_i32 dim 1 : vector<8x1024xf32>, i32 -> vector<8x1024xf32>
    %32 = vector.extract_strided_slice %2 {offsets = [8, 0], sizes = [1, 1024], strides = [1, 1]} : vector<9x1024xf32> to vector<1x1024xf32>
    %33 = vector.broadcast %32 : vector<1x1024xf32> to vector<8x1024xf32>
    %34 = arith.mulf %31, %33 : vector<8x1024xf32>
    %35 = tpu.concatenate %6, %10, %14, %18, %1, %22, %26, %30, %34 in 0 : vector<8x1024xf32>, vector<8x1024xf32>, vector<8x1024xf32>, vector<8x1024xf32>, vector<8x1024xf32>, vector<8x1024xf32>, vector<8x1024xf32>, vector<8x1024xf32>, vector<8x1024xf32> -> vector<72x1024xf32>
    %c0_4 = arith.constant 0 : index
    %c0_5 = arith.constant 0 : index
    %36 = vector.load %arg3[%c0_4, %c0_5] : memref<8x72xf32, #tpu.memory_space<vmem>>, vector<8x72xf32>
    %cst = arith.constant dense<0.000000e+00> : vector<8x1024xf32>
    %37 = tpu.matmul %36, %35, %cst {dimension_numbers = #tpu.dot_dimension_numbers<[1], [0], [0], [1], [0, 0, 1, 1], [], []>} : vector<8x72xf32>, vector<72x1024xf32>, vector<8x1024xf32> -> vector<8x1024xf32>
    %c0_6 = arith.constant 0 : index
    %c0_7 = arith.constant 0 : index
    %38 = vector.load %arg4[%c0_6, %c0_7] : memref<8x1xf32, #tpu.memory_space<vmem>>, vector<8x1xf32>
    %39 = vector.broadcast %38 : vector<8x1xf32> to vector<8x1024xf32>
    %40 = arith.addf %37, %39 : vector<8x1024xf32>
    %cst_8 = arith.constant 0.000000e+00 : f32
    %41 = vector.broadcast %cst_8 : f32 to vector<8x1024xf32>
    %42 = arith.maximumf %40, %41 : vector<8x1024xf32>
    %c33_i32_9 = arith.constant 33 : i32
    %43 = tpu.dynamic_rotate %42 by %c33_i32_9 dim 1 : vector<8x1024xf32>, i32 -> vector<8x1024xf32>
    %44 = vector.extract_strided_slice %2 {offsets = [0, 0], sizes = [1, 1024], strides = [1, 1]} : vector<9x1024xf32> to vector<1x1024xf32>
    %45 = vector.broadcast %44 : vector<1x1024xf32> to vector<8x1024xf32>
    %46 = arith.mulf %43, %45 : vector<8x1024xf32>
    %c32_i32_10 = arith.constant 32 : i32
    %47 = tpu.dynamic_rotate %42 by %c32_i32_10 dim 1 : vector<8x1024xf32>, i32 -> vector<8x1024xf32>
    %48 = vector.extract_strided_slice %2 {offsets = [1, 0], sizes = [1, 1024], strides = [1, 1]} : vector<9x1024xf32> to vector<1x1024xf32>
    %49 = vector.broadcast %48 : vector<1x1024xf32> to vector<8x1024xf32>
    %50 = arith.mulf %47, %49 : vector<8x1024xf32>
    %c31_i32_11 = arith.constant 31 : i32
    %51 = tpu.dynamic_rotate %42 by %c31_i32_11 dim 1 : vector<8x1024xf32>, i32 -> vector<8x1024xf32>
    %52 = vector.extract_strided_slice %2 {offsets = [2, 0], sizes = [1, 1024], strides = [1, 1]} : vector<9x1024xf32> to vector<1x1024xf32>
    %53 = vector.broadcast %52 : vector<1x1024xf32> to vector<8x1024xf32>
    %54 = arith.mulf %51, %53 : vector<8x1024xf32>
    %c1_i32_12 = arith.constant 1 : i32
    %55 = tpu.dynamic_rotate %42 by %c1_i32_12 dim 1 : vector<8x1024xf32>, i32 -> vector<8x1024xf32>
    %56 = vector.extract_strided_slice %2 {offsets = [3, 0], sizes = [1, 1024], strides = [1, 1]} : vector<9x1024xf32> to vector<1x1024xf32>
    %57 = vector.broadcast %56 : vector<1x1024xf32> to vector<8x1024xf32>
    %58 = arith.mulf %55, %57 : vector<8x1024xf32>
    %c1023_i32_13 = arith.constant 1023 : i32
    %59 = tpu.dynamic_rotate %42 by %c1023_i32_13 dim 1 : vector<8x1024xf32>, i32 -> vector<8x1024xf32>
    %60 = vector.extract_strided_slice %2 {offsets = [5, 0], sizes = [1, 1024], strides = [1, 1]} : vector<9x1024xf32> to vector<1x1024xf32>
    %61 = vector.broadcast %60 : vector<1x1024xf32> to vector<8x1024xf32>
    %62 = arith.mulf %59, %61 : vector<8x1024xf32>
    %c993_i32_14 = arith.constant 993 : i32
    %63 = tpu.dynamic_rotate %42 by %c993_i32_14 dim 1 : vector<8x1024xf32>, i32 -> vector<8x1024xf32>
    %64 = vector.extract_strided_slice %2 {offsets = [6, 0], sizes = [1, 1024], strides = [1, 1]} : vector<9x1024xf32> to vector<1x1024xf32>
    %65 = vector.broadcast %64 : vector<1x1024xf32> to vector<8x1024xf32>
    %66 = arith.mulf %63, %65 : vector<8x1024xf32>
    %c992_i32_15 = arith.constant 992 : i32
    %67 = tpu.dynamic_rotate %42 by %c992_i32_15 dim 1 : vector<8x1024xf32>, i32 -> vector<8x1024xf32>
    %68 = vector.extract_strided_slice %2 {offsets = [7, 0], sizes = [1, 1024], strides = [1, 1]} : vector<9x1024xf32> to vector<1x1024xf32>
    %69 = vector.broadcast %68 : vector<1x1024xf32> to vector<8x1024xf32>
    %70 = arith.mulf %67, %69 : vector<8x1024xf32>
    %c991_i32_16 = arith.constant 991 : i32
    %71 = tpu.dynamic_rotate %42 by %c991_i32_16 dim 1 : vector<8x1024xf32>, i32 -> vector<8x1024xf32>
    %72 = vector.extract_strided_slice %2 {offsets = [8, 0], sizes = [1, 1024], strides = [1, 1]} : vector<9x1024xf32> to vector<1x1024xf32>
    %73 = vector.broadcast %72 : vector<1x1024xf32> to vector<8x1024xf32>
    %74 = arith.mulf %71, %73 : vector<8x1024xf32>
    %75 = tpu.concatenate %46, %50, %54, %58, %42, %62, %66, %70, %74 in 0 : vector<8x1024xf32>, vector<8x1024xf32>, vector<8x1024xf32>, vector<8x1024xf32>, vector<8x1024xf32>, vector<8x1024xf32>, vector<8x1024xf32>, vector<8x1024xf32>, vector<8x1024xf32> -> vector<72x1024xf32>
    %c0_17 = arith.constant 0 : index
    %c0_18 = arith.constant 0 : index
    %76 = vector.load %arg5[%c0_17, %c0_18] : memref<2x72xf32, #tpu.memory_space<vmem>>, vector<2x72xf32>
    %cst_19 = arith.constant dense<0.000000e+00> : vector<2x1024xf32>
    %77 = tpu.matmul %76, %75, %cst_19 {dimension_numbers = #tpu.dot_dimension_numbers<[1], [0], [0], [1], [0, 0, 1, 1], [], []>} : vector<2x72xf32>, vector<72x1024xf32>, vector<2x1024xf32> -> vector<2x1024xf32>
    %c0_20 = arith.constant 0 : index
    %c0_21 = arith.constant 0 : index
    %78 = vector.load %arg6[%c0_20, %c0_21] : memref<2x1xf32, #tpu.memory_space<vmem>>, vector<2x1xf32>
    %79 = vector.broadcast %78 : vector<2x1xf32> to vector<2x1024xf32>
    %80 = arith.addf %77, %79 : vector<2x1024xf32>
    %cst_22 = arith.constant 0.000000e+00 : f32
    %81 = vector.broadcast %cst_22 : f32 to vector<2x1024xf32>
    %82 = arith.maximumf %80, %81 : vector<2x1024xf32>
    %83 = vector.shape_cast %82 : vector<2x1024xf32> to vector<1x2x1024xf32>
    %c0_23 = arith.constant 0 : index
    %c0_24 = arith.constant 0 : index
    %c0_25 = arith.constant 0 : index
    %84 = vector.load %arg7[%c0_23, %c0_24, %c0_25] : memref<1x2x1024xf32, #tpu.memory_space<vmem>>, vector<1x2x1024xf32>
    tpu.vector_store %arg7[%c0_23, %c0_24, %c0_25], %83 {strides = array<i32>} : memref<1x2x1024xf32, #tpu.memory_space<vmem>>, vector<1x2x1024xf32>,
    return
  }
  func.func @transform_0(%arg0: i32) -> (i32, i32, i32) {
    %c0_i32 = arith.constant 0 : i32
    %c0_i32_0 = arith.constant 0 : i32
    %c0_i32_1 = arith.constant 0 : i32
    return %arg0, %c0_i32, %c0_i32_0 : i32, i32, i32
  }
  func.func @transform_1(%arg0: i32) -> (i32, i32) {
    %c0_i32 = arith.constant 0 : i32
    %c0_i32_0 = arith.constant 0 : i32
    %c0_i32_1 = arith.constant 0 : i32
    return %c0_i32, %c0_i32_0 : i32, i32
  }
  func.func @transform_2(%arg0: i32) -> (i32, i32) {
    %c0_i32 = arith.constant 0 : i32
    %c0_i32_0 = arith.constant 0 : i32
    %c0_i32_1 = arith.constant 0 : i32
    return %c0_i32, %c0_i32_0 : i32, i32
  }
  func.func @transform_3(%arg0: i32) -> (i32, i32) {
    %c0_i32 = arith.constant 0 : i32
    %c0_i32_0 = arith.constant 0 : i32
    %c0_i32_1 = arith.constant 0 : i32
    return %c0_i32, %c0_i32_0 : i32, i32
  }
  func.func @transform_4(%arg0: i32) -> (i32, i32) {
    %c0_i32 = arith.constant 0 : i32
    %c0_i32_0 = arith.constant 0 : i32
    %c0_i32_1 = arith.constant 0 : i32
    return %c0_i32, %c0_i32_0 : i32, i32
  }
  func.func @transform_5(%arg0: i32) -> (i32, i32) {
    %c0_i32 = arith.constant 0 : i32
    %c0_i32_0 = arith.constant 0 : i32
    %c0_i32_1 = arith.constant 0 : i32
    return %c0_i32, %c0_i32_0 : i32, i32
  }
  func.func @transform_6(%arg0: i32) -> (i32, i32, i32) {
    %c0_i32 = arith.constant 0 : i32
    %c0_i32_0 = arith.constant 0 : i32
    %c0_i32_1 = arith.constant 0 : i32
    return %arg0, %c0_i32, %c0_i32_0 : i32, i32, i32
  }
}

</mosaic_0001>

<bundles_post_ra>
// kernel: decoder_forward.3
= control target key start
LH: loop header
LB: loop body
LE: loop exit
PB: predicated region body
PF: predicated region fallthrough
CT: control target
= control target key end

     0   :  { %s868_s21 = smov 0   ;;  %s1081_s0 = inlined_call_operand.vmem [shape: f32[2,32,128], index: 0, kind: input, shape index: {}]   ;;  %s1082_s1 = inlined_call_operand.vmem [shape: f32[9,128], index: 1, kind: input, shape index: {}]   ;;  %s1083_s2 = inlined_call_operand.vmem [shape: f32[8,288], index: 2, kind: input, shape index: {}]   ;;  %s1084_s3 = inlined_call_operand.vmem [shape: f32[8,1], index: 3, kind: input, shape index: {}]   ;;  %s1085_s4 = inlined_call_operand.vmem [shape: f32[8,72], index: 4, kind: input, shape index: {}]   ;;  %s1086_s5 = inlined_call_operand.vmem [shape: f32[8,1], index: 5, kind: input, shape index: {}]   ;;  %s1087_s6 = inlined_call_operand.vmem [shape: f32[2,8,128], index: 6, kind: output, shape index: {}]  }
   0x1 LB: > { %s698_s22 = sadd.s32 4294967295, %s820_s21   ;;  %p702_p0 = scmp.ge.s32.totalorder %s820_s21, 1  ;;  %s820_s21 = sphi %s868_s21, %s16_s21  }
   0x2   : > { %p212_p1 = scmp.lt.s32.totalorder %s820_s21, 3 }
   0x4   : > { %p213_p2 = pnand %p702_p0, %p212_p1 }
   0x5   : > { %p241_p3 = scmp.lt.s32.totalorder (!%p213_p2), %s698_s22, 1  ;;  %s822_s27 = smov (!%p213_p2), 120  }
   0x6   : > { %216 = sbr.rel (%p213_p2) target bundleno = 726 (0x2d6), region = 44  ;;  %s823_s28 = smov (!%p213_p2), 1  }
   0x7   : > { %s824_s29 = smov (!%p213_p2), 121   ;;  %s825_s30 = smov (!%p213_p2), 7  }
   0x8   : > { %s826_s7 = smov (!%p213_p2), 127   ;;  %s827_s8 = smov (!%p213_p2), 8  }
   0x9   : > { %s829_s11 = smov (!%p213_p2), 9   ;;  %s832_s12 = smov (!%p213_p2), 119  }
   0xb   : > { %s1089_s22 = smov (!%p241_p3, %s698_s22), 1  ;;  %v385_v4 = vld [vmem:[%s1083_s2 + $0x8] sm:$0xff]  ;;  %v828_v5 = vmov 0.0   ;;  %vm830_vm0 = vmmov 0   ;;  %v831_v6 = vmov 0   ;;  %v387_v7 = vld [vmem:[%s1084_s3] sm:$0xff]  ;;  %v264_v8 = vlaneseq }
   0xc   : > { %s711_s23 = sshll.u32 %s1089_s22, 5  ;;  %461 = vmatprep.mubr.f32.mxu0 %v385_v4  ;;  %762 = vmatprep.subr.mxu1 %v828_v5  ;;  %v969_v11 = vld [vmem:[%s1082_s1] sm:$0xff]  ;;  %vm393_vm1 = vcmask 261120   ;;  %vm569_vm2 = vcmask 588800  }
   0xd   : > { %s245_s26 = scalar_lea.vmem %s1081_s0, %s711_s23  ;;  %770 = vmatprep.mubr.msk.f32.mxu1 %vm830_vm0, %v828_v5  ;;  %813 = vset.pattern.permute.xlu0 %v831_v6  ;;  %v963_v9 = vshrl.u32 %v264_v8, 7 }
   0xe   : > { %v882_v0 = vld [vmem:[%s245_s26 + $0x18] sm:$0xff]  ;;  %v884_v1 = vld [vmem:[%s245_s26 + $0x10] sm:$0xff]  ;;  %v894_v2 = vld [vmem:[%s245_s26 + $0x8] sm:$0xff] }
   0xf   : > { %358 = vrot.lane.b32.xlu0 %v882_v0, %s822_s27  ;;  %356 = vrot.lane.b32.xlu1 %v884_v1, %s822_s27  ;;  %v900_v3 = vld [vmem:[%s245_s26] sm:$0xff]  ;;  %v362_v10 = vsub.s32 7, %v963_v9  ;;  %v314_v13 = vsub.s32 3, %v963_v9  ;;  %v346_v27 = vsub.s32 6, %v963_v9  ;;  %v298_v28 = vsub.s32 2, %v963_v9 }
  0x10   : > { %v330_v47 = vsub.s32 5, %v963_v9  ;;  %v282_v48 = vsub.s32 1, %v963_v9  ;;  %v266_v8 = vsub.s32 0, %v963_v9 }
  0x11   : > { %v972_v12 = vrot.slane %v969_v11, %v362_v10  ;;  %v977_v17 = vrot.slane %v969_v11, %v314_v13  ;;  %v989_v33 = vrot.slane %v969_v11, %v346_v27  ;;  %v992_v34 = vrot.slane %v969_v11, %v298_v28 }
  0x12   : > { %v1005_v53 = vrot.slane %v969_v11, %v330_v47  ;;  %v1008_v54 = vrot.slane %v969_v11, %v282_v48 }
  0x13   : > { %310 = vrot.lane.b32.xlu0 %v882_v0, %s823_s28  ;;  %308 = vrot.lane.b32.xlu1 %v884_v1, %s823_s28 }
  0x17   : > { %354 = vrot.lane.b32.xlu0 %v894_v2, %s822_s27  ;;  %306 = vrot.lane.b32.xlu1 %v894_v2, %s823_s28 }
  0x1b   : > { %352 = vrot.lane.b32.xlu0 %v900_v3, %s822_s27  ;;  %304 = vrot.lane.b32.xlu1 %v900_v3, %s823_s28 }
  0x1f   : > { %342 = vrot.lane.b32.xlu0 %v882_v0, %s824_s29  ;;  %294 = vrot.lane.b32.xlu1 %v882_v0, %s825_s30 }
  0x23   : > { %340 = vrot.lane.b32.xlu0 %v884_v1, %s824_s29  ;;  %292 = vrot.lane.b32.xlu1 %v884_v1, %s825_s30 }
  0x27   : > { %338 = vrot.lane.b32.xlu0 %v894_v2, %s824_s29  ;;  %290 = vrot.lane.b32.xlu1 %v894_v2, %s825_s30 }
  0x2b   : > { %336 = vrot.lane.b32.xlu0 %v900_v3, %s824_s29  ;;  %288 = vrot.lane.b32.xlu1 %v900_v3, %s825_s30 }
  0x2f   : > { %326 = vrot.lane.b32.xlu0 %v882_v0, %s826_s7  ;;  %278 = vrot.lane.b32.xlu1 %v882_v0, %s827_s8 }
  0x33   : > { %324 = vrot.lane.b32.xlu0 %v884_v1, %s826_s7  ;;  %276 = vrot.lane.b32.xlu1 %v884_v1, %s827_s8 }
  0x37   : > { %322 = vrot.lane.b32.xlu0 %v894_v2, %s826_s7  ;;  %274 = vrot.lane.b32.xlu1 %v894_v2, %s827_s8 }
  0x3b   : > { %320 = vrot.lane.b32.xlu0 %v900_v3, %s826_s7  ;;  %272 = vrot.lane.b32.xlu1 %v900_v3, %s827_s8 }
  0x3f   : > { %262 = vrot.lane.b32.xlu0 %v882_v0, %s829_s11  ;;  %260 = vrot.lane.b32.xlu1 %v884_v1, %s829_s11 }
  0x43   : > { %258 = vrot.lane.b32.xlu0 %v894_v2, %s829_s11  ;;  %256 = vrot.lane.b32.xlu1 %v900_v3, %s829_s11 }
  0x47   : > { %374 = vrot.lane.b32.xlu0 %v882_v0, %s832_s12  ;;  %372 = vrot.lane.b32.xlu1 %v884_v1, %s832_s12 }
  0x4b   : > { %370 = vrot.lane.b32.xlu0 %v894_v2, %s832_s12  ;;  %368 = vrot.lane.b32.xlu1 %v900_v3, %s832_s12 }
  0x4f   : > { %390 = vperm.xlu0 %813, %v387_v7  }
  0x81   : > { %v359_v14 = vpop.permute.xlu0 %358  ;;  %v357_v15 = vpop.permute.xlu1 %356 }
  0x82   : > { %v367_v16 = vmul.f32 %v972_v12, %v359_v14  ;;  %v366_v22 = vmul.f32 %v972_v12, %v357_v15 }
  0x84   : > { %712 = vmatprep.subr.mxu0 %v367_v16  ;;  %v1020_v16 = vrot.slane %v969_v11, %v266_v8 }
  0x85   : > { %v311_v18 = vpop.permute.xlu0 %310  ;;  %v309_v19 = vpop.permute.xlu1 %308 }
  0x86   : > { %v319_v20 = vmul.f32 %v977_v17, %v311_v18  ;;  %v318_v21 = vmul.f32 %v977_v17, %v309_v19 }
  0x88   : > { %713 = vmatpush3.msra.mxu0 %v319_v20 }
  0x89   : > { %714 = vmatprep.subr.mxu0 %v366_v22  ;;  %v355_v23 = vpop.permute.xlu0 %354  ;;  %v307_v24 = vpop.permute.xlu1 %306 }
  0x8a   : > { %v365_v25 = vmul.f32 %v972_v12, %v355_v23  ;;  %715 = vmatpush3.msra.mxu0 %v318_v21  ;;  %v317_v26 = vmul.f32 %v977_v17, %v307_v24  ;;  %v706_v24 = vld [vmem:[%s1082_s1 + $0x8] ss:$0 sm:$0xff] }
  0x8c   : > { %716 = vmatprep.subr.mxu0 %v365_v25 }
  0x8d   : > { %v353_v29 = vpop.permute.xlu0 %352  ;;  %717 = vmatpush3.msra.mxu0 %v317_v26  ;;  %v305_v30 = vpop.permute.xlu1 %304 }
  0x8e   : > { %v364_v31 = vmul.f32 %v972_v12, %v353_v29  ;;  %v316_v32 = vmul.f32 %v977_v17, %v305_v30 }
  0x90   : > { %718 = vmatprep.subr.mxu0 %v364_v31 }
  0x91   : > { %v343_v35 = vpop.permute.xlu0 %342  ;;  %719 = vmatpush3.msra.mxu0 %v316_v32  ;;  %v295_v36 = vpop.permute.xlu1 %294 }
  0x92   : > { %v351_v37 = vmul.f32 %v989_v33, %v343_v35  ;;  %v303_v38 = vmul.f32 %v992_v34, %v295_v36 }
  0x94   : > { %720 = vmatprep.subr.mxu0 %v351_v37 }
  0x95   : > { %v341_v39 = vpop.permute.xlu0 %340  ;;  %721 = vmatpush3.msra.mxu0 %v303_v38  ;;  %v293_v40 = vpop.permute.xlu1 %292 }
  0x96   : > { %v350_v41 = vmul.f32 %v989_v33, %v341_v39  ;;  %v302_v42 = vmul.f32 %v992_v34, %v293_v40 }
  0x98   : > { %722 = vmatprep.subr.mxu0 %v350_v41 }
  0x99   : > { %v339_v43 = vpop.permute.xlu0 %338  ;;  %723 = vmatpush3.msra.mxu0 %v302_v42  ;;  %v291_v44 = vpop.permute.xlu1 %290  ;;  %v563_v42 = vld [vmem:[%s1086_s5] sm:$0xff] }
  0x9a   : > { %v349_v45 = vmul.f32 %v989_v33, %v339_v43  ;;  %v301_v46 = vmul.f32 %v992_v34, %v291_v44 }
  0x9c   : > { %724 = vmatprep.subr.mxu0 %v349_v45 }
  0x9d   : > { %v337_v49 = vpop.permute.xlu0 %336  ;;  %725 = vmatpush3.msra.mxu0 %v301_v46  ;;  %v289_v50 = vpop.permute.xlu1 %288 }
  0x9e   : > { %v348_v51 = vmul.f32 %v989_v33, %v337_v49  ;;  %v300_v52 = vmul.f32 %v992_v34, %v289_v50 }
  0xa0   : > { %726 = vmatprep.subr.mxu0 %v348_v51 }
  0xa1   : > { %v327_v55 = vpop.permute.xlu0 %326  ;;  %727 = vmatpush3.msra.mxu0 %v300_v52  ;;  %v279_v56 = vpop.permute.xlu1 %278 }
  0xa2   : > { %v335_v57 = vmul.f32 %v1005_v53, %v327_v55  ;;  %v287_v58 = vmul.f32 %v1008_v54, %v279_v56 }
  0xa4   : > { %728 = vmatprep.subr.mxu0 %v335_v57 }
  0xa5   : > { %v325_v59 = vpop.permute.xlu0 %324  ;;  %729 = vmatpush3.msra.mxu0 %v287_v58  ;;  %v277_v60 = vpop.permute.xlu1 %276 }
  0xa6   : > { %v334_v61 = vmul.f32 %v1005_v53, %v325_v59  ;;  %v286_v62 = vmul.f32 %v1008_v54, %v277_v60 }
  0xa8   : > { %730 = vmatprep.subr.mxu0 %v334_v61 }
  0xa9   : > { %v323_v63 = vpop.permute.xlu0 %322  ;;  %731 = vmatpush3.msra.mxu0 %v286_v62  ;;  %v275_v4 = vpop.permute.xlu1 %274 }
  0xaa   : > { %v333_v6 = vmul.f32 %v1005_v53, %v323_v63  ;;  %v285_v7 = vmul.f32 %v1008_v54, %v275_v4 }
  0xac   : > { %732 = vmatprep.subr.mxu0 %v333_v6 }
  0xad   : > { %v321_v10 = vpop.permute.xlu0 %320  ;;  %733 = vmatpush3.msra.mxu0 %v285_v7  ;;  %v273_v13 = vpop.permute.xlu1 %272 }
  0xae   : > { %v332_v14 = vmul.f32 %v1005_v53, %v321_v10  ;;  %v284_v15 = vmul.f32 %v1008_v54, %v273_v13 }
  0xb0   : > { %734 = vmatprep.subr.mxu0 %v332_v14 }
  0xb1   : > { %v263_v18 = vpop.permute.xlu0 %262  ;;  %735 = vmatpush3.msra.mxu0 %v284_v15  ;;  %v261_v19 = vpop.permute.xlu1 %260 }
  0xb2   : > { %v271_v20 = vmul.f32 %v1020_v16, %v263_v18  ;;  %v270_v21 = vmul.f32 %v1020_v16, %v261_v19  ;;  %736 = vmatprep.subr.mxu0 %v882_v0  ;;  %v384_v0 = vld [vmem:[%s1083_s2] sm:$0xff] }
  0xb4   : > { %737 = vmatpush3.msra.mxu0 %v271_v20 }
  0xb5   : > { %738 = vmatprep.subr.mxu0 %v884_v1  ;;  %v259_v9 = vpop.permute.xlu0 %258  ;;  %v257_v22 = vpop.permute.xlu1 %256 }
  0xb6   : > { %v269_v23 = vmul.f32 %v1020_v16, %v259_v9  ;;  %739 = vmatpush3.msra.mxu0 %v270_v21  ;;  %v268_v11 = vmul.f32 %v1020_v16, %v257_v22 }
  0xb7   : > { %740 = vmatprep.subr.mxu0 %v894_v2 }
  0xb8   : > { %741 = vmatpush3.msra.mxu0 %v269_v23 }
  0xb9   : > { %742 = vmatprep.subr.mxu0 %v900_v3  ;;  %v375_v1 = vpop.permute.xlu0 %374  ;;  %v373_v25 = vpop.permute.xlu1 %372  ;;  %v386_v3 = vld [vmem:[%s1083_s2 + $0x10] sm:$0xff] }
  0xba   : > { %v383_v26 = vmul.f32 %v706_v24, %v375_v1  ;;  %743 = vmatpush3.msra.mxu0 %v268_v11  ;;  %v382_v27 = vmul.f32 %v706_v24, %v373_v25 }
  0xbb   : > { %462 = vmatmul.mubr.f32.vlgmr.msra.gmra.mxu0 %v384_v0 }
  0xbc   : > { %763 = vmatpush3.msra.mxu1 %v383_v26 }
  0xbd   : > { %764 = vmatprep.subr.mxu1 %v828_v5  ;;  %v371_v2 = vpop.permute.xlu0 %370  ;;  %v369_v28 = vpop.permute.xlu1 %368 }
  0xbe   : > { %v381_v29 = vmul.f32 %v706_v24, %v371_v2  ;;  %765 = vmatpush3.msra.mxu1 %v382_v27  ;;  %v380_v30 = vmul.f32 %v706_v24, %v369_v28 }
  0xbf   : > { %766 = vmatprep.subr.mxu1 %v828_v5 }
  0xc0   : > { %767 = vmatpush3.msra.mxu1 %v381_v29 }
  0xc1   : > { %768 = vmatprep.subr.mxu1 %v828_v5 }
  0xc2   : > { %769 = vmatpush3.msra.mxu1 %v380_v30 }
  0xc3   : > { %771 = vmatmul.mubr.msk.f32.vlgmr.msra.gmra.mxu1 %vm393_vm1, %v386_v3  ;;  %773 = vmatprep.subr.mxu1 %v828_v5 }
  0xc4   : > { %791 = vmatprep.mubr.msk.f32.mxu1 %vm830_vm0, %v828_v5 }
  0xca   : > { %v391_v36 = vpop.permute.xlu0 %390 }
 0x17b   : > { %v744_v31 = vpop.f32.mrf.mxu0 }
 0x17d   : > { %v745_v32 = vpop.f32.mrf.mxu0 }
 0x17e   : > { %v746_v35 = vadd.f32 %v745_v32, %v744_v31 }
 0x180   : > { %v464_v37 = vadd.f32 %v746_v35, %v391_v36 }
 0x183   : > { %v533_v38 = vpop.f32.mrf.mxu1 }
 0x184   : > { %v534_v39 = vadd.f32 %v533_v38, %v464_v37 }
 0x185   : > { %v772_v40 = vpop.f32.mrf.mxu1 }
 0x186   : > { %v537_v41 = vmax.f32 %v534_v39, 0.0 }
 0x188   : > { %553 = vrot.lane.b32.xlu0 %v537_v41, %s824_s29  ;;  %559 = vrot.lane.b32.xlu1 %v537_v41, %s832_s12  ;;  %s705_s29 = sshll.u32 %s1089_s22, 3 }
 0x18c   : > { %547 = vrot.lane.b32.xlu0 %v537_v41, %s823_s28  ;;  %556 = vrot.lane.b32.xlu1 %v537_v41, %s822_s27 }
 0x190   : > { %541 = vrot.lane.b32.xlu0 %v537_v41, %s827_s8  ;;  %550 = vrot.lane.b32.xlu1 %v537_v41, %s826_s7  ;;  %s249_s8 = scalar_lea.vmem %s1087_s6, %s705_s29 }
 0x194   : > { %566 = vperm.xlu0 %813, %v563_v42   ;;  %544 = vrot.lane.b32.xlu1 %v537_v41, %s825_s30 }
 0x198   : > { %538 = vrot.lane.b32.xlu1 %v537_v41, %s829_s11 }
 0x1fa   : > { %v560_v43 = vpop.permute.xlu1 %559  ;;  %v554_v45 = vpop.permute.xlu0 %553 }
 0x1fb   : > { %v561_v44 = vmul.f32 %v706_v24, %v560_v43  ;;  %v555_v48 = vmul.f32 %v554_v45, %v989_v33 }
 0x1fd   : > { %774 = vmatpush3.msra.mxu1 %v561_v44 }
 0x1fe   : > { %v557_v46 = vpop.permute.xlu1 %556  ;;  %775 = vmatprep.subr.mxu1 %v828_v5  ;;  %v548_v49 = vpop.permute.xlu0 %547 }
 0x1ff   : > { %v558_v47 = vmul.f32 %v557_v46, %v972_v12  ;;  %v549_v55 = vmul.f32 %v548_v49, %v977_v17  ;;  %v562_v17 = vld [vmem:[%s1085_s4] sm:$0xff] }
 0x201   : > { %776 = vmatpush3.msra.mxu1 %v558_v47 }
 0x202   : > { %777 = vmatprep.subr.mxu1 %v828_v5  ;;  %v551_v50 = vpop.permute.xlu1 %550  ;;  %v542_v12 = vpop.permute.xlu0 %541 }
 0x203   : > { %v552_v51 = vmul.f32 %v551_v50, %v1005_v53  ;;  %778 = vmatpush3.msra.mxu1 %v555_v48  ;;  %v543_v56 = vmul.f32 %v542_v12, %v1008_v54 }
 0x204   : > { %779 = vmatprep.subr.mxu1 %v828_v5 }
 0x205   : > { %780 = vmatpush3.msra.mxu1 %v552_v51 }
 0x206   : > { %781 = vmatprep.subr.mxu1 %v828_v5  ;;  %v545_v52 = vpop.permute.xlu1 %544 }
 0x207   : > { %782 = vmatpush3.msra.mxu1 %v537_v41  ;;  %v546_v33 = vmul.f32 %v545_v52, %v992_v34 }
 0x208   : > { %783 = vmatprep.subr.mxu1 %v828_v5 }
 0x209   : > { %784 = vmatpush3.msra.mxu1 %v549_v55 }
 0x20a   : > { %785 = vmatprep.subr.mxu1 %v828_v5  ;;  %v539_v53 = vpop.permute.xlu1 %538 }
 0x20b   : > { %786 = vmatpush3.msra.mxu1 %v546_v33  ;;  %v540_v57 = vmul.f32 %v539_v53, %v1020_v16 }
 0x20c   : > { %787 = vmatprep.subr.mxu1 %v828_v5 }
 0x20d   : > { %788 = vmatpush3.msra.mxu1 %v543_v56 }
 0x20e   : > { %789 = vmatprep.subr.mxu1 %v828_v5 }
 0x20f   : > { %790 = vmatpush3.msra.mxu1 %v540_v57  ;;  %v567_v34 = vpop.permute.xlu0 %566 }
 0x210   : > { %792 = vmatmul.mubr.msk.f32.vlgmr.msra.gmra.mxu1 %vm569_vm2, %v562_v17 }
 0x2d0   : > { %v639_v58 = vpop.f32.mrf.mxu1 }
 0x2d1   : > { %v640_v59 = vadd.f32 %v639_v58, %v567_v34 }
 0x2d2   : > { %v793_v54 = vpop.f32.mrf.mxu1 }
 0x2d3   : > { %v643_v60 = vmax.f32 %v640_v59, 0.0 }
 0x2d5   : > { %644 = vst [vmem:[%s249_s8] sm:$0xff] %v643_v60 }
 0x2d6 PF: > { %s16_s21 = sadd.s32 1, %s820_s21  }
 0x2d7   : > { %p13_p4 = scmp.ge.s32.totalorder %s16_s21, 4  }
 0x2d9   :  { %15 = sbr.rel (!%p13_p4) target bundleno = 1 (0x1), region = 74 }

// kernel: decoder_forward.4
= control target key start
LH: loop header
LB: loop body
LE: loop exit
PB: predicated region body
PF: predicated region fallthrough
CT: control target
= control target key end

     0   :  { %s844_s21 = smov 0   ;;  %s1187_s0 = inlined_call_operand.vmem [shape: f32[2,16,256], index: 0, kind: input, shape index: {}]   ;;  %s1188_s1 = inlined_call_operand.vmem [shape: f32[9,256], index: 1, kind: input, shape index: {}]   ;;  %s1189_s2 = inlined_call_operand.vmem [shape: f32[8,144], index: 2, kind: input, shape index: {}]   ;;  %s1190_s3 = inlined_call_operand.vmem [shape: f32[8,1], index: 3, kind: input, shape index: {}]   ;;  %s1191_s4 = inlined_call_operand.vmem [shape: f32[4,72], index: 4, kind: input, shape index: {}]   ;;  %s1192_s5 = inlined_call_operand.vmem [shape: f32[4,1], index: 5, kind: input, shape index: {}]   ;;  %s1193_s6 = inlined_call_operand.vmem [shape: f32[2,4,256], index: 6, kind: output, shape index: {}]  }
   0x1 LB: > { %s755_s22 = sadd.s32 4294967295, %s797_s21   ;;  %p759_p0 = scmp.ge.s32.totalorder %s797_s21, 1  ;;  %s797_s21 = sphi %s844_s21, %s16_s21  }
   0x2   : > { %p212_p1 = scmp.lt.s32.totalorder %s797_s21, 3 }
   0x4   : > { %p213_p2 = pnand %p759_p0, %p212_p1 }
   0x5   : > { %p242_p3 = scmp.lt.s32.totalorder (!%p213_p2), %s755_s22, 1  ;;  %s799_s27 = smov (!%p213_p2), 112  }
   0x6   : > { %216 = sbr.rel (%p213_p2) target bundleno = 746 (0x2ea), region = 44  ;;  %s800_s28 = smov (!%p213_p2), 113  }
   0x7   : > { %s801_s29 = smov (!%p213_p2), 127   ;;  %s802_s30 = smov (!%p213_p2), 1  }
   0x8   : > { %s803_s7 = smov (!%p213_p2), 15   ;;  %s804_s8 = smov (!%p213_p2), 16  }
   0x9   : > { %s805_s9 = smov (!%p213_p2), 17   ;;  %s807_s12 = smov (!%p213_p2), 111  }
   0xb   : > { %s1195_s22 = smov (!%p242_p3, %s755_s22), 1  ;;  %v463_v4 = vld [vmem:[%s1189_s2 + $0x8] sm:$0xff]  ;;  %vm470_vm0 = vcmask 130048   ;;  %v806_v5 = vmov 0   ;;  %v464_v6 = vld [vmem:[%s1190_s3] sm:$0xff]  ;;  %v268_v7 = vlaneseq  ;;  %vm618_vm9 = vcmask 588800  }
   0xc   : > { %s770_s23 = sshll.u32 %s1195_s22, 5  ;;  %766 = vmatprep.mubr.msk.f32.mxu0 %vm470_vm0, %v463_v4  ;;  %790 = vset.pattern.permute.xlu0 %v806_v5  ;;  %v944_v11 = vld [vmem:[%s1188_s1] sm:$0xff]  ;;  %v949_v12 = vld [vmem:[%s1188_s1 + $0x8] sm:$0xff] }
   0xd   : > { %s246_s26 = scalar_lea.vmem %s1187_s0, %s770_s23  ;;  %v936_v8 = vshrl.u32 %v268_v7, 7  ;;  %v938_v9 = vand.u32 127, %v268_v7 }
   0xe   : > { %v858_v0 = vld [vmem:[%s246_s26 + $0x10] sm:$0xff]  ;;  %v860_v1 = vld [vmem:[%s246_s26] sm:$0xff]  ;;  %v866_v2 = vld [vmem:[%s246_s26 + $0x18] sm:$0xff] }
   0xf   : > { %414 = vrot.lane.b32.xlu0 %v858_v0, %s799_s27  ;;  %412 = vrot.lane.b32.xlu1 %v860_v1, %s799_s27  ;;  %v868_v3 = vld [vmem:[%s246_s26 + $0x8] sm:$0xff]  ;;  %v427_v10 = vsub.s32 7, %v936_v8  ;;  %v402_v15 = vsub.s32 6, %v936_v8  ;;  %vm420_vm1 = vcmp.lt.s32.totalorder %v938_v9, 112  ;;  %vm395_vm2 = vcmp.lt.s32.totalorder %v938_v9, 113 }
  0x10   : > { %v377_v36 = vsub.s32 5, %v936_v8  ;;  %vm370_vm3 = vcmp.lt.s32.totalorder %v938_v9, 127  ;;  %v352_v53 = vsub.s32 3, %v936_v8  ;;  %vm345_vm4 = vcmp.lt.s32.totalorder %v938_v9, 1 }
  0x11   : > { %v954_v16 = vrot.slane %v944_v11, %v427_v10  ;;  %v957_v17 = vrot.slane %v949_v12, %v427_v10  ;;  %v967_v23 = vrot.slane %v944_v11, %v402_v15  ;;  %v973_v26 = vrot.slane %v949_v12, %v402_v15 }
  0x12   : > { %v993_v43 = vrot.slane %v944_v11, %v377_v36  ;;  %v996_v44 = vrot.slane %v949_v12, %v377_v36  ;;  %v1013_v59 = vrot.slane %v949_v12, %v352_v53  ;;  %v1016_v61 = vrot.slane %v944_v11, %v352_v53 }
  0x13   : > { %418 = vrot.lane.b32.xlu0 %v866_v2, %s799_s27  ;;  %416 = vrot.lane.b32.xlu1 %v868_v3, %s799_s27  ;;  %v327_v4 = vsub.s32 2, %v936_v8  ;;  %vm320_vm5 = vcmp.lt.s32.totalorder %v938_v9, 15  ;;  %vm295_vm6 = vcmp.lt.s32.totalorder %v938_v9, 16  ;;  %vm270_vm7 = vcmp.lt.s32.totalorder %v938_v9, 17 }
  0x14   : > { %vm445_vm8 = vcmp.lt.s32.totalorder %v938_v9, 111 }
  0x15   : > { %v1040_v15 = vrot.slane %v949_v12, %v327_v4 }
  0x17   : > { %389 = vrot.lane.b32.xlu0 %v858_v0, %s800_s28  ;;  %393 = vrot.lane.b32.xlu1 %v866_v2, %s800_s28 }
  0x1b   : > { %387 = vrot.lane.b32.xlu0 %v860_v1, %s800_s28  ;;  %391 = vrot.lane.b32.xlu1 %v868_v3, %s800_s28 }
  0x1f   : > { %364 = vrot.lane.b32.xlu0 %v858_v0, %s801_s29  ;;  %368 = vrot.lane.b32.xlu1 %v866_v2, %s801_s29 }
  0x23   : > { %362 = vrot.lane.b32.xlu0 %v860_v1, %s801_s29  ;;  %366 = vrot.lane.b32.xlu1 %v868_v3, %s801_s29 }
  0x27   : > { %339 = vrot.lane.b32.xlu0 %v858_v0, %s802_s30  ;;  %343 = vrot.lane.b32.xlu1 %v866_v2, %s802_s30 }
  0x2b   : > { %337 = vrot.lane.b32.xlu0 %v860_v1, %s802_s30  ;;  %341 = vrot.lane.b32.xlu1 %v868_v3, %s802_s30 }
  0x2f   : > { %314 = vrot.lane.b32.xlu0 %v858_v0, %s803_s7  ;;  %318 = vrot.lane.b32.xlu1 %v866_v2, %s803_s7 }
  0x33   : > { %312 = vrot.lane.b32.xlu0 %v860_v1, %s803_s7  ;;  %316 = vrot.lane.b32.xlu1 %v868_v3, %s803_s7 }
  0x37   : > { %289 = vrot.lane.b32.xlu0 %v858_v0, %s804_s8  ;;  %293 = vrot.lane.b32.xlu1 %v866_v2, %s804_s8 }
  0x3b   : > { %287 = vrot.lane.b32.xlu0 %v860_v1, %s804_s8  ;;  %291 = vrot.lane.b32.xlu1 %v868_v3, %s804_s8 }
  0x3f   : > { %262 = vrot.lane.b32.xlu0 %v858_v0, %s805_s9  ;;  %266 = vrot.lane.b32.xlu1 %v866_v2, %s805_s9 }
  0x43   : > { %260 = vrot.lane.b32.xlu0 %v860_v1, %s805_s9  ;;  %264 = vrot.lane.b32.xlu1 %v868_v3, %s805_s9 }
  0x47   : > { %439 = vrot.lane.b32.xlu0 %v858_v0, %s807_s12  ;;  %443 = vrot.lane.b32.xlu1 %v866_v2, %s807_s12 }
  0x4b   : > { %437 = vrot.lane.b32.xlu0 %v860_v1, %s807_s12  ;;  %441 = vrot.lane.b32.xlu1 %v868_v3, %s807_s12 }
  0x4f   : > { %467 = vperm.xlu0 %790, %v464_v6  }
  0x81   : > { %v415_v13 = vpop.permute.xlu0 %414  ;;  %v413_v14 = vpop.permute.xlu1 %412 }
  0x85   : > { %v419_v18 = vpop.permute.xlu0 %418  ;;  %v417_v19 = vpop.permute.xlu1 %416 }
  0x86   : > { %v422_v20 = vsel %vm420_vm1, %v415_v13, %v419_v18  ;;  %v423_v21 = vsel %vm420_vm1, %v417_v19, %v413_v14  ;;  %v424_v22 = vsel %vm420_vm1, %v419_v18, %v415_v13  ;;  %v421_v24 = vsel %vm420_vm1, %v413_v14, %v417_v19 }
  0x87   : > { %v436_v25 = vmul.f32 %v957_v17, %v424_v22  ;;  %v435_v27 = vmul.f32 %v954_v16, %v422_v20  ;;  %v434_v28 = vmul.f32 %v957_v17, %v423_v21  ;;  %v433_v31 = vmul.f32 %v954_v16, %v421_v24 }
  0x88   : > { %v302_v24 = vsub.s32 1, %v936_v8 }
  0x89   : > { %474 = vmatprep.subr.mxu0 %v436_v25  ;;  %v390_v29 = vpop.permute.xlu0 %389  ;;  %v394_v30 = vpop.permute.xlu1 %393 }
  0x8a   : > { %v397_v32 = vsel %vm395_vm2, %v390_v29, %v394_v30  ;;  %v399_v33 = vsel %vm395_vm2, %v394_v30, %v390_v29  ;;  %475 = vmatpush1.msra.mxu0 %v435_v27 }
  0x8b   : > { %v410_v34 = vmul.f32 %v967_v23, %v397_v32  ;;  %v411_v35 = vmul.f32 %v973_v26, %v399_v33  ;;  %476 = vmatprep.subr.mxu0 %v434_v28  ;;  %v1057_v32 = vrot.slane %v944_v11, %v302_v24  ;;  %v1060_v33 = vrot.slane %v949_v12, %v302_v24 }
  0x8c   : > { %477 = vmatpush1.msra.mxu0 %v433_v31 }
  0x8d   : > { %v388_v37 = vpop.permute.xlu0 %387  ;;  %478 = vmatprep.subr.mxu0 %v411_v35  ;;  %v392_v38 = vpop.permute.xlu1 %391 }
  0x8e   : > { %v396_v39 = vsel %vm395_vm2, %v388_v37, %v392_v38  ;;  %v398_v40 = vsel %vm395_vm2, %v392_v38, %v388_v37  ;;  %479 = vmatpush1.msra.mxu0 %v410_v34 }
  0x8f   : > { %v408_v41 = vmul.f32 %v967_v23, %v396_v39  ;;  %v409_v42 = vmul.f32 %v973_v26, %v398_v40  ;;  %v277_v40 = vsub.s32 0, %v936_v8 }
  0x91   : > { %v365_v45 = vpop.permute.xlu0 %364  ;;  %480 = vmatprep.subr.mxu0 %v409_v42  ;;  %v369_v46 = vpop.permute.xlu1 %368  ;;  %v1080_v8 = vrot.slane %v949_v12, %v277_v40 }
  0x92   : > { %v372_v47 = vsel %vm370_vm3, %v365_v45, %v369_v46  ;;  %v374_v48 = vsel %vm370_vm3, %v369_v46, %v365_v45  ;;  %481 = vmatpush1.msra.mxu0 %v408_v41 }
  0x93   : > { %v385_v49 = vmul.f32 %v993_v43, %v372_v47  ;;  %v386_v50 = vmul.f32 %v996_v44, %v374_v48 }
  0x95   : > { %v363_v51 = vpop.permute.xlu0 %362  ;;  %482 = vmatprep.subr.mxu0 %v386_v50  ;;  %v367_v52 = vpop.permute.xlu1 %366 }
  0x96   : > { %v371_v54 = vsel %vm370_vm3, %v363_v51, %v367_v52  ;;  %v373_v55 = vsel %vm370_vm3, %v367_v52, %v363_v51  ;;  %483 = vmatpush1.msra.mxu0 %v385_v49  ;;  %v1077_v49 = vrot.slane %v944_v11, %v277_v40 }
  0x97   : > { %v383_v56 = vmul.f32 %v993_v43, %v371_v54  ;;  %v384_v57 = vmul.f32 %v996_v44, %v373_v55 }
  0x99   : > { %v340_v58 = vpop.permute.xlu0 %339  ;;  %484 = vmatprep.subr.mxu0 %v384_v57  ;;  %v344_v60 = vpop.permute.xlu1 %343 }
  0x9a   : > { %v347_v62 = vsel %vm345_vm4, %v340_v58, %v344_v60  ;;  %485 = vmatpush1.msra.mxu0 %v383_v56  ;;  %v349_v63 = vsel %vm345_vm4, %v344_v60, %v340_v58 }
  0x9b   : > { %486 = vmatprep.subr.mxu0 %v866_v2  ;;  %v361_v5 = vmul.f32 %v1013_v59, %v347_v62  ;;  %v360_v10 = vmul.f32 %v1016_v61, %v349_v63  ;;  %v764_v62 = vld [vmem:[%s1188_s1 + $0x10] ss:$0 sm:$0xff]  ;;  %v765_v63 = vld [vmem:[%s1188_s1 + $0x18] ss:$0 sm:$0xff] }
  0x9c   : > { %487 = vmatpush1.msra.mxu0 %v858_v0 }
  0x9d   : > { %v338_v6 = vpop.permute.xlu0 %337  ;;  %488 = vmatprep.subr.mxu0 %v868_v3  ;;  %v342_v7 = vpop.permute.xlu1 %341  ;;  %v1037_v3 = vrot.slane %v944_v11, %v327_v4 }
  0x9e   : > { %v346_v13 = vsel %vm345_vm4, %v338_v6, %v342_v7  ;;  %v348_v14 = vsel %vm345_vm4, %v342_v7, %v338_v6  ;;  %489 = vmatpush1.msra.mxu0 %v860_v1 }
  0x9f   : > { %v358_v0 = vmul.f32 %v1016_v61, %v348_v14  ;;  %v359_v2 = vmul.f32 %v1013_v59, %v346_v13  ;;  %490 = vmatprep.subr.mxu0 %v361_v5 }
  0xa0   : > { %491 = vmatpush1.msra.mxu0 %v360_v10 }
  0xa1   : > { %v315_v18 = vpop.permute.xlu0 %314  ;;  %492 = vmatprep.subr.mxu0 %v359_v2  ;;  %v319_v19 = vpop.permute.xlu1 %318 }
  0xa2   : > { %v322_v1 = vsel %vm320_vm5, %v315_v18, %v319_v19  ;;  %v324_v20 = vsel %vm320_vm5, %v319_v19, %v315_v18  ;;  %493 = vmatpush1.msra.mxu0 %v358_v0 }
  0xa3   : > { %v335_v21 = vmul.f32 %v1037_v3, %v324_v20  ;;  %v336_v22 = vmul.f32 %v1040_v15, %v322_v1  ;;  %v462_v20 = vld [vmem:[%s1189_s2] sm:$0xff] }
  0xa5   : > { %v313_v25 = vpop.permute.xlu0 %312  ;;  %494 = vmatprep.subr.mxu0 %v336_v22  ;;  %v317_v27 = vpop.permute.xlu1 %316 }
  0xa6   : > { %v321_v28 = vsel %vm320_vm5, %v313_v25, %v317_v27  ;;  %v323_v29 = vsel %vm320_vm5, %v317_v27, %v313_v25  ;;  %495 = vmatpush1.msra.mxu0 %v335_v21 }
  0xa7   : > { %v333_v30 = vmul.f32 %v1037_v3, %v323_v29  ;;  %v334_v31 = vmul.f32 %v1040_v15, %v321_v28 }
  0xa9   : > { %v290_v34 = vpop.permute.xlu0 %289  ;;  %496 = vmatprep.subr.mxu0 %v334_v31  ;;  %v294_v35 = vpop.permute.xlu1 %293  ;;  %v612_v31 = vld [vmem:[%s1192_s5] sm:$0xf] }
  0xaa   : > { %v297_v36 = vsel %vm295_vm6, %v290_v34, %v294_v35  ;;  %v299_v37 = vsel %vm295_vm6, %v294_v35, %v290_v34  ;;  %497 = vmatpush1.msra.mxu0 %v333_v30  ;;  %v808_v30 = vmov 0.0  }
  0xab   : > { %v310_v38 = vmul.f32 %v1057_v32, %v299_v37  ;;  %v311_v39 = vmul.f32 %v1060_v33, %v297_v36  ;;  %686 = vmatprep.mubr.f32.mxu1 %v808_v30 }
  0xad   : > { %v288_v41 = vpop.permute.xlu0 %287  ;;  %498 = vmatprep.subr.mxu0 %v311_v39  ;;  %v292_v42 = vpop.permute.xlu1 %291 }
  0xae   : > { %v296_v45 = vsel %vm295_vm6, %v288_v41, %v292_v42  ;;  %v298_v46 = vsel %vm295_vm6, %v292_v42, %v288_v41  ;;  %499 = vmatpush1.msra.mxu0 %v310_v38 }
  0xaf   : > { %v308_v47 = vmul.f32 %v1057_v32, %v298_v46  ;;  %v309_v48 = vmul.f32 %v1060_v33, %v296_v45 }
  0xb1   : > { %v263_v50 = vpop.permute.xlu0 %262  ;;  %500 = vmatprep.subr.mxu0 %v309_v48  ;;  %v267_v51 = vpop.permute.xlu1 %266 }
  0xb2   : > { %v272_v52 = vsel %vm270_vm7, %v263_v50, %v267_v51  ;;  %v274_v53 = vsel %vm270_vm7, %v267_v51, %v263_v50  ;;  %501 = vmatpush1.msra.mxu0 %v308_v47 }
  0xb3   : > { %v285_v54 = vmul.f32 %v1077_v49, %v274_v53  ;;  %v286_v55 = vmul.f32 %v1080_v8, %v272_v52 }
  0xb5   : > { %v261_v56 = vpop.permute.xlu0 %260  ;;  %502 = vmatprep.subr.mxu0 %v286_v55  ;;  %v265_v11 = vpop.permute.xlu1 %264 }
  0xb6   : > { %v271_v12 = vsel %vm270_vm7, %v261_v56, %v265_v11  ;;  %v273_v57 = vsel %vm270_vm7, %v265_v11, %v261_v56  ;;  %503 = vmatpush1.msra.mxu0 %v285_v54 }
  0xb7   : > { %v283_v58 = vmul.f32 %v1077_v49, %v273_v57  ;;  %v284_v60 = vmul.f32 %v1080_v8, %v271_v12 }
  0xb9   : > { %v440_v4 = vpop.permute.xlu0 %439  ;;  %504 = vmatprep.subr.mxu0 %v284_v60  ;;  %v444_v5 = vpop.permute.xlu1 %443 }
  0xba   : > { %v447_v6 = vsel %vm445_vm8, %v440_v4, %v444_v5  ;;  %v449_v7 = vsel %vm445_vm8, %v444_v5, %v440_v4  ;;  %505 = vmatpush1.msra.mxu0 %v283_v58 }
  0xbb   : > { %v460_v10 = vmul.f32 %v764_v62, %v447_v6  ;;  %v461_v13 = vmul.f32 %v765_v63, %v449_v7 }
  0xbd   : > { %v438_v14 = vpop.permute.xlu0 %437  ;;  %534 = vmatprep.subr.mxu0 %v461_v13  ;;  %v442_v0 = vpop.permute.xlu1 %441 }
  0xbe   : > { %v446_v2 = vsel %vm445_vm8, %v438_v14, %v442_v0  ;;  %v448_v18 = vsel %vm445_vm8, %v442_v0, %v438_v14  ;;  %535 = vmatpush2.msra.mxu0 %v460_v10 }
  0xbf   : > { %v458_v19 = vmul.f32 %v764_v62, %v446_v2  ;;  %v459_v1 = vmul.f32 %v765_v63, %v448_v18 }
  0xc1   : > { %536 = vmatprep.subr.mxu0 %v459_v1 }
  0xc2   : > { %537 = vmatpush2.msra.mxu0 %v458_v19 }
  0xc3   : > { %539 = vmatmul.mubr.f32.vlgmr.msra.gmra.mxu0 %v462_v20 }
  0xca   : > { %v468_v21 = vpop.permute.xlu0 %467 }
 0x183   : > { %v540_v22 = vpop.f32.mrf.mxu0 }
 0x184   : > { %v541_v24 = vadd.f32 %v540_v22, %v468_v21 }
 0x185   : > { %v542_v25 = vpop.f32.mrf.mxu0 }
 0x186   : > { %v545_v27 = vmax.f32 %v541_v24, 0.0  ;;  %v543_v28 = vadd.f32 %v542_v25, %v468_v21 }
 0x188   : > { %595 = vrot.lane.b32.xlu0 %v545_v27, %s799_s27  ;;  %603 = vrot.lane.b32.xlu1 %v545_v27, %s807_s12  ;;  %v546_v29 = vmax.f32 %v543_v28, 0.0 }
 0x18c   : > { %587 = vrot.lane.b32.xlu0 %v545_v27, %s800_s28  ;;  %605 = vrot.lane.b32.xlu1 %v546_v29, %s807_s12 }
 0x190   : > { %579 = vrot.lane.b32.xlu0 %v545_v27, %s801_s29  ;;  %597 = vrot.lane.b32.xlu1 %v546_v29, %s799_s27 }
 0x194   : > { %571 = vrot.lane.b32.xlu0 %v545_v27, %s802_s30  ;;  %589 = vrot.lane.b32.xlu1 %v546_v29, %s800_s28 }
 0x198   : > { %563 = vrot.lane.b32.xlu0 %v545_v27, %s803_s7  ;;  %581 = vrot.lane.b32.xlu1 %v546_v29, %s801_s29 }
 0x19c   : > { %555 = vrot.lane.b32.xlu0 %v545_v27, %s804_s8  ;;  %573 = vrot.lane.b32.xlu1 %v546_v29, %s802_s30  ;;  %s771_s30 = sshll.u32 %s1195_s22, 3 }
 0x1a0   : > { %547 = vrot.lane.b32.xlu0 %v545_v27, %s805_s9  ;;  %565 = vrot.lane.b32.xlu1 %v546_v29, %s803_s7 }
 0x1a4   : > { %615 = vperm.xlu0 %790, %v612_v31   ;;  %557 = vrot.lane.b32.xlu1 %v546_v29, %s804_s8 }
 0x1a8   : > { %549 = vrot.lane.b32.xlu1 %v546_v29, %s805_s9  ;;  %s251_s9 = scalar_lea.vmem %s1193_s6, %s771_s30 }
 0x1fa   : > { %v596_v34 = vpop.permute.xlu0 %595  ;;  %v604_v35 = vpop.permute.xlu1 %603 }
 0x1fe   : > { %v588_v36 = vpop.permute.xlu0 %587  ;;  %v606_v37 = vpop.permute.xlu1 %605 }
 0x1ff   : > { %v607_v38 = vsel %vm445_vm8, %v604_v35, %v606_v37  ;;  %v608_v39 = vsel %vm445_vm8, %v606_v37, %v604_v35 }
 0x200   : > { %v610_v40 = vmul.f32 %v765_v63, %v608_v39  ;;  %v609_v41 = vmul.f32 %v764_v62, %v607_v38 }
 0x202   : > { %v580_v42 = vpop.permute.xlu0 %579  ;;  %636 = vmatprep.subr.mxu1 %v610_v40  ;;  %v598_v45 = vpop.permute.xlu1 %597 }
 0x203   : > { %v599_v46 = vsel %vm420_vm1, %v596_v34, %v598_v45  ;;  %v600_v47 = vsel %vm420_vm1, %v598_v45, %v596_v34  ;;  %637 = vmatpush1.msra.mxu1 %v609_v41 }
 0x204   : > { %v601_v48 = vmul.f32 %v599_v46, %v954_v16  ;;  %v602_v50 = vmul.f32 %v600_v47, %v957_v17 }
 0x206   : > { %638 = vmatprep.subr.mxu1 %v602_v50  ;;  %v590_v51 = vpop.permute.xlu1 %589  ;;  %v572_v54 = vpop.permute.xlu0 %571 }
 0x207   : > { %v591_v52 = vsel %vm395_vm2, %v588_v36, %v590_v51  ;;  %v592_v53 = vsel %vm395_vm2, %v590_v51, %v588_v36  ;;  %639 = vmatpush1.msra.mxu1 %v601_v48 }
 0x208   : > { %v593_v55 = vmul.f32 %v591_v52, %v967_v23  ;;  %v594_v56 = vmul.f32 %v592_v53, %v973_v26 }
 0x20a   : > { %640 = vmatprep.subr.mxu1 %v594_v56  ;;  %v582_v11 = vpop.permute.xlu1 %581  ;;  %v564_v58 = vpop.permute.xlu0 %563 }
 0x20b   : > { %v583_v16 = vsel %vm370_vm3, %v580_v42, %v582_v11  ;;  %v584_v17 = vsel %vm370_vm3, %v582_v11, %v580_v42  ;;  %641 = vmatpush1.msra.mxu1 %v593_v55 }
 0x20c   : > { %v585_v12 = vmul.f32 %v583_v16, %v993_v43  ;;  %v586_v57 = vmul.f32 %v584_v17, %v996_v44 }
 0x20e   : > { %642 = vmatprep.subr.mxu1 %v586_v57  ;;  %v574_v60 = vpop.permute.xlu1 %573  ;;  %v556_v5 = vpop.permute.xlu0 %555 }
 0x20f   : > { %v575_v23 = vsel %vm345_vm4, %v572_v54, %v574_v60  ;;  %v576_v26 = vsel %vm345_vm4, %v574_v60, %v572_v54  ;;  %643 = vmatpush1.msra.mxu1 %v585_v12 }
 0x210   : > { %v577_v62 = vmul.f32 %v576_v26, %v1016_v61  ;;  %v578_v63 = vmul.f32 %v575_v23, %v1013_v59  ;;  %644 = vmatprep.subr.mxu1 %v546_v29 }
 0x211   : > { %645 = vmatpush1.msra.mxu1 %v545_v27 }
 0x212   : > { %646 = vmatprep.subr.mxu1 %v578_v63  ;;  %v566_v43 = vpop.permute.xlu1 %565  ;;  %v548_v0 = vpop.permute.xlu0 %547 }
 0x213   : > { %v567_v44 = vsel %vm320_vm5, %v564_v58, %v566_v43  ;;  %v568_v4 = vsel %vm320_vm5, %v566_v43, %v564_v58  ;;  %647 = vmatpush1.msra.mxu1 %v577_v62 }
 0x214   : > { %v569_v6 = vmul.f32 %v568_v4, %v1037_v3  ;;  %v570_v7 = vmul.f32 %v567_v44, %v1040_v15 }
 0x216   : > { %648 = vmatprep.subr.mxu1 %v570_v7  ;;  %v558_v61 = vpop.permute.xlu1 %557 }
 0x217   : > { %v559_v59 = vsel %vm295_vm6, %v556_v5, %v558_v61  ;;  %v560_v10 = vsel %vm295_vm6, %v558_v61, %v556_v5  ;;  %649 = vmatpush1.msra.mxu1 %v569_v6 }
 0x218   : > { %v561_v13 = vmul.f32 %v560_v10, %v1057_v32  ;;  %v562_v14 = vmul.f32 %v559_v59, %v1060_v33  ;;  %v611_v32 = vld [vmem:[%s1191_s4] sm:$0xf] }
 0x21a   : > { %650 = vmatprep.subr.mxu1 %v562_v14  ;;  %v550_v2 = vpop.permute.xlu1 %549 }
 0x21b   : > { %v551_v3 = vsel %vm270_vm7, %v548_v0, %v550_v2  ;;  %v552_v15 = vsel %vm270_vm7, %v550_v2, %v548_v0  ;;  %651 = vmatpush1.msra.mxu1 %v561_v13 }
 0x21c   : > { %v553_v18 = vmul.f32 %v552_v15, %v1077_v49  ;;  %v554_v19 = vmul.f32 %v551_v3, %v1080_v8 }
 0x21e   : > { %652 = vmatprep.subr.mxu1 %v554_v19 }
 0x21f   : > { %653 = vmatpush1.msra.mxu1 %v553_v18  ;;  %v616_v33 = vpop.permute.xlu0 %615 }
 0x220   : > { %767 = vmatmul.mubr.msk.f32.vlgmr.msra.gmra.mxu1 %vm618_vm9, %v611_v32 }
 0x2e0   : > { %v688_v1 = vpop.f32.mrf.mxu1 }
 0x2e1   : > { %v689_v20 = vadd.f32 %v688_v1, %v616_v33 }
 0x2e2   : > { %v690_v21 = vpop.f32.mrf.mxu1 }
 0x2e3   : > { %v691_v9 = vadd.f32 %v690_v21, %v616_v33  ;;  %v693_v22 = vmax.f32 %v689_v20, 0.0 }
 0x2e5   : > { %v694_v24 = vmax.f32 %v691_v9, 0.0 }
 0x2e7   : > { %v697_v49 = vcombine.low %v693_v22, %v694_v24 }
 0x2e9   : > { %699 = vst [vmem:[%s251_s9] sm:$0xff] %v697_v49 }
 0x2ea PF: > { %s16_s21 = sadd.s32 1, %s797_s21  }
 0x2eb   : > { %p13_p4 = scmp.ge.s32.totalorder %s16_s21, 4  }
 0x2ed   :  { %15 = sbr.rel (!%p13_p4) target bundleno = 1 (0x1), region = 74 }

// kernel: decoder_forward.5
= control target key start
LH: loop header
LB: loop body
LE: loop exit
PB: predicated region body
PF: predicated region fallthrough
CT: control target
= control target key end

     0   :  { %s1863_s21 = smov 0   ;;  %s3238_s0 = inlined_call_operand.vmem [shape: f32[2,8,1024], index: 0, kind: input, shape index: {}]   ;;  %s3239_s1 = inlined_call_operand.vmem [shape: f32[9,1024], index: 1, kind: input, shape index: {}]   ;;  %s3240_s2 = inlined_call_operand.vmem [shape: f32[8,72], index: 2, kind: input, shape index: {}]   ;;  %s3241_s3 = inlined_call_operand.vmem [shape: f32[8,1], index: 3, kind: input, shape index: {}]   ;;  %s3242_s4 = inlined_call_operand.vmem [shape: f32[2,72], index: 4, kind: input, shape index: {}]   ;;  %s3243_s5 = inlined_call_operand.vmem [shape: f32[2,1], index: 5, kind: input, shape index: {}]   ;;  %s3244_s6 = inlined_call_operand.vmem [shape: f32[2,2,1024], index: 6, kind: output, shape index: {}]  }
   0x1 LB: > { %s1760_s22 = sadd.s32 4294967295, %s1815_s21   ;;  %p1764_p0 = scmp.ge.s32.totalorder %s1815_s21, 1  ;;  %s1815_s21 = sphi %s1863_s21, %s16_s21  }
   0x2   : > { %p212_p1 = scmp.lt.s32.totalorder %s1815_s21, 3 }
   0x4   : > { %p213_p2 = pnand %p1764_p0, %p212_p1 }
   0x6   : > { %216 = sbr.rel (%p213_p2) target bundleno = 880 (0x370), region = 44 }
   0xb   : > { %p242_p3 = scmp.lt.s32.totalorder %s1760_s22, 1  ;;  %s1817_s27 = smov 95   ;;  %v3245_v6 = vmov 0.0   ;;  %v292_v9 = vlaneseq  ;;  %v2038_v15 = vld [vmem:[%s3239_s1 + $0x48] ss:$0 sm:$0xff]  ;;  %v2048_v17 = vld [vmem:[%s3239_s1] sm:$0xff] }
   0xc   : > { %s1818_s28 = smov 96   ;;  %s1819_s29 = smov 97   ;;  %873 = vmatprep.mubr.f32.mxu0 %v3245_v6  ;;  %944 = vmatprep.mubr.f32.mxu1 %v3245_v6  ;;  %v2043_v16 = vld [vmem:[%s3239_s1 + $0x8] sm:$0xff]  ;;  %v2053_v20 = vld [vmem:[%s3239_s1 + $0x40] ss:$0 sm:$0xff]  ;;  %v1826_v23 = vmov 0  }
   0xd   : > { %s3375_s22 = smov (!%p242_p3, %s1760_s22), 1  ;;  %s1820_s30 = smov 127   ;;  %v2017_v10 = vand.u32 127, %v292_v9  ;;  %v2023_v11 = vshrl.u32 %v292_v9, 7  ;;  %1808 = vset.pattern.permute.xlu0 %v1826_v23  ;;  %v799_v36 = vld [vmem:[%s3241_s3] sm:$0xff]  ;;  %vm805_vm8 = vcmask 588800  }
   0xe   : > { %s1787_s23 = sshll.u32 %s3375_s22, 6  ;;  %s1821_s7 = smov 1   ;;  %v2148_v56 = vld [vmem:[%s3239_s1 + $0x58] ss:$0 sm:$0xff]  ;;  %v2153_v57 = vld [vmem:[%s3239_s1 + $0x50] ss:$0 sm:$0xff] }
   0xf   : > { %s1877_s26 = scalar_lea.vmem %s3238_s0, %s1787_s23  ;;  %s1822_s8 = smov 31   ;;  %3289 = vst [vmem:[#allocation2_spill] sm:$0xff] %v2023_v11  ;;  %vm749_vm0 = vcmp.lt.s32.totalorder %v2017_v10, 95  ;;  %v2033_v14 = vsub.s32 7, %v2023_v11  ;;  %vm684_vm1 = vcmp.lt.s32.totalorder %v2017_v10, 96  ;;  %v2075_v27 = vsub.s32 6, %v2023_v11 }
  0x10   : > { %v1880_v0 = vld [vmem:[%s1877_s26 + $0x8] sm:$0xff]  ;;  %v1883_v1 = vld [vmem:[%s1877_s26] sm:$0xff]  ;;  %v1890_v2 = vld [vmem:[%s1877_s26 + $0x10] sm:$0xff]  ;;  %s1823_s9 = smov 32   ;;  %s1825_s10 = smov 33   ;;  %vm619_vm2 = vcmp.lt.s32.totalorder %v2017_v10, 97 }
  0x11   : > { %735 = vrot.lane.b32.xlu0 %v1880_v0, %s1817_s27  ;;  %733 = vrot.lane.b32.xlu1 %v1883_v1, %s1817_s27  ;;  %v1913_v3 = vld [vmem:[%s1877_s26 + $0x18] sm:$0xff]  ;;  %v1916_v4 = vld [vmem:[%s1877_s26 + $0x20] sm:$0xff]  ;;  %v2068_v25 = vrot.slane %v2043_v16, %v2033_v14  ;;  %v2072_v26 = vrot.slane %v2048_v17, %v2033_v14  ;;  %v2097_v35 = vrot.slane %v2043_v16, %v2075_v27  ;;  %v2113_v42 = vsub.s32 5, %v2023_v11 }
  0x12   : > { %v1927_v5 = vld [vmem:[%s1877_s26 + $0x38] sm:$0xff]  ;;  %v1964_v7 = vld [vmem:[%s1877_s26 + $0x28] sm:$0xff]  ;;  %v1967_v8 = vld [vmem:[%s1877_s26 + $0x30] sm:$0xff]  ;;  %v2110_v41 = vrot.slane %v2048_v17, %v2075_v27  ;;  %vm554_vm3 = vcmp.lt.s32.totalorder %v2017_v10, 127  ;;  %v2143_v55 = vsub.s32 3, %v2023_v11  ;;  %vm489_vm4 = vcmp.lt.s32.totalorder %v2017_v10, 1 }
  0x13   : > { %v2124_v47 = vrot.slane %v2043_v16, %v2113_v42  ;;  %v2128_v48 = vrot.slane %v2048_v17, %v2113_v42  ;;  %vm424_vm5 = vcmp.lt.s32.totalorder %v2017_v10, 31  ;;  %vm359_vm6 = vcmp.lt.s32.totalorder %v2017_v10, 32 }
  0x14   : > { %v2168_v9 = vrot.slane %v2043_v16, %v2143_v55  ;;  %vm294_vm7 = vcmp.lt.s32.totalorder %v2017_v10, 33 }
  0x15   : > { %737 = vrot.lane.b32.xlu0 %v1890_v2, %s1817_s27  ;;  %670 = vrot.lane.b32.xlu1 %v1880_v0, %s1818_s28 }
  0x19   : > { %672 = vrot.lane.b32.xlu0 %v1890_v2, %s1818_s28  ;;  %668 = vrot.lane.b32.xlu1 %v1883_v1, %s1818_s28 }
  0x1d   : > { %605 = vrot.lane.b32.xlu0 %v1880_v0, %s1819_s29  ;;  %607 = vrot.lane.b32.xlu1 %v1890_v2, %s1819_s29 }
  0x21   : > { %603 = vrot.lane.b32.xlu0 %v1883_v1, %s1819_s29  ;;  %540 = vrot.lane.b32.xlu1 %v1880_v0, %s1820_s30 }
  0x25   : > { %542 = vrot.lane.b32.xlu0 %v1890_v2, %s1820_s30  ;;  %538 = vrot.lane.b32.xlu1 %v1883_v1, %s1820_s30 }
  0x29   : > { %739 = vrot.lane.b32.xlu0 %v1913_v3, %s1817_s27  ;;  %741 = vrot.lane.b32.xlu1 %v1916_v4, %s1817_s27 }
  0x2d   : > { %473 = vrot.lane.b32.xlu0 %v1883_v1, %s1821_s7  ;;  %475 = vrot.lane.b32.xlu1 %v1880_v0, %s1821_s7 }
  0x31   : > { %487 = vrot.lane.b32.xlu0 %v1927_v5, %s1821_s7  ;;  %674 = vrot.lane.b32.xlu1 %v1913_v3, %s1818_s28 }
  0x35   : > { %676 = vrot.lane.b32.xlu0 %v1916_v4, %s1818_s28  ;;  %408 = vrot.lane.b32.xlu1 %v1883_v1, %s1822_s8 }
  0x39   : > { %410 = vrot.lane.b32.xlu0 %v1880_v0, %s1822_s8  ;;  %422 = vrot.lane.b32.xlu1 %v1927_v5, %s1822_s8 }
  0x3d   : > { %609 = vrot.lane.b32.xlu0 %v1913_v3, %s1819_s29  ;;  %611 = vrot.lane.b32.xlu1 %v1916_v4, %s1819_s29 }
  0x41   : > { %343 = vrot.lane.b32.xlu0 %v1883_v1, %s1823_s9  ;;  %345 = vrot.lane.b32.xlu1 %v1880_v0, %s1823_s9 }
  0x45   : > { %357 = vrot.lane.b32.xlu0 %v1927_v5, %s1823_s9  ;;  %544 = vrot.lane.b32.xlu1 %v1913_v3, %s1820_s30 }
  0x49   : > { %546 = vrot.lane.b32.xlu0 %v1916_v4, %s1820_s30  ;;  %276 = vrot.lane.b32.xlu1 %v1883_v1, %s1825_s10 }
  0x4d   : > { %278 = vrot.lane.b32.xlu0 %v1880_v0, %s1825_s10  ;;  %290 = vrot.lane.b32.xlu1 %v1927_v5, %s1825_s10 }
  0x51   : > { %743 = vrot.lane.b32.xlu0 %v1964_v7, %s1817_s27  ;;  %745 = vrot.lane.b32.xlu1 %v1967_v8, %s1817_s27 }
  0x55   : > { %477 = vrot.lane.b32.xlu0 %v1890_v2, %s1821_s7  ;;  %479 = vrot.lane.b32.xlu1 %v1913_v3, %s1821_s7 }
  0x59   : > { %678 = vrot.lane.b32.xlu0 %v1964_v7, %s1818_s28  ;;  %680 = vrot.lane.b32.xlu1 %v1967_v8, %s1818_s28 }
  0x5d   : > { %412 = vrot.lane.b32.xlu0 %v1890_v2, %s1822_s8  ;;  %414 = vrot.lane.b32.xlu1 %v1913_v3, %s1822_s8 }
  0x61   : > { %613 = vrot.lane.b32.xlu0 %v1964_v7, %s1819_s29  ;;  %615 = vrot.lane.b32.xlu1 %v1967_v8, %s1819_s29 }
  0x65   : > { %347 = vrot.lane.b32.xlu0 %v1890_v2, %s1823_s9  ;;  %349 = vrot.lane.b32.xlu1 %v1913_v3, %s1823_s9 }
  0x69   : > { %548 = vrot.lane.b32.xlu0 %v1964_v7, %s1820_s30  ;;  %550 = vrot.lane.b32.xlu1 %v1967_v8, %s1820_s30 }
  0x6d   : > { %280 = vrot.lane.b32.xlu0 %v1890_v2, %s1825_s10  ;;  %282 = vrot.lane.b32.xlu1 %v1913_v3, %s1825_s10 }
  0x71   : > { %747 = vrot.lane.b32.xlu0 %v1927_v5, %s1817_s27  ;;  %481 = vrot.lane.b32.xlu1 %v1916_v4, %s1821_s7 }
  0x75   : > { %483 = vrot.lane.b32.xlu0 %v1964_v7, %s1821_s7  ;;  %682 = vrot.lane.b32.xlu1 %v1927_v5, %s1818_s28 }
  0x79   : > { %416 = vrot.lane.b32.xlu0 %v1916_v4, %s1822_s8  ;;  %418 = vrot.lane.b32.xlu1 %v1964_v7, %s1822_s8 }
  0x7d   : > { %617 = vrot.lane.b32.xlu0 %v1927_v5, %s1819_s29  ;;  %351 = vrot.lane.b32.xlu1 %v1916_v4, %s1823_s9 }
  0x81   : > { %353 = vrot.lane.b32.xlu0 %v1964_v7, %s1823_s9  ;;  %552 = vrot.lane.b32.xlu1 %v1927_v5, %s1820_s30 }
  0x83   : > { %v736_v12 = vpop.permute.xlu0 %735  ;;  %v2025_v13 = vpop.permute.xlu1 %733 }
  0x84   : > { %v756_v21 = vsel %vm749_vm0, %v2025_v13, %v736_v12 }
  0x85   : > { %284 = vrot.lane.b32.xlu0 %v1916_v4, %s1825_s10  ;;  %286 = vrot.lane.b32.xlu1 %v1964_v7, %s1825_s10  ;;  %v790_v28 = vmul.f32 %v2053_v20, %v756_v21 }
  0x87   : > { %v738_v18 = vpop.permute.xlu0 %737  ;;  %v671_v19 = vpop.permute.xlu1 %670 }
  0x88   : > { %v755_v22 = vsel %vm749_vm0, %v736_v12, %v738_v18 }
  0x89   : > { %485 = vrot.lane.b32.xlu0 %v1967_v8, %s1821_s7  ;;  %420 = vrot.lane.b32.xlu1 %v1967_v8, %s1822_s8  ;;  %v791_v24 = vmul.f32 %v2038_v15, %v755_v22  ;;  %v2184_v22 = vld [vmem:[%s3239_s1 + $0x18] sm:$0xff] }
  0x8b   : > { %823 = vmatprep.subr.mxu0 %v791_v24  ;;  %v2078_v29 = vpop.permute.xlu0 %672  ;;  %v2080_v30 = vpop.permute.xlu1 %668  ;;  %v2191_v24 = vld [vmem:[%s3239_s1 + $0x10] sm:$0xff] }
  0x8c   : > { %v690_v31 = vsel %vm684_vm1, %v671_v19, %v2078_v29  ;;  %v691_v32 = vsel %vm684_vm1, %v2080_v30, %v671_v19  ;;  %824 = vmatpush1.msra.mxu0 %v790_v28 }
  0x8d   : > { %355 = vrot.lane.b32.xlu0 %v1967_v8, %s1823_s9  ;;  %288 = vrot.lane.b32.xlu1 %v1967_v8, %s1825_s10  ;;  %v726_v33 = vmul.f32 %v2068_v25, %v690_v31  ;;  %v725_v34 = vmul.f32 %v2072_v26, %v691_v32  ;;  %v2199_v32 = vrot.slane %v2184_v22, %v2033_v14 }
  0x8f   : > { %v606_v37 = vpop.permute.xlu0 %605  ;;  %825 = vmatprep.subr.mxu0 %v726_v33  ;;  %v2102_v38 = vpop.permute.xlu1 %607  ;;  %v2202_v33 = vsub.s32 2, %v2023_v11 }
  0x90   : > { %v625_v39 = vsel %vm619_vm2, %v606_v37, %v2102_v38  ;;  %826 = vmatpush1.msra.mxu0 %v725_v34  ;;  %v2206_v34 = vrot.slane %v2191_v24, %v2033_v14 }
  0x91   : > { %v661_v40 = vmul.f32 %v2097_v35, %v625_v39  ;;  %802 = vperm.xlu0 %1808, %v799_v36  }
  0x93   : > { %v2115_v43 = vpop.permute.xlu0 %603  ;;  %827 = vmatprep.subr.mxu0 %v661_v40  ;;  %v541_v44 = vpop.permute.xlu1 %540 }
  0x94   : > { %v626_v45 = vsel %vm619_vm2, %v2115_v43, %v606_v37 }
  0x95   : > { %v660_v46 = vmul.f32 %v2110_v41, %v626_v45  ;;  %v2220_v45 = vrot.slane %v2043_v16, %v2202_v33 }
  0x97   : > { %v2130_v49 = vpop.permute.xlu0 %542  ;;  %828 = vmatpush1.msra.mxu0 %v660_v46  ;;  %v2132_v50 = vpop.permute.xlu1 %538  ;;  %3291 = vst [vmem:[#allocation4_spill] sm:$0xff] %v2220_v45  ;;  %v2224_v46 = vrot.slane %v2048_v17, %v2202_v33 }
  0x98   : > { %v560_v51 = vsel %vm554_vm3, %v541_v44, %v2130_v49  ;;  %v561_v52 = vsel %vm554_vm3, %v2132_v50, %v541_v44 }
  0x99   : > { %v596_v53 = vmul.f32 %v2124_v47, %v560_v51  ;;  %v595_v54 = vmul.f32 %v2128_v48, %v561_v52  ;;  %3292 = vst [vmem:[#allocation5_spill] sm:$0xff] %v2224_v46 }
  0x9b   : > { %v740_v58 = vpop.permute.xlu0 %739  ;;  %829 = vmatprep.subr.mxu0 %v596_v53  ;;  %v2155_v59 = vpop.permute.xlu1 %741 }
  0x9c   : > { %830 = vmatpush1.msra.mxu0 %v595_v54  ;;  %v753_v60 = vsel %vm749_vm0, %v740_v58, %v2155_v59  ;;  %v754_v61 = vsel %vm749_vm0, %v738_v18, %v740_v58  ;;  %v2239_v58 = vrot.slane %v2184_v22, %v2075_v27 }
  0x9d   : > { %v793_v62 = vmul.f32 %v2148_v56, %v753_v60  ;;  %v792_v63 = vmul.f32 %v2153_v57, %v754_v61  ;;  %831 = vmatprep.subr.mxu0 %v1880_v0  ;;  %v2179_v0 = vrot.slane %v2048_v17, %v2143_v55 }
  0x9e   : > { %832 = vmatpush1.msra.mxu0 %v1883_v1 }
  0x9f   : > { %v474_v12 = vpop.permute.xlu0 %473  ;;  %894 = vmatprep.subr.mxu1 %v793_v62  ;;  %v2171_v19 = vpop.permute.xlu1 %475  ;;  %3290 = vst [vmem:[#allocation3_spill] sm:$0xff] %v2179_v0  ;;  %v2245_v62 = vrot.slane %v2191_v24, %v2075_v27 }
  0xa0   : > { %v496_v18 = vsel %vm489_vm4, %v474_v12, %v2171_v19  ;;  %895 = vmatpush1.msra.mxu1 %v792_v63  ;;  %v2248_v63 = vsub.s32 1, %v2023_v11 }
  0xa1   : > { %v531_v21 = vmul.f32 %v2168_v9, %v496_v18 }
  0xa3   : > { %v2186_v1 = vpop.permute.xlu0 %487  ;;  %833 = vmatprep.subr.mxu0 %v531_v21  ;;  %v675_v23 = vpop.permute.xlu1 %674 }
  0xa4   : > { %v497_v28 = vsel %vm489_vm4, %v2186_v1, %v474_v12  ;;  %v689_v36 = vsel %vm684_vm1, %v2078_v29, %v675_v23 }
  0xa5   : > { %v530_v31 = vmul.f32 %v2179_v0, %v497_v28  ;;  %v727_v29 = vmul.f32 %v2206_v34, %v689_v36  ;;  %v2263_v36 = vrot.slane %v2043_v16, %v2248_v63  ;;  %v2401_v0 = vrot.slane %v2191_v24, %v2202_v33 }
  0xa7   : > { %v2211_v37 = vpop.permute.xlu0 %676  ;;  %834 = vmatpush1.msra.mxu0 %v530_v31  ;;  %v409_v39 = vpop.permute.xlu1 %408  ;;  %3293 = vst [vmem:[#allocation6_spill] sm:$0xff] %v2263_v36  ;;  %3303 = vst [vmem:[#allocation15_spill] sm:$0xff] %v2401_v0 }
  0xa8   : > { %v688_v40 = vsel %vm684_vm1, %v675_v23, %v2211_v37 }
  0xa9   : > { %v728_v44 = vmul.f32 %v2199_v32, %v688_v40 }
  0xab   : > { %v2227_v51 = vpop.permute.xlu0 %410  ;;  %896 = vmatprep.subr.mxu1 %v728_v44  ;;  %v2229_v52 = vpop.permute.xlu1 %422 }
  0xac   : > { %v431_v53 = vsel %vm424_vm5, %v409_v39, %v2227_v51  ;;  %v432_v54 = vsel %vm424_vm5, %v2229_v52, %v409_v39  ;;  %897 = vmatpush1.msra.mxu1 %v727_v29  ;;  %v2273_v29 = vrot.slane %v2048_v17, %v2248_v63 }
  0xad   : > { %v466_v60 = vmul.f32 %v2220_v45, %v431_v53  ;;  %v465_v61 = vmul.f32 %v2224_v46, %v432_v54 }
  0xae   : > { %3294 = vst [vmem:[#allocation7_spill] sm:$0xff] %v2273_v29 }
  0xaf   : > { %v610_v12 = vpop.permute.xlu0 %609  ;;  %835 = vmatprep.subr.mxu0 %v466_v60  ;;  %v2250_v18 = vpop.permute.xlu1 %611 }
  0xb0   : > { %v624_v21 = vsel %vm619_vm2, %v2102_v38, %v610_v12  ;;  %v623_v23 = vsel %vm619_vm2, %v610_v12, %v2250_v18  ;;  %836 = vmatpush1.msra.mxu0 %v465_v61  ;;  %v2283_v12 = vrot.slane %v2184_v22, %v2113_v42 }
  0xb1   : > { %v663_v28 = vmul.f32 %v2239_v58, %v623_v23  ;;  %v662_v31 = vmul.f32 %v2245_v62, %v624_v21  ;;  %v2286_v21 = vsub.s32 0, %v2023_v11  ;;  %v2290_v23 = vrot.slane %v2191_v24, %v2113_v42 }
  0xb3   : > { %v344_v39 = vpop.permute.xlu0 %343  ;;  %898 = vmatprep.subr.mxu1 %v663_v28  ;;  %v2265_v40 = vpop.permute.xlu1 %345  ;;  %v2308_v6 = vrot.slane %v2048_v17, %v2286_v21 }
  0xb4   : > { %v366_v38 = vsel %vm359_vm6, %v344_v39, %v2265_v40  ;;  %899 = vmatpush1.msra.mxu1 %v662_v31 }
  0xb5   : > { %v401_v44 = vmul.f32 %v2263_v36, %v366_v38  ;;  %3296 = vst [vmem:[#allocation9_spill] sm:$0xff] %v2308_v6 }
  0xb7   : > { %v2275_v53 = vpop.permute.xlu0 %357  ;;  %837 = vmatprep.subr.mxu0 %v401_v44  ;;  %v545_v54 = vpop.permute.xlu1 %544 }
  0xb8   : > { %v367_v60 = vsel %vm359_vm6, %v2275_v53, %v344_v39  ;;  %v559_v28 = vsel %vm554_vm3, %v2130_v49, %v545_v54 }
  0xb9   : > { %v400_v61 = vmul.f32 %v2273_v29, %v367_v60  ;;  %v2304_v60 = vrot.slane %v2043_v16, %v2286_v21  ;;  %v597_v49 = vmul.f32 %v2290_v23, %v559_v28  ;;  %v2327_v28 = vld [vmem:[%s3239_s1 + $0x60] ss:$0 sm:$0xff] }
  0xba   : > { %3297 = vst [vmem:[#allocation10_spill] sm:$0xff] %v2327_v28 }
  0xbb   : > { %v2295_v31 = vpop.permute.xlu0 %546  ;;  %838 = vmatpush1.msra.mxu0 %v400_v61  ;;  %v277_v39 = vpop.permute.xlu1 %276  ;;  %3295 = vst [vmem:[#allocation8_spill] sm:$0xff] %v2304_v60 }
  0xbc   : > { %v558_v38 = vsel %vm554_vm3, %v545_v54, %v2295_v31 }
  0xbd   : > { %v598_v44 = vmul.f32 %v2283_v12, %v558_v38 }
  0xbf   : > { %v2311_v61 = vpop.permute.xlu0 %278  ;;  %900 = vmatprep.subr.mxu1 %v598_v44  ;;  %v2313_v11 = vpop.permute.xlu1 %290  ;;  %v2332_v44 = vld [vmem:[%s3239_s1 + $0x68] ss:$0 sm:$0xff] }
  0xc0   : > { %v301_v54 = vsel %vm294_vm7, %v277_v39, %v2311_v61  ;;  %v302_v16 = vsel %vm294_vm7, %v2313_v11, %v277_v39  ;;  %901 = vmatpush1.msra.mxu1 %v597_v49  ;;  %3298 = vst [vmem:[#allocation11_spill] sm:$0xff] %v2332_v44  ;;  %v2337_v39 = vld [vmem:[%s3240_s2] sm:$0xff] }
  0xc1   : > { %v336_v38 = vmul.f32 %v2304_v60, %v301_v54  ;;  %v335_v17 = vmul.f32 %v2308_v6, %v302_v16  ;;  %902 = vmatprep.subr.mxu1 %v1913_v3 }
  0xc2   : > { %903 = vmatpush1.msra.mxu1 %v1890_v2  ;;  %v2352_v2 = vrot.slane %v2191_v24, %v2143_v55 }
  0xc3   : > { %v744_v49 = vpop.permute.xlu0 %743  ;;  %839 = vmatprep.subr.mxu0 %v336_v38  ;;  %v2340_v3 = vpop.permute.xlu1 %745  ;;  %v2356_v38 = vrot.slane %v2184_v22, %v2143_v55 }
  0xc4   : > { %v752_v54 = vsel %vm749_vm0, %v2155_v59, %v744_v49  ;;  %v751_v16 = vsel %vm749_vm0, %v744_v49, %v2340_v3  ;;  %840 = vmatpush1.msra.mxu0 %v335_v17  ;;  %3299 = vst [vmem:[#allocation12_spill] sm:$0xff] %v2352_v2  ;;  %v2363_v59 = vld [vmem:[%s3239_s1 + $0x20] sm:$0xff]  ;;  %v2368_v17 = vld [vmem:[%s3239_s1 + $0x28] sm:$0xff]  ;;  %v3300_v49 = vmov 0.0  }
  0xc5   : > { %v794_v6 = vmul.f32 %v2327_v28, %v752_v54  ;;  %v795_v29 = vmul.f32 %v2332_v44, %v751_v16  ;;  %1777 = vmatmul.mubr.msk.f32.vlgmr.msra.gmra.mxu0 %vm805_vm8, %v2337_v39  ;;  %v2383_v46 = vrot.slane %v2363_v59, %v2033_v14 }
  0xc6   : > { %1015 = vmatprep.mubr.f32.mxu0 %v3300_v49 }
  0xc7   : > { %v478_v54 = vpop.permute.xlu0 %477  ;;  %965 = vmatprep.subr.mxu0 %v795_v29  ;;  %v2371_v16 = vpop.permute.xlu1 %479  ;;  %3301 = vst [vmem:[#allocation13_spill] sm:$0xff] %v2383_v46  ;;  %v2387_v29 = vrot.slane %v2368_v17, %v2033_v14 }
  0xc8   : > { %v495_v28 = vsel %vm489_vm4, %v2171_v19, %v478_v54  ;;  %v494_v44 = vsel %vm489_vm4, %v478_v54, %v2371_v16  ;;  %966 = vmatpush1.msra.mxu0 %v794_v6 }
  0xc9   : > { %v532_v60 = vmul.f32 %v2352_v2, %v495_v28  ;;  %v533_v36 = vmul.f32 %v2356_v38, %v494_v44  ;;  %3302 = vst [vmem:[#allocation14_spill] sm:$0xff] %v2387_v29 }
  0xcb   : > { %v679_v45 = vpop.permute.xlu0 %678  ;;  %904 = vmatprep.subr.mxu1 %v533_v36  ;;  %v2389_v19 = vpop.permute.xlu1 %680  ;;  %v2405_v36 = vrot.slane %v2184_v22, %v2202_v33 }
  0xcc   : > { %v687_v6 = vsel %vm684_vm1, %v2211_v37, %v679_v45  ;;  %v686_v28 = vsel %vm684_vm1, %v679_v45, %v2389_v19  ;;  %905 = vmatpush1.msra.mxu1 %v532_v60 }
  0xcd   : > { %v729_v44 = vmul.f32 %v2383_v46, %v687_v6  ;;  %v730_v54 = vmul.f32 %v2387_v29, %v686_v28  ;;  %3304 = vst [vmem:[#allocation16_spill] sm:$0xff] %v2405_v36  ;;  %v2419_v29 = vrot.slane %v2363_v59, %v2075_v27 }
  0xcf   : > { %v413_v2 = vpop.permute.xlu0 %412  ;;  %967 = vmatprep.subr.mxu0 %v730_v54  ;;  %v2407_v37 = vpop.permute.xlu1 %414  ;;  %3305 = vst [vmem:[#allocation17_spill] sm:$0xff] %v2419_v29  ;;  %v2423_v54 = vrot.slane %v2368_v17, %v2075_v27 }
  0xd0   : > { %v430_v45 = vsel %vm424_vm5, %v2227_v51, %v413_v2  ;;  %v429_v60 = vsel %vm424_vm5, %v413_v2, %v2407_v37  ;;  %968 = vmatpush1.msra.mxu0 %v729_v44 }
  0xd1   : > { %v467_v6 = vmul.f32 %v2401_v0, %v430_v45  ;;  %v468_v28 = vmul.f32 %v2405_v36, %v429_v60  ;;  %3306 = vst [vmem:[#allocation18_spill] sm:$0xff] %v2423_v54  ;;  %v2437_v0 = vrot.slane %v2191_v24, %v2248_v63 }
  0xd3   : > { %v614_v46 = vpop.permute.xlu0 %613  ;;  %906 = vmatprep.subr.mxu1 %v468_v28  ;;  %v2425_v51 = vpop.permute.xlu1 %615  ;;  %3307 = vst [vmem:[#allocation19_spill] sm:$0xff] %v2437_v0  ;;  %v2441_v28 = vrot.slane %v2184_v22, %v2248_v63 }
  0xd4   : > { %v622_v2 = vsel %vm619_vm2, %v2250_v18, %v614_v46  ;;  %v621_v44 = vsel %vm619_vm2, %v614_v46, %v2425_v51  ;;  %907 = vmatpush1.msra.mxu1 %v467_v6 }
  0xd5   : > { %v664_v45 = vmul.f32 %v2419_v29, %v622_v2  ;;  %v665_v60 = vmul.f32 %v2423_v54, %v621_v44  ;;  %3308 = vst [vmem:[#allocation20_spill] sm:$0xff] %v2441_v28  ;;  %v2455_v29 = vrot.slane %v2363_v59, %v2113_v42 }
  0xd7   : > { %v348_v36 = vpop.permute.xlu0 %347  ;;  %969 = vmatprep.subr.mxu0 %v665_v60  ;;  %v2443_v18 = vpop.permute.xlu1 %349  ;;  %3309 = vst [vmem:[#allocation21_spill] sm:$0xff] %v2455_v29  ;;  %v2459_v60 = vrot.slane %v2368_v17, %v2113_v42 }
  0xd8   : > { %v365_v46 = vsel %vm359_vm6, %v2265_v40, %v348_v36  ;;  %v364_v6 = vsel %vm359_vm6, %v348_v36, %v2443_v18  ;;  %970 = vmatpush1.msra.mxu0 %v664_v45 }
  0xd9   : > { %v402_v2 = vmul.f32 %v2437_v0, %v365_v46  ;;  %v403_v44 = vmul.f32 %v2441_v28, %v364_v6  ;;  %3310 = vst [vmem:[#allocation22_spill] sm:$0xff] %v2459_v60  ;;  %v2473_v0 = vrot.slane %v2191_v24, %v2286_v21 }
  0xdb   : > { %v549_v54 = vpop.permute.xlu0 %548  ;;  %908 = vmatprep.subr.mxu1 %v403_v44  ;;  %v2461_v40 = vpop.permute.xlu1 %550  ;;  %3311 = vst [vmem:[#allocation23_spill] sm:$0xff] %v2473_v0  ;;  %v2477_v44 = vrot.slane %v2184_v22, %v2286_v21  ;;  %v2492_v22 = vld [vmem:[%s3239_s1 + $0x70] ss:$0 sm:$0xff] }
  0xdc   : > { %v557_v36 = vsel %vm554_vm3, %v2295_v31, %v549_v54  ;;  %v556_v45 = vsel %vm554_vm3, %v549_v54, %v2461_v40  ;;  %909 = vmatpush1.msra.mxu1 %v402_v2  ;;  %3312 = vst [vmem:[#allocation24_spill] sm:$0xff] %v2492_v22 }
  0xdd   : > { %v599_v46 = vmul.f32 %v2455_v29, %v557_v36  ;;  %v600_v6 = vmul.f32 %v2459_v60, %v556_v45  ;;  %v2508_v45 = vld [vmem:[%s3239_s1 + $0x38] sm:$0xff] }
  0xdf   : > { %v281_v28 = vpop.permute.xlu0 %280  ;;  %971 = vmatprep.subr.mxu0 %v600_v6  ;;  %v2479_v31 = vpop.permute.xlu1 %282 }
  0xe0   : > { %v300_v54 = vsel %vm294_vm7, %v2311_v61, %v281_v28  ;;  %v299_v2 = vsel %vm294_vm7, %v281_v28, %v2479_v31  ;;  %972 = vmatpush1.msra.mxu0 %v599_v46  ;;  %v2498_v61 = vld [vmem:[%s3239_s1 + $0x78] ss:$0 sm:$0xff]  ;;  %v2503_v28 = vld [vmem:[%s3239_s1 + $0x30] sm:$0xff] }
  0xe1   : > { %v337_v24 = vmul.f32 %v2473_v0, %v300_v54  ;;  %v338_v36 = vmul.f32 %v2477_v44, %v299_v2  ;;  %973 = vmatprep.subr.mxu0 %v1964_v7  ;;  %3313 = vst [vmem:[#allocation25_spill] sm:$0xff] %v2498_v61  ;;  %v2519_v2 = vrot.slane %v2368_v17, %v2143_v55 }
  0xe2   : > { %974 = vmatpush1.msra.mxu0 %v1916_v4 }
  0xe3   : > { %v748_v46 = vpop.permute.xlu0 %747  ;;  %910 = vmatprep.subr.mxu1 %v338_v36  ;;  %v482_v7 = vpop.permute.xlu1 %481  ;;  %3314 = vst [vmem:[#allocation26_spill] sm:$0xff] %v2519_v2  ;;  %v2527_v36 = vrot.slane %v2503_v28, %v2033_v14 }
  0xe4   : > { %v750_v6 = vsel %vm749_vm0, %v2340_v3, %v748_v46  ;;  %v757_v54 = vsel %vm749_vm0, %v748_v46, %v2025_v13  ;;  %911 = vmatpush1.msra.mxu1 %v337_v24  ;;  %v2531_v3 = vrot.slane %v2508_v45, %v2033_v14  ;;  %v2535_v13 = vrot.slane %v2363_v59, %v2143_v55 }
  0xe5   : > { %v796_v60 = vmul.f32 %v2492_v22, %v750_v6  ;;  %v797_v4 = vmul.f32 %v2498_v61, %v757_v54  ;;  %1778 = vmatmul.mubr.msk.f32.vlgmr.msra.gmra.mxu1 %vm805_vm8, %v2337_v39  ;;  %v493_v24 = vsel %vm489_vm4, %v2371_v16, %v482_v7  ;;  %v2554_v16 = vrot.slane %v2363_v59, %v2202_v33 }
  0xe6   : > { %3315 = vst [vmem:[#allocation27_spill] sm:$0xff] %v2535_v13  ;;  %1086 = vmatprep.mubr.f32.mxu1 %v3300_v49 }
  0xe7   : > { %v2541_v46 = vpop.permute.xlu0 %483  ;;  %1036 = vmatprep.subr.mxu1 %v797_v4  ;;  %v683_v6 = vpop.permute.xlu1 %682  ;;  %3316 = vst [vmem:[#allocation28_spill] sm:$0xff] %v2554_v16 }
  0xe8   : > { %v492_v54 = vsel %vm489_vm4, %v482_v7, %v2541_v46  ;;  %v685_v14 = vsel %vm684_vm1, %v2389_v19, %v683_v6  ;;  %v692_v29 = vsel %vm684_vm1, %v683_v6, %v2080_v30  ;;  %1037 = vmatpush1.msra.mxu1 %v796_v60  ;;  %v2561_v7 = vrot.slane %v2368_v17, %v2202_v33 }
  0xe9   : > { %v535_v4 = vmul.f32 %v2519_v2, %v492_v54  ;;  %v731_v22 = vmul.f32 %v2527_v36, %v685_v14  ;;  %v732_v61 = vmul.f32 %v2531_v3, %v692_v29  ;;  %v534_v19 = vmul.f32 %v2535_v13, %v493_v24 }
  0xea   : > { %3317 = vst [vmem:[#allocation29_spill] sm:$0xff] %v2561_v7  ;;  %v2573_v24 = vrot.slane %v2503_v28, %v2075_v27 }
  0xeb   : > { %v417_v0 = vpop.permute.xlu0 %416  ;;  %975 = vmatprep.subr.mxu0 %v535_v4  ;;  %1038 = vmatprep.subr.mxu1 %v732_v61  ;;  %v419_v30 = vpop.permute.xlu1 %418  ;;  %v2577_v61 = vrot.slane %v2508_v45, %v2075_v27  ;;  %v2587_v4 = vrot.slane %v2368_v17, %v2248_v63 }
  0xec   : > { %v428_v60 = vsel %vm424_vm5, %v2407_v37, %v417_v0  ;;  %v427_v6 = vsel %vm424_vm5, %v417_v0, %v419_v30  ;;  %976 = vmatpush1.msra.mxu0 %v534_v19  ;;  %1039 = vmatpush1.msra.mxu1 %v731_v22 }
  0xed   : > { %v469_v29 = vmul.f32 %v2554_v16, %v428_v60  ;;  %v470_v54 = vmul.f32 %v2561_v7, %v427_v6  ;;  %3318 = vst [vmem:[#allocation30_spill] sm:$0xff] %v2587_v4  ;;  %v2593_v60 = vrot.slane %v2503_v28, %v2113_v42 }
  0xef   : > { %v618_v14 = vpop.permute.xlu0 %617  ;;  %977 = vmatprep.subr.mxu0 %v470_v54  ;;  %v352_v37 = vpop.permute.xlu1 %351 }
  0xf0   : > { %v620_v0 = vsel %vm619_vm2, %v2425_v51, %v618_v14  ;;  %v627_v22 = vsel %vm619_vm2, %v618_v14, %v2115_v43  ;;  %978 = vmatpush1.msra.mxu0 %v469_v29  ;;  %v2597_v51 = vrot.slane %v2508_v45, %v2113_v42  ;;  %v2601_v43 = vrot.slane %v2363_v59, %v2248_v63 }
  0xf1   : > { %v666_v19 = vmul.f32 %v2573_v24, %v620_v0  ;;  %v667_v27 = vmul.f32 %v2577_v61, %v627_v22  ;;  %v363_v6 = vsel %vm359_vm6, %v2443_v18, %v352_v37  ;;  %v2616_v22 = vrot.slane %v2363_v59, %v2286_v21 }
  0xf2   : > { %3319 = vst [vmem:[#allocation31_spill] sm:$0xff] %v2601_v43 }
  0xf3   : > { %v354_v29 = vpop.permute.xlu0 %353  ;;  %1040 = vmatprep.subr.mxu1 %v667_v27  ;;  %v553_v54 = vpop.permute.xlu1 %552  ;;  %3320 = vst [vmem:[#allocation32_spill] sm:$0xff] %v2616_v22 }
  0xf4   : > { %v362_v14 = vsel %vm359_vm6, %v352_v37, %v354_v29  ;;  %v555_v0 = vsel %vm554_vm3, %v2461_v40, %v553_v54  ;;  %v562_v42 = vsel %vm554_vm3, %v553_v54, %v2132_v50  ;;  %1041 = vmatpush1.msra.mxu1 %v666_v19  ;;  %v2623_v37 = vrot.slane %v2368_v17, %v2286_v21 }
  0xf5   : > { %v405_v18 = vmul.f32 %v2587_v4, %v362_v14  ;;  %v601_v27 = vmul.f32 %v2593_v60, %v555_v0  ;;  %v602_v7 = vmul.f32 %v2597_v51, %v562_v42  ;;  %v404_v40 = vmul.f32 %v2601_v43, %v363_v6 }
  0xf6   : > { %3321 = vst [vmem:[#allocation33_spill] sm:$0xff] %v2623_v37  ;;  %v2635_v6 = vrot.slane %v2503_v28, %v2143_v55  ;;  %v2649_v14 = vrot.slane %v2508_v45, %v2202_v33 }
  0xf7   : > { %v285_v16 = vpop.permute.xlu0 %284  ;;  %979 = vmatprep.subr.mxu0 %v405_v18  ;;  %1042 = vmatprep.subr.mxu1 %v602_v7  ;;  %v287_v50 = vpop.permute.xlu1 %286  ;;  %v2639_v7 = vrot.slane %v2508_v45, %v2143_v55 }
  0xf8   : > { %v298_v59 = vsel %vm294_vm7, %v2479_v31, %v285_v16  ;;  %v297_v19 = vsel %vm294_vm7, %v285_v16, %v287_v50  ;;  %980 = vmatpush1.msra.mxu0 %v404_v40  ;;  %1043 = vmatpush1.msra.mxu1 %v601_v27  ;;  %3322 = vst [vmem:[#allocation34_spill] sm:$0xff] %v2635_v6  ;;  %3325 = vst [vmem:[#allocation37_spill] sm:$0xff] %v2649_v14 }
  0xf9   : > { %v339_v54 = vmul.f32 %v2616_v22, %v298_v59  ;;  %v340_v17 = vmul.f32 %v2623_v37, %v297_v19  ;;  %3323 = vst [vmem:[#allocation35_spill] sm:$0xff] %v2639_v7  ;;  %1044 = vmatprep.subr.mxu1 %v1927_v5  ;;  %v2644_v31 = vrot.slane %v2503_v28, %v2202_v33 }
  0xfa   : > { %1045 = vmatpush1.msra.mxu1 %v1967_v8  ;;  %v2683_v59 = vrot.slane %v2508_v45, %v2286_v21 }
  0xfb   : > { %3324 = vst [vmem:[#allocation36_spill] sm:$0xff] %v2644_v31  ;;  %v486_v16 = vpop.permute.xlu0 %485  ;;  %981 = vmatprep.subr.mxu0 %v340_v17  ;;  %v421_v0 = vpop.permute.xlu1 %420 }
  0xfc   : > { %v490_v55 = vsel %vm489_vm4, %v486_v16, %v2186_v1  ;;  %v491_v5 = vsel %vm489_vm4, %v2541_v46, %v486_v16  ;;  %v425_v42 = vsel %vm424_vm5, %v421_v0, %v2229_v52  ;;  %v426_v8 = vsel %vm424_vm5, %v419_v30, %v421_v0  ;;  %982 = vmatpush1.msra.mxu0 %v339_v54 }
  0xfd   : > { %v536_v33 = vmul.f32 %v2635_v6, %v491_v5  ;;  %v537_v18 = vmul.f32 %v2639_v7, %v490_v55  ;;  %1779 = vmatmul.mubr.msk.f32.vlgmr.msra.gmra.mxu0 %vm805_vm8, %v2337_v39  ;;  %v2668_v1 = vrot.slane %v2503_v28, %v2248_v63  ;;  %v2672_v46 = vrot.slane %v2508_v45, %v2248_v63 }
  0xfe   : > { %v471_v52 = vmul.f32 %v2644_v31, %v426_v8  ;;  %v2677_v30 = vrot.slane %v2503_v28, %v2286_v21  ;;  %1431 = vmatprep.mubr.f32.mxu0 %v3300_v49  ;;  %v472_v27 = vmul.f32 %v2649_v14, %v425_v42  ;;  %3329 = vst [vmem:[#allocation41_spill] sm:$0xff] %v2683_v59 }
  0xff   : > { %3326 = vst [vmem:[#allocation38_spill] sm:$0xff] %v2668_v1  ;;  %3327 = vst [vmem:[#allocation39_spill] sm:$0xff] %v2672_v46  ;;  %v356_v40 = vpop.permute.xlu0 %355  ;;  %1046 = vmatprep.subr.mxu1 %v537_v18  ;;  %v289_v19 = vpop.permute.xlu1 %288 }
 0x100   : > { %3328 = vst [vmem:[#allocation40_spill] sm:$0xff] %v2677_v30  ;;  %v360_v63 = vsel %vm359_vm6, %v356_v40, %v2275_v53  ;;  %v361_v54 = vsel %vm359_vm6, %v354_v29, %v356_v40  ;;  %v295_v28 = vsel %vm294_vm7, %v289_v19, %v2313_v11  ;;  %v296_v17 = vsel %vm294_vm7, %v287_v50, %v289_v19 }
 0x101   : > { %1047 = vmatpush1.msra.mxu1 %v536_v33  ;;  %v406_v16 = vmul.f32 %v2668_v1, %v361_v54  ;;  %v407_v21 = vmul.f32 %v2672_v46, %v360_v63  ;;  %v341_v45 = vmul.f32 %v2677_v30, %v296_v17  ;;  %v342_v53 = vmul.f32 %v2683_v59, %v295_v28 }
 0x102   : > { %1048 = vmatprep.subr.mxu1 %v472_v27 }
 0x103   : > { %1049 = vmatpush1.msra.mxu1 %v471_v52 }
 0x104   : > { %1050 = vmatprep.subr.mxu1 %v407_v21 }
 0x105   : > { %1051 = vmatpush1.msra.mxu1 %v406_v16 }
 0x106   : > { %1052 = vmatprep.subr.mxu1 %v342_v53 }
 0x107   : > { %1053 = vmatpush1.msra.mxu1 %v341_v45 }
 0x108   : > { %1780 = vmatmul.mubr.msk.f32.vlgmr.msra.gmra.mxu1 %vm805_vm8, %v2337_v39 }
 0x109   : > { %1502 = vmatprep.mubr.f32.mxu1 %v3300_v49 }
 0x10c   : > { %v2702_v11 = vpop.permute.xlu0 %802 }
 0x185   : > { %v875_v29 = vpop.f32.mrf.mxu0 }
 0x186   : > { %v876_v50 = vadd.f32 %v875_v29, %v2702_v11 }
 0x187   : > { %v877_v33 = vpop.f32.mrf.mxu0 }
 0x188   : > { %v2705_v0 = vmax.f32 %v876_v50, 0.0  ;;  %v878_v18 = vadd.f32 %v877_v33, %v2702_v11 }
 0x18a   : > { %1325 = vrot.lane.b32.xlu0 %v2705_v0, %s1817_s27  ;;  %v2748_v27 = vmax.f32 %v878_v18, 0.0 }
 0x1a5   : > { %v946_v55 = vpop.f32.mrf.mxu1 }
 0x1a6   : > { %v947_v5 = vadd.f32 %v946_v55, %v2702_v11 }
 0x1a7   : > { %v948_v39 = vpop.f32.mrf.mxu1 }
 0x1a8   : > { %v2710_v42 = vmax.f32 %v947_v5, 0.0  ;;  %v949_v8 = vadd.f32 %v948_v39, %v2702_v11  ;;  %v1358_v39 = vld [vmem:[%s3243_s5] sm:$0x3] }
 0x1aa   : > { %1297 = vrot.lane.b32.xlu0 %v2710_v42, %s1818_s28  ;;  %1329 = vrot.lane.b32.xlu1 %v2710_v42, %s1817_s27  ;;  %v2742_v52 = vmax.f32 %v949_v8, 0.0 }
 0x1ae   : > { %1261 = vrot.lane.b32.xlu0 %v2705_v0, %s1819_s29  ;;  %1293 = vrot.lane.b32.xlu1 %v2705_v0, %s1818_s28 }
 0x1b2   : > { %1233 = vrot.lane.b32.xlu0 %v2710_v42, %s1820_s30  ;;  %1265 = vrot.lane.b32.xlu1 %v2710_v42, %s1819_s29 }
 0x1b6   : > { %1197 = vrot.lane.b32.xlu0 %v2705_v0, %s1821_s7  ;;  %1229 = vrot.lane.b32.xlu1 %v2705_v0, %s1820_s30 }
 0x1ba   : > { %1201 = vrot.lane.b32.xlu0 %v2710_v42, %s1821_s7  ;;  %1165 = vrot.lane.b32.xlu1 %v2705_v0, %s1822_s8 }
 0x1bd   : > { %v1017_v40 = vpop.f32.mrf.mxu0 }
 0x1be   : > { %1133 = vrot.lane.b32.xlu0 %v2705_v0, %s1823_s9  ;;  %1169 = vrot.lane.b32.xlu1 %v2710_v42, %s1822_s8  ;;  %v1018_v19 = vadd.f32 %v1017_v40, %v2702_v11 }
 0x1bf   : > { %v1019_v53 = vpop.f32.mrf.mxu0 }
 0x1c0   : > { %v2775_v63 = vmax.f32 %v1018_v19, 0.0  ;;  %v1020_v29 = vadd.f32 %v1019_v53, %v2702_v11 }
 0x1c2   : > { %1137 = vrot.lane.b32.xlu0 %v2710_v42, %s1823_s9  ;;  %1101 = vrot.lane.b32.xlu1 %v2705_v0, %s1825_s10  ;;  %v2820_v50 = vmax.f32 %v1020_v29, 0.0 }
 0x1c6   : > { %1331 = vrot.lane.b32.xlu0 %v2742_v52, %s1817_s27  ;;  %1105 = vrot.lane.b32.xlu1 %v2710_v42, %s1825_s10 }
 0x1c8   : > { %v1088_v54 = vpop.f32.mrf.mxu1 }
 0x1c9   : > { %v1089_v28 = vadd.f32 %v1088_v54, %v2702_v11 }
 0x1ca   : > { %1263 = vrot.lane.b32.xlu0 %v2748_v27, %s1819_s29  ;;  %1327 = vrot.lane.b32.xlu1 %v2748_v27, %s1817_s27  ;;  %v1090_v16 = vpop.f32.mrf.mxu1 }
 0x1cb   : > { %v2786_v17 = vmax.f32 %v1089_v28, 0.0  ;;  %v1091_v21 = vadd.f32 %v1090_v16, %v2702_v11 }
 0x1cd   : > { %3330 = vst [vmem:[#allocation42_spill] sm:$0xff] %v2786_v17  ;;  %v2809_v45 = vmax.f32 %v1091_v21, 0.0 }
 0x1ce   : > { %1267 = vrot.lane.b32.xlu0 %v2742_v52, %s1819_s29  ;;  %1295 = vrot.lane.b32.xlu1 %v2748_v27, %s1818_s28 }
 0x1cf   : > { %3331 = vst [vmem:[#allocation43_spill] sm:$0xff] %v2809_v45 }
 0x1d2   : > { %1167 = vrot.lane.b32.xlu0 %v2748_v27, %s1822_s8  ;;  %1299 = vrot.lane.b32.xlu1 %v2742_v52, %s1818_s28 }
 0x1d6   : > { %1171 = vrot.lane.b32.xlu0 %v2742_v52, %s1822_s8  ;;  %1231 = vrot.lane.b32.xlu1 %v2748_v27, %s1820_s30 }
 0x1da   : > { %1103 = vrot.lane.b32.xlu0 %v2748_v27, %s1825_s10  ;;  %1235 = vrot.lane.b32.xlu1 %v2742_v52, %s1820_s30 }
 0x1de   : > { %1107 = vrot.lane.b32.xlu0 %v2742_v52, %s1825_s10  ;;  %1199 = vrot.lane.b32.xlu1 %v2748_v27, %s1821_s7 }
 0x1e2   : > { %1203 = vrot.lane.b32.xlu1 %v2742_v52, %s1821_s7  ;;  %1301 = vrot.lane.b32.xlu0 %v2775_v63, %s1818_s28 }
 0x1e6   : > { %1135 = vrot.lane.b32.xlu1 %v2748_v27, %s1823_s9  ;;  %1237 = vrot.lane.b32.xlu0 %v2775_v63, %s1820_s30 }
 0x1ea   : > { %1139 = vrot.lane.b32.xlu1 %v2742_v52, %s1823_s9  ;;  %1305 = vrot.lane.b32.xlu0 %v2786_v17, %s1818_s28 }
 0x1ee   : > { %1333 = vrot.lane.b32.xlu1 %v2775_v63, %s1817_s27  ;;  %1241 = vrot.lane.b32.xlu0 %v2786_v17, %s1820_s30 }
 0x1f2   : > { %1269 = vrot.lane.b32.xlu1 %v2775_v63, %s1819_s29  ;;  %1205 = vrot.lane.b32.xlu0 %v2775_v63, %s1821_s7 }
 0x1f6   : > { %1209 = vrot.lane.b32.xlu0 %v2786_v17, %s1821_s7  ;;  %1337 = vrot.lane.b32.xlu1 %v2786_v17, %s1817_s27 }
 0x1fa   : > { %1141 = vrot.lane.b32.xlu0 %v2775_v63, %s1823_s9  ;;  %1273 = vrot.lane.b32.xlu1 %v2786_v17, %s1819_s29 }
 0x1fc   : > { %v2842_v11 = vpop.permute.xlu0 %1325 }
 0x1fe   : > { %1211 = vrot.lane.b32.xlu0 %v2809_v45, %s1821_s7  ;;  %1173 = vrot.lane.b32.xlu1 %v2775_v63, %s1822_s8 }
 0x202   : > { %1147 = vrot.lane.b32.xlu0 %v2809_v45, %s1823_s9  ;;  %1177 = vrot.lane.b32.xlu1 %v2786_v17, %s1822_s8 }
 0x206   : > { %1335 = vrot.lane.b32.xlu0 %v2820_v50, %s1817_s27  ;;  %1179 = vrot.lane.b32.xlu1 %v2809_v45, %s1822_s8 }
 0x20a   : > { %1339 = vrot.lane.b32.xlu0 %v2809_v45, %s1817_s27  ;;  %1115 = vrot.lane.b32.xlu1 %v2809_v45, %s1825_s10 }
 0x20e   : > { %1271 = vrot.lane.b32.xlu0 %v2820_v50, %s1819_s29  ;;  %1303 = vrot.lane.b32.xlu1 %v2820_v50, %s1818_s28 }
 0x212   : > { %1275 = vrot.lane.b32.xlu0 %v2809_v45, %s1819_s29  ;;  %1307 = vrot.lane.b32.xlu1 %v2809_v45, %s1818_s28 }
 0x216   : > { %1145 = vrot.lane.b32.xlu0 %v2786_v17, %s1823_s9  ;;  %1109 = vrot.lane.b32.xlu1 %v2775_v63, %s1825_s10 }
 0x21a   : > { %1175 = vrot.lane.b32.xlu0 %v2820_v50, %s1822_s8  ;;  %1239 = vrot.lane.b32.xlu1 %v2820_v50, %s1820_s30 }
 0x21c   : > { %v2848_v55 = vpop.permute.xlu0 %1297  ;;  %v2850_v5 = vpop.permute.xlu1 %1329 }
 0x21e   : > { %1111 = vrot.lane.b32.xlu0 %v2820_v50, %s1825_s10  ;;  %1243 = vrot.lane.b32.xlu1 %v2809_v45, %s1820_s30 }
 0x220   : > { %v2859_v8 = vpop.permute.xlu0 %1261  ;;  %v2861_v33 = vpop.permute.xlu1 %1293 }
 0x222   : > { %1361 = vperm.xlu0 %1808, %v1358_v39   ;;  %1207 = vrot.lane.b32.xlu1 %v2820_v50, %s1821_s7  ;;  %s1788_s7 = sshll.u32 %s3375_s22, 4 }
 0x224   : > { %v2865_v18 = vpop.permute.xlu0 %1233  ;;  %v2867_v40 = vpop.permute.xlu1 %1265 }
 0x226   : > { %1143 = vrot.lane.b32.xlu1 %v2820_v50, %s1823_s9 }
 0x228   : > { %v2871_v19 = vpop.permute.xlu0 %1197  ;;  %v2873_v54 = vpop.permute.xlu1 %1229 }
 0x22a   : > { %1113 = vrot.lane.b32.xlu1 %v2786_v17, %s1825_s10  ;;  %s251_s10 = scalar_lea.vmem %s3244_s6, %s1788_s7 }
 0x22c   : > { %v2877_v28 = vpop.permute.xlu0 %1201  ;;  %v2879_v16 = vpop.permute.xlu1 %1165 }
 0x230   : > { %v2881_v21 = vpop.permute.xlu0 %1133  ;;  %v2883_v53 = vpop.permute.xlu1 %1169 }
 0x234   : > { %v2885_v29 = vpop.permute.xlu0 %1137  ;;  %v2887_v39 = vpop.permute.xlu1 %1101 }
 0x238   : > { %v1332_v59 = vpop.permute.xlu0 %1331  ;;  %v2889_v30 = vpop.permute.xlu1 %1105 }
 0x23c   : > { %v1264_v22 = vpop.permute.xlu0 %1263  ;;  %v1328_v37 = vpop.permute.xlu1 %1327 }
 0x23d   : > { %v1346_v43 = vsel %vm749_vm0, %v1328_v37, %v2850_v5  ;;  %v1347_v1 = vsel %vm749_vm0, %v2842_v11, %v1328_v37  ;;  %v1282_v14 = vsel %vm619_vm2, %v1264_v22, %v2867_v40 }
 0x23e   : > { %v1349_v4 = vmul.f32 %v2053_v20, %v1347_v1  ;;  %v1350_v46 = vmul.f32 %v2038_v15, %v1346_v43  ;;  %v1283_v15 = vsel %vm619_vm2, %v2859_v8, %v1264_v22  ;;  %v1286_v37 = vmul.f32 %v1282_v14, %v2097_v35 }
 0x23f   : > { %v1285_v2 = vmul.f32 %v1283_v15, %v2110_v41 }
 0x240   : > { %v1268_v31 = vpop.permute.xlu0 %1267  ;;  %1381 = vmatprep.subr.mxu0 %v1350_v46  ;;  %v1296_v17 = vpop.permute.xlu1 %1295 }
 0x241   : > { %v1314_v45 = vsel %vm684_vm1, %v1296_v17, %v2848_v55  ;;  %v1315_v6 = vsel %vm684_vm1, %v2861_v33, %v1296_v17  ;;  %1382 = vmatpush1.msra.mxu0 %v1349_v4 }
 0x242   : > { %v1317_v20 = vmul.f32 %v1315_v6, %v2072_v26  ;;  %v1318_v43 = vmul.f32 %v1314_v45, %v2068_v25 }
 0x244   : > { %v2914_v1 = vpop.permute.xlu0 %1167  ;;  %1383 = vmatprep.subr.mxu0 %v1318_v43  ;;  %v1300_v46 = vpop.permute.xlu1 %1299 }
 0x245   : > { %1384 = vmatpush1.msra.mxu0 %v1317_v20 }
 0x246   : > { %1385 = vmatprep.subr.mxu0 %v1286_v37  ;;  %v1345_v37 = vsel %vm749_vm0, %v2850_v5, %v1332_v59 }
 0x247   : > { %1386 = vmatpush1.msra.mxu0 %v1285_v2  ;;  %v1351_v5 = vmul.f32 %v2153_v57, %v1345_v37 }
 0x248   : > { %v2917_v4 = vpop.permute.xlu0 %1171  ;;  %v1232_v17 = vpop.permute.xlu1 %1231 }
 0x249   : > { %v1250_v26 = vsel %vm554_vm3, %v1232_v17, %v2865_v18  ;;  %v1251_v25 = vsel %vm554_vm3, %v2873_v54, %v1232_v17 }
 0x24a   : > { %v1253_v35 = vmul.f32 %v1251_v25, %v2128_v48  ;;  %v1254_v22 = vmul.f32 %v1250_v26, %v2124_v47 }
 0x24c   : > { %v2927_v6 = vpop.permute.xlu0 %1103  ;;  %1387 = vmatprep.subr.mxu0 %v1254_v22  ;;  %v1236_v41 = vpop.permute.xlu1 %1235 }
 0x24d   : > { %1388 = vmatpush1.msra.mxu0 %v1253_v35  ;;  %v1313_v35 = vsel %vm684_vm1, %v2848_v55, %v1300_v46  ;;  %v1249_v57 = vsel %vm554_vm3, %v2865_v18, %v1236_v41 }
 0x24e   : > { %1389 = vmatprep.subr.mxu0 %v2748_v27 }
 0x24f   : > { %1390 = vmatpush1.msra.mxu0 %v2705_v0 }
 0x250   : > { %v2931_v2 = vpop.permute.xlu0 %1107  ;;  %v1200_v14 = vpop.permute.xlu1 %1199 }
 0x251   : > { %v1219_v45 = vsel %vm489_vm4, %v2871_v19, %v1200_v14 }
 0x252   : > { %v1222_v48 = vmul.f32 %v1219_v45, %v2168_v9  ;;  %v1281_v45 = vsel %vm619_vm2, %v2867_v40, %v1268_v31 }
 0x253   : > { %v1287_v40 = vmul.f32 %v1281_v45, %v2245_v62  ;;  %v1185_v62 = vsel %vm424_vm5, %v2883_v53, %v2917_v4  ;;  %v1122_v45 = vsel %vm294_vm7, %v2927_v6, %v2889_v30 }
 0x254   : > { %v2937_v15 = vpop.permute.xlu0 %1301  ;;  %1391 = vmatprep.subr.mxu0 %v1222_v48  ;;  %v2939_v47 = vpop.permute.xlu1 %1203 }
 0x255   : > { %v1312_v26 = vsel %vm684_vm1, %v1300_v46, %v2937_v15 }
 0x256   : > { %v1320_v48 = vmul.f32 %v1312_v26, %v2199_v32  ;;  %v1255_v26 = vmul.f32 %v1249_v57, %v2290_v23 }
 0x258   : > { %v2941_v20 = vpop.permute.xlu0 %1237  ;;  %v2943_v43 = vpop.permute.xlu1 %1135 }
 0x259   : > { %v1248_v55 = vsel %vm554_vm3, %v1236_v41, %v2941_v20 }
 0x25c   : > { %v2945_v27 = vpop.permute.xlu0 %1305  ;;  %v2947_v0 = vpop.permute.xlu1 %1139 }
 0x260   : > { %v2952_v17 = vpop.permute.xlu0 %1241  ;;  %v2954_v9 = vpop.permute.xlu1 %1333 }
 0x261   : > { %v1344_v25 = vsel %vm749_vm0, %v1332_v59, %v2954_v9  ;;  %v1319_v59 = vmul.f32 %v1313_v35, %v2206_v34  ;;  %v1256_v34 = vmul.f32 %v1248_v55, %v2283_v12  ;;  %v1186_v12 = vsel %vm424_vm5, %v2914_v1, %v2883_v53  ;;  %v3333_v35 = vld [vmem:[#allocation16_spill] sm:$0xff] }
 0x262   : > { %v1352_v22 = vmul.f32 %v2148_v56, %v1344_v25  ;;  %v1153_v25 = vsel %vm359_vm6, %v2885_v29, %v2947_v0 }
 0x264   : > { %v2971_v7 = vpop.permute.xlu0 %1205  ;;  %1452 = vmatprep.subr.mxu1 %v1352_v22  ;;  %v2973_v13 = vpop.permute.xlu1 %1269  ;;  %v1192_v22 = vmul.f32 %v1185_v62, %v3333_v35  ;;  %v3053_v62 = vld [vmem:[%s3242_s4] sm:$0x3] }
 0x265   : > { %v1280_v56 = vsel %vm619_vm2, %v1268_v31, %v2973_v13  ;;  %1453 = vmatpush1.msra.mxu1 %v1351_v5  ;;  %v1217_v31 = vsel %vm489_vm4, %v2877_v28, %v2939_v47  ;;  %v1121_v5 = vsel %vm294_vm7, %v2889_v30, %v2931_v2  ;;  %v3338_v30 = vld [vmem:[#allocation4_spill] sm:$0xff] }
 0x266   : > { %v1288_v32 = vmul.f32 %v1280_v56, %v2239_v58  ;;  %1454 = vmatprep.subr.mxu1 %v1320_v48  ;;  %v1218_v58 = vsel %vm489_vm4, %v1200_v14, %v2877_v28  ;;  %v1224_v23 = vmul.f32 %v1217_v31, %v2356_v38  ;;  %v3332_v28 = vld [vmem:[#allocation12_spill] sm:$0xff]  ;;  %v1154_v38 = vsel %vm359_vm6, %v2943_v43, %v2885_v29  ;;  %v3336_v56 = vld [vmem:[#allocation19_spill] sm:$0xff] }
 0x267   : > { %1455 = vmatpush1.msra.mxu1 %v1319_v59  ;;  %v1223_v14 = vmul.f32 %v1218_v58, %v3332_v28  ;;  %v3335_v29 = vld [vmem:[#allocation20_spill] sm:$0xff]  ;;  %v1159_v57 = vmul.f32 %v1154_v38, %v3336_v56  ;;  %v3339_v31 = vld [vmem:[#allocation23_spill] sm:$0xff]  ;;  %v3341_v38 = vld [vmem:[#allocation6_spill] sm:$0xff] }
 0x268   : > { %v2988_v46 = vpop.permute.xlu0 %1209  ;;  %1456 = vmatprep.subr.mxu1 %v1288_v32  ;;  %v1338_v37 = vpop.permute.xlu1 %1337  ;;  %v1160_v48 = vmul.f32 %v1153_v25, %v3335_v29  ;;  %v1127_v58 = vmul.f32 %v1122_v45, %v3339_v31 }
 0x269   : > { %1457 = vmatpush1.msra.mxu1 %v1287_v40  ;;  %v3337_v40 = vld [vmem:[#allocation3_spill] sm:$0xff] }
 0x26a   : > { %1458 = vmatprep.subr.mxu1 %v1256_v34 }
 0x26b   : > { %1459 = vmatpush1.msra.mxu1 %v1255_v26 }
 0x26c   : > { %v3007_v18 = vpop.permute.xlu0 %1141  ;;  %1460 = vmatprep.subr.mxu1 %v2742_v52  ;;  %v3010_v41 = vpop.permute.xlu1 %1273  ;;  %v3334_v52 = vld [vmem:[#allocation15_spill] sm:$0xff] }
 0x26d   : > { %1461 = vmatpush1.msra.mxu1 %v2710_v42  ;;  %v1191_v53 = vmul.f32 %v1186_v12, %v3334_v52  ;;  %v1187_v42 = vsel %vm424_vm5, %v2879_v16, %v2914_v1  ;;  %v1128_v1 = vmul.f32 %v1121_v5, %v2477_v44  ;;  %v1155_v44 = vsel %vm359_vm6, %v2881_v21, %v2943_v43 }
 0x26e   : > { %1462 = vmatprep.subr.mxu1 %v1224_v23  ;;  %v1190_v26 = vmul.f32 %v1187_v42, %v3338_v30  ;;  %v1158_v52 = vmul.f32 %v1155_v44, %v3341_v38  ;;  %v3343_v42 = vld [vmem:[#allocation7_spill] sm:$0xff] }
 0x26f   : > { %1463 = vmatpush1.msra.mxu1 %v1223_v14  ;;  %v1123_v14 = vsel %vm294_vm7, %v2887_v39, %v2927_v6 }
 0x270   : > { %v3037_v59 = vpop.permute.xlu0 %1211  ;;  %1464 = vmatprep.subr.mxu1 %v1192_v22  ;;  %v3039_v55 = vpop.permute.xlu1 %1173  ;;  %v3340_v22 = vld [vmem:[#allocation5_spill] sm:$0xff] }
 0x271   : > { %v1220_v32 = vsel %vm489_vm4, %v3037_v59, %v2871_v19  ;;  %1465 = vmatpush1.msra.mxu1 %v1191_v53  ;;  %v3342_v53 = vld [vmem:[#allocation8_spill] sm:$0xff] }
 0x272   : > { %v1221_v34 = vmul.f32 %v1220_v32, %v3337_v40  ;;  %1466 = vmatprep.subr.mxu1 %v1160_v48  ;;  %v1126_v5 = vmul.f32 %v1123_v14, %v3342_v53  ;;  %v3344_v32 = vld [vmem:[#allocation25_spill] sm:$0xff] }
 0x273   : > { %1467 = vmatpush1.msra.mxu1 %v1159_v57  ;;  %v3345_v40 = vld [vmem:[#allocation9_spill] sm:$0xff] }
 0x274   : > { %v3055_v12 = vpop.permute.xlu0 %1147  ;;  %1392 = vmatpush1.msra.mxu0 %v1221_v34  ;;  %1468 = vmatprep.subr.mxu1 %v1128_v1  ;;  %v3057_v19 = vpop.permute.xlu1 %1177 }
 0x275   : > { %1393 = vmatprep.subr.mxu0 %v1190_v26  ;;  %1469 = vmatpush1.msra.mxu1 %v1127_v58  ;;  %v1156_v25 = vsel %vm359_vm6, %v3055_v12, %v2881_v21  ;;  %v3347_v26 = vld [vmem:[#allocation11_spill] sm:$0xff] }
 0x276   : > { %1782 = vmatmul.mubr.msk.f32.vlgmr.msra.gmra.mxu1 %vm805_vm8, %v3053_v62  ;;  %v1157_v45 = vmul.f32 %v1156_v25, %v3343_v42 }
 0x277   : > { %1644 = vmatprep.mubr.f32.mxu1 %v3300_v49 }
 0x278   : > { %v1336_v23 = vpop.permute.xlu0 %1335  ;;  %v3066_v28 = vpop.permute.xlu1 %1179 }
 0x279   : > { %v1188_v35 = vsel %vm424_vm5, %v3066_v28, %v2879_v16  ;;  %v1342_v21 = vsel %vm749_vm0, %v1336_v23, %v1338_v37  ;;  %v1343_v57 = vsel %vm749_vm0, %v2954_v9, %v1336_v23 }
 0x27a   : > { %v1189_v43 = vmul.f32 %v1188_v35, %v3340_v22  ;;  %v3349_v35 = vld [vmem:[#allocation13_spill] sm:$0xff] }
 0x27c   : > { %v1340_v29 = vpop.permute.xlu0 %1339  ;;  %1394 = vmatpush1.msra.mxu0 %v1189_v43  ;;  %v3084_v6 = vpop.permute.xlu1 %1115  ;;  %v3350_v43 = vld [vmem:[#allocation14_spill] sm:$0xff] }
 0x27d   : > { %v1341_v48 = vsel %vm749_vm0, %v1338_v37, %v1340_v29  ;;  %v1348_v16 = vsel %vm749_vm0, %v1340_v29, %v2842_v11  ;;  %v1124_v56 = vsel %vm294_vm7, %v3084_v6, %v2887_v39  ;;  %1395 = vmatprep.subr.mxu0 %v1158_v52  ;;  %v3346_v37 = vld [vmem:[#allocation24_spill] sm:$0xff]  ;;  %v1354_v11 = vmul.f32 %v3347_v26, %v1342_v21  ;;  %v3348_v39 = vld [vmem:[#allocation10_spill] sm:$0xff] }
 0x27e   : > { %v1356_v1 = vmul.f32 %v3344_v32, %v1348_v16  ;;  %v1125_v34 = vmul.f32 %v1124_v56, %v3345_v40  ;;  %1396 = vmatpush1.msra.mxu0 %v1157_v45  ;;  %v1355_v30 = vmul.f32 %v3346_v37, %v1341_v48  ;;  %v1353_v44 = vmul.f32 %v3348_v39, %v1343_v57  ;;  %v3351_v52 = vld [vmem:[#allocation18_spill] sm:$0xff] }
 0x27f   : > { %1397 = vmatprep.subr.mxu0 %v1126_v5  ;;  %v1216_v26 = vsel %vm489_vm4, %v2939_v47, %v2971_v7  ;;  %v3357_v39 = vld [vmem:[#allocation26_spill] sm:$0xff] }
 0x280   : > { %v1272_v31 = vpop.permute.xlu0 %1271  ;;  %1398 = vmatpush1.msra.mxu0 %v1125_v34  ;;  %1594 = vmatprep.subr.mxu1 %v1356_v1  ;;  %v1304_v58 = vpop.permute.xlu1 %1303 }
 0x281   : > { %v1278_v9 = vsel %vm619_vm2, %v1272_v31, %v3010_v41  ;;  %v1310_v23 = vsel %vm684_vm1, %v1304_v58, %v2945_v27  ;;  %v1311_v14 = vsel %vm684_vm1, %v2937_v15, %v1304_v58  ;;  %1781 = vmatmul.mubr.msk.f32.vlgmr.msra.gmra.mxu0 %vm805_vm8, %v3053_v62  ;;  %v1279_v25 = vsel %vm619_vm2, %v2973_v13, %v1272_v31  ;;  %v3352_v15 = vld [vmem:[#allocation17_spill] sm:$0xff] }
 0x282   : > { %v1321_v22 = vmul.f32 %v1311_v14, %v3349_v35  ;;  %v1322_v38 = vmul.f32 %v1310_v23, %v3350_v43  ;;  %1523 = vmatprep.subr.mxu0 %v1354_v11  ;;  %1595 = vmatpush1.msra.mxu1 %v1355_v30  ;;  %v1290_v53 = vmul.f32 %v1278_v9, %v3351_v52  ;;  %v3356_v11 = vld [vmem:[#allocation35_spill] sm:$0xff] }
 0x283   : > { %1524 = vmatpush1.msra.mxu0 %v1353_v44  ;;  %1573 = vmatprep.mubr.f32.mxu0 %v3300_v49  ;;  %v1289_v45 = vmul.f32 %v1279_v25, %v3352_v15  ;;  %v3358_v44 = vld [vmem:[#allocation34_spill] sm:$0xff]  ;;  %v3359_v23 = vld [vmem:[#allocation43_spill] sm:$0xff] }
 0x284   : > { %v1276_v5 = vpop.permute.xlu0 %1275  ;;  %1525 = vmatprep.subr.mxu0 %v1322_v38  ;;  %v1308_v42 = vpop.permute.xlu1 %1307  ;;  %v3363_v38 = vld [vmem:[#allocation29_spill] sm:$0xff] }
 0x285   : > { %v1284_v13 = vsel %vm619_vm2, %v1276_v5, %v2859_v8  ;;  %v1309_v29 = vsel %vm684_vm1, %v2945_v27, %v1308_v42  ;;  %v1316_v21 = vsel %vm684_vm1, %v1308_v42, %v2861_v33  ;;  %1526 = vmatpush1.msra.mxu0 %v1321_v22  ;;  %v1277_v48 = vsel %vm619_vm2, %v3010_v41, %v1276_v5  ;;  %v3362_v22 = vld [vmem:[#allocation42_spill] sm:$0xff] }
 0x286   : > { %v1323_v49 = vmul.f32 %v1309_v29, %v2527_v36  ;;  %v1324_v16 = vmul.f32 %v1316_v21, %v2531_v3  ;;  %1527 = vmatprep.subr.mxu0 %v1290_v53  ;;  %v1292_v8 = vmul.f32 %v1284_v13, %v2577_v61  ;;  %v1291_v27 = vmul.f32 %v1277_v48, %v2573_v24  ;;  %v3353_v3 = vld [vmem:[#allocation21_spill] sm:$0xff]  ;;  %v3354_v61 = vld [vmem:[#allocation22_spill] sm:$0xff]  ;;  %v3364_v53 = vld [vmem:[#allocation36_spill] sm:$0xff] }
 0x287   : > { %1528 = vmatpush1.msra.mxu0 %v1289_v45  ;;  %v3366_v13 = vld [vmem:[#allocation30_spill] sm:$0xff] }
 0x288   : > { %1596 = vmatprep.subr.mxu1 %v1324_v16  ;;  %v1110_v56 = vpop.permute.xlu1 %1109  ;;  %v1146_v57 = vpop.permute.xlu0 %1145  ;;  %v3367_v21 = vld [vmem:[#allocation38_spill] sm:$0xff] }
 0x289   : > { %1597 = vmatpush1.msra.mxu1 %v1323_v49  ;;  %v1149_v35 = vsel %vm359_vm6, %v1146_v57, %v3055_v12  ;;  %v1120_v43 = vsel %vm294_vm7, %v2931_v2, %v1110_v56  ;;  %v3365_v2 = vld [vmem:[#allocation39_spill] sm:$0xff] }
 0x28a   : > { %1598 = vmatprep.subr.mxu1 %v1292_v8  ;;  %v1164_v45 = vmul.f32 %v1149_v35, %v3365_v2  ;;  %v3368_v49 = vld [vmem:[#allocation31_spill] sm:$0xff]  ;;  %v3369_v8 = vld [vmem:[#allocation33_spill] sm:$0xff] }
 0x28b   : > { %1599 = vmatpush1.msra.mxu1 %v1291_v27 }
 0x28c   : > { %v1240_v33 = vpop.permute.xlu1 %1239  ;;  %v1176_v40 = vpop.permute.xlu0 %1175 }
 0x28d   : > { %v1246_v41 = vsel %vm554_vm3, %v1240_v33, %v2952_v17  ;;  %v1247_v36 = vsel %vm554_vm3, %v2941_v20, %v1240_v33 }
 0x28e   : > { %v1257_v32 = vmul.f32 %v1247_v36, %v3353_v3  ;;  %v1258_v1 = vmul.f32 %v1246_v41, %v3354_v61  ;;  %v3371_v36 = vld [vmem:[#allocation40_spill] sm:$0xff] }
 0x290   : > { %1529 = vmatprep.subr.mxu0 %v1258_v1  ;;  %v1244_v24 = vpop.permute.xlu1 %1243  ;;  %v1112_v58 = vpop.permute.xlu0 %1111 }
 0x291   : > { %v1245_v34 = vsel %vm554_vm3, %v2952_v17, %v1244_v24  ;;  %v1252_v37 = vsel %vm554_vm3, %v1244_v24, %v2873_v54  ;;  %1530 = vmatpush1.msra.mxu0 %v1257_v32  ;;  %v1213_v17 = vsel %vm489_vm4, %v2988_v46, %v3037_v59  ;;  %v1182_v54 = vsel %vm424_vm5, %v1176_v40, %v3057_v19  ;;  %v3355_v59 = vld [vmem:[#allocation27_spill] sm:$0xff]  ;;  %v3372_v32 = vld [vmem:[#allocation41_spill] sm:$0xff] }
 0x292   : > { %v1259_v30 = vmul.f32 %v1245_v34, %v2593_v60  ;;  %v1260_v20 = vmul.f32 %v1252_v37, %v2597_v51  ;;  %1531 = vmatprep.subr.mxu0 %v2820_v50  ;;  %v1184_v60 = vsel %vm424_vm5, %v2917_v4, %v3039_v55  ;;  %v1181_v51 = vsel %vm424_vm5, %v3057_v19, %v3066_v28 }
 0x293   : > { %1532 = vmatpush1.msra.mxu0 %v2775_v63  ;;  %v1183_v63 = vsel %vm424_vm5, %v3039_v55, %v1176_v40  ;;  %v1225_v28 = vmul.f32 %v1216_v26, %v3355_v59  ;;  %v1228_v31 = vmul.f32 %v1213_v17, %v3356_v11  ;;  %v3360_v55 = vld [vmem:[#allocation28_spill] sm:$0xff]  ;;  %v1195_v5 = vmul.f32 %v1182_v54, %v3364_v53 }
 0x294   : > { %1600 = vmatprep.subr.mxu1 %v1260_v20  ;;  %v1208_v50 = vpop.permute.xlu1 %1207  ;;  %v1193_v14 = vmul.f32 %v1184_v60, %v3360_v55  ;;  %v1194_v52 = vmul.f32 %v1183_v63, %v3363_v38  ;;  %v1119_v42 = vsel %vm294_vm7, %v1110_v56, %v1112_v58  ;;  %v1827_v24 = vmov 1983009808   ;;  %v3373_v63 = vld [vmem:[#allocation2_spill] sm:$0xff] }
 0x295   : > { %v1214_v47 = vsel %vm489_vm4, %v1208_v50, %v2988_v46  ;;  %v1215_v4 = vsel %vm489_vm4, %v2971_v7, %v1208_v50  ;;  %1601 = vmatpush1.msra.mxu1 %v1259_v30  ;;  %v1152_v46 = vsel %vm359_vm6, %v2947_v0, %v3007_v18  ;;  %v3361_v7 = vld [vmem:[#allocation37_spill] sm:$0xff]  ;;  %v1130_v56 = vmul.f32 %v1119_v42, %v3369_v8 }
 0x296   : > { %v1226_v19 = vmul.f32 %v1215_v4, %v3357_v39  ;;  %v1227_v9 = vmul.f32 %v1214_v47, %v3358_v44  ;;  %1602 = vmatprep.subr.mxu1 %v3359_v23  ;;  %v1196_v25 = vmul.f32 %v1181_v51, %v3361_v7  ;;  %v1161_v16 = vmul.f32 %v1152_v46, %v3368_v49 }
 0x297   : > { %1603 = vmatpush1.msra.mxu1 %v3362_v22  ;;  %v1670_v34 = vunpack.c.l.s4 %v1827_v24 }
 0x298   : > { %1533 = vmatprep.subr.mxu0 %v1226_v19  ;;  %1604 = vmatprep.subr.mxu1 %v1228_v31  ;;  %v1144_v0 = vpop.permute.xlu1 %1143 }
 0x299   : > { %v1150_v15 = vsel %vm359_vm6, %v1144_v0, %v1146_v57  ;;  %v1151_v12 = vsel %vm359_vm6, %v3007_v18, %v1144_v0  ;;  %1534 = vmatpush1.msra.mxu0 %v1225_v28  ;;  %1605 = vmatpush1.msra.mxu1 %v1227_v9  ;;  %v3370_v18 = vld [vmem:[#allocation32_spill] sm:$0xff]  ;;  %v1671_v26 = vunpack.c.0.s8 %v1670_v34 }
 0x29a   : > { %v1162_v29 = vmul.f32 %v1151_v12, %v3366_v13  ;;  %v1163_v48 = vmul.f32 %v1150_v15, %v3367_v21  ;;  %1535 = vmatprep.subr.mxu0 %v1194_v52  ;;  %1606 = vmatprep.subr.mxu1 %v1196_v25  ;;  %v1129_v57 = vmul.f32 %v1120_v43, %v3370_v18 }
 0x29b   : > { %1536 = vmatpush1.msra.mxu0 %v1193_v14  ;;  %1607 = vmatpush1.msra.mxu1 %v1195_v5  ;;  %v1674_v47 = vsub.s32 %v1671_v26, %v3373_v63 }
 0x29c   : > { %1537 = vmatprep.subr.mxu0 %v1162_v29  ;;  %1608 = vmatprep.subr.mxu1 %v1164_v45  ;;  %v1114_v27 = vpop.permute.xlu1 %1113 }
 0x29d   : > { %v1117_v33 = vsel %vm294_vm7, %v1114_v27, %v3084_v6  ;;  %v1118_v41 = vsel %vm294_vm7, %v1112_v58, %v1114_v27  ;;  %1538 = vmatpush1.msra.mxu0 %v1161_v16  ;;  %1609 = vmatpush1.msra.mxu1 %v1163_v48  ;;  %v1362_v10 = vpop.permute.xlu0 %1361 }
 0x29e   : > { %v1131_v3 = vmul.f32 %v1118_v41, %v3371_v36  ;;  %v1132_v61 = vmul.f32 %v1117_v33, %v3372_v32  ;;  %1539 = vmatprep.subr.mxu0 %v1130_v56 }
 0x29f   : > { %1540 = vmatpush1.msra.mxu0 %v1129_v57 }
 0x2a0   : > { %1783 = vmatmul.mubr.msk.f32.vlgmr.msra.gmra.mxu0 %vm805_vm8, %v3053_v62  ;;  %1610 = vmatprep.subr.mxu1 %v1132_v61 }
 0x2a1   : > { %1611 = vmatpush1.msra.mxu1 %v1131_v3 }
 0x2a2   : > { %1784 = vmatmul.mubr.msk.f32.vlgmr.msra.gmra.mxu1 %vm805_vm8, %v3053_v62 }
 0x336   : > { %v1504_v6 = vpop.f32.mrf.mxu1 }
 0x337   : > { %v1505_v37 = vadd.f32 %v1504_v6, %v1362_v10 }
 0x338   : > { %v1506_v1 = vpop.f32.mrf.mxu1 }
 0x339   : > { %v1507_v40 = vadd.f32 %v1506_v1, %v1362_v10  ;;  %v1653_v51 = vmax.f32 %v1505_v37, 0.0 }
 0x33b   : > { %v1654_v20 = vmax.f32 %v1507_v40, 0.0 }
 0x33d   : > { %v1668_v54 = vcombine.low %v1653_v51, %v1654_v20 }
 0x33f   : > { %v1682_v28 = vrot.slane %v1668_v54, %v1674_v47 }
 0x341   : > { %v1433_v30 = vpop.f32.mrf.mxu0 }
 0x342   : > { %v1434_v17 = vadd.f32 %v1433_v30, %v1362_v10 }
 0x343   : > { %v1435_v60 = vpop.f32.mrf.mxu0 }
 0x344   : > { %v1436_v50 = vadd.f32 %v1435_v60, %v1362_v10  ;;  %v1651_v4 = vmax.f32 %v1434_v17, 0.0 }
 0x346   : > { %v1652_v62 = vmax.f32 %v1436_v50, 0.0 }
 0x348   : > { %v1667_v59 = vcombine.low %v1651_v4, %v1652_v62 }
 0x34a   : > { %v1675_v11 = vrot.slane %v1667_v59, %v1674_v47 }
 0x34c   : > { %v1683_v31 = vcombine.low %v1675_v11, %v1682_v28 }
 0x34e   : > { %1703 = vst [vmem:[%s251_s10] sm:$0xff] %v1683_v31 }
 0x360   : > { %v1575_v58 = vpop.f32.mrf.mxu0 }
 0x361   : > { %v1576_v39 = vadd.f32 %v1575_v58, %v1362_v10 }
 0x362   : > { %v1577_v19 = vpop.f32.mrf.mxu0  ;;  %v1646_v44 = vpop.f32.mrf.mxu1 }
 0x363   : > { %v1578_v9 = vadd.f32 %v1577_v19, %v1362_v10  ;;  %v1647_v23 = vadd.f32 %v1646_v44, %v1362_v10  ;;  %v1655_v55 = vmax.f32 %v1576_v39, 0.0 }
 0x364   : > { %v1648_v46 = vpop.f32.mrf.mxu1 }
 0x365   : > { %v1656_v14 = vmax.f32 %v1578_v9, 0.0  ;;  %v1649_v7 = vadd.f32 %v1648_v46, %v1362_v10  ;;  %v1657_v35 = vmax.f32 %v1647_v23, 0.0 }
 0x367   : > { %v1684_v25 = vcombine.low %v1655_v55, %v1656_v14  ;;  %v1658_v22 = vmax.f32 %v1649_v7, 0.0 }
 0x369   : > { %v1685_v43 = vcombine.low %v1657_v35, %v1658_v22  ;;  %v1692_v38 = vrot.slane %v1684_v25, %v1674_v47 }
 0x36b   : > { %v1699_v52 = vrot.slane %v1685_v43, %v1674_v47 }
 0x36d   : > { %v1700_v53 = vcombine.low %v1692_v38, %v1699_v52 }
 0x36f   : > { %1704 = vst [vmem:[%s251_s10 + $0x8] sm:$0xff] %v1700_v53 }
 0x370 PF: > { %s16_s21 = sadd.s32 1, %s1815_s21  }
 0x371   : > { %p13_p4 = scmp.ge.s32.totalorder %s16_s21, 4  }
 0x373   :  { %15 = sbr.rel (!%p13_p4) target bundleno = 1 (0x1), region = 74 }

</bundles_post_ra>
